<compile_context>
chip_gen: v7x
topology: tpu7x:2x2x1
jax: 0.10.0
libtpu: 0.0.40
codegen_flags: <defaults>
</compile_context>

<pallas_src>
import math
import functools

import jax
import jax.numpy as jnp
from jax.experimental import pallas as pl
from jax.experimental.pallas import tpu as pltpu

NEG_INF = -1e18
BF16 = jnp.bfloat16
F32 = jnp.float32


# ----------------------------- kernel helpers -----------------------------

def _layernorm(x, g, b, eps=1e-6):
    # single-pass statistics: one sum + one sum-of-squares reduction
    mu = jnp.mean(x, axis=-1, keepdims=True)
    ms = jnp.mean(x * x, axis=-1, keepdims=True)
    var = ms - mu * mu
    return (x - mu) * jax.lax.rsqrt(var + eps) * g + b


def _softmax_rows(s, score=None):
    m = jnp.max(s, axis=-1, keepdims=True)
    e = jnp.exp(s - m)
    if score is not None:
        # softmax(s)*score / sum(softmax(s)*score) == e*score / sum(e*score)
        e = e * score
        denom = jnp.sum(e, axis=-1, keepdims=True) + 1e-13
    else:
        denom = jnp.sum(e, axis=-1, keepdims=True)
    return e * pl.reciprocal(denom, approx=True)


def _mha(x_q, x_kv, wqkv_ref, bqkv_ref, wout_ref, bout_ref, attn_idx,
         mask, heads, score=None):
    """Multi-head attention on a (Bt, T, D) query block and (Bt, S, D) kv block.

    Dense D-wide Q/K/V/output projections on the MXU; heads are split with
    static lane slices afterwards and the score/context matmuls run as
    batched dots with the batch-block as the leading batch dim.
    mask: bool, broadcastable to (Bt, T, S), True == masked.
    score: optional (Bt, 1, S) f32 reweighting (WithScore attention).
    The 1/sqrt(dph) query scale is folded into Wq / bq in the wrapper.
    """
    Bt, T, D = x_q.shape
    H = heads
    dph = D // H

    def proj(x, p):
        w = wqkv_ref[0, attn_idx * 3 + p]          # (D, D) bf16
        b = bqkv_ref[0, attn_idx * 3 + p]          # (D,)   f32
        y = jnp.dot(x.reshape(-1, D).astype(BF16), w,
                    preferred_element_type=F32) + b[None, :]
        return y.astype(BF16).reshape(x.shape[0], -1, D)

    q = proj(x_q, 0)        # (Bt, T, D)
    k = proj(x_kv, 1)       # (Bt, S, D)
    v = proj(x_kv, 2)       # (Bt, S, D)

    ctx_parts = []
    for h in range(H):                              # static, small H
        lo = h * dph
        s = jnp.einsum('btd,bsd->bts',
                       q[..., lo:lo + dph], k[..., lo:lo + dph],
                       preferred_element_type=F32)  # (Bt, T, S) f32
        s = jnp.where(mask, NEG_INF, s)
        a = _softmax_rows(s, score)
        ctx_parts.append(
            jnp.einsum('bts,bsd->btd', a.astype(BF16), v[..., lo:lo + dph],
                       preferred_element_type=F32))
    ctx = jnp.concatenate(ctx_parts, axis=-1)       # (Bt, T, D) f32

    wo = wout_ref[0, attn_idx]                      # (D, D) bf16
    bo = bout_ref[0, attn_idx]                      # (D,)   f32
    out = jnp.dot(ctx.reshape(-1, D).astype(BF16), wo,
                  preferred_element_type=F32) + bo[None, :]
    return out.reshape(Bt, T, D)


# --------------------- fused decoder + epilogue kernel ----------------------
# grid = (B // Bt, num_layers); the activation block lives in a VMEM scratch
# ref across the "arbitrary" layer axis; outputs are written only at L-1.

def decoder_kernel(x0_ref, mem_ref, ent_ref, score_ref,
                   tgt_pad_ref, src_pad_ref, ent_pad_ref,
                   wqkv_ref, bqkv_ref, wout_ref, bout_ref,
                   ln_ref, fusion_ref,
                   ffw1_ref, ffb1_ref, ffw2_ref, ffb2_ref,
                   fln_ref, copyW_ref, copyb_ref,
                   out_norm_ref, copy_ref,
                   x_ref, *, heads):
    layer = pl.program_id(1)
    n_layers = pl.num_programs(1)

    @pl.when(layer == 0)
    def _():
        x_ref[...] = x0_ref[...]              # seed resident activation

    x = x_ref[...]                            # (Bt, T, D) f32
    mem = mem_ref[...]                        # (Bt, S, D) bf16
    ent = ent_ref[...]                        # (Bt, E, D) bf16
    score = score_ref[...]                    # (Bt, 1, E) f32
    Bt, T, D = x.shape

    # masks rebuilt in-kernel from 1-D pad vectors (no (T,T)/(T,S) HBM traffic)
    tgt_bad = tgt_pad_ref[...] > 0.0          # (Bt, 1, T)
    row = jax.lax.broadcasted_iota(jnp.int32, (T, T), 0)
    col = jax.lax.broadcasted_iota(jnp.int32, (T, T), 1)
    dec_mask = jnp.logical_or((col > row)[None], tgt_bad)   # (Bt, T, T)
    src_mask = src_pad_ref[...] > 0.0         # (Bt, 1, S)
    ent_mask = ent_pad_ref[...] > 0.0         # (Bt, 1, E)

    ln = ln_ref[0]                            # (6, D) f32

    # 1) self attention + residual (dropout == identity)
    input_norm = _layernorm(x, ln[0], ln[1])
    query = _mha(input_norm, input_norm, wqkv_ref, bqkv_ref, wout_ref,
                 bout_ref, 0, dec_mask, heads) + x
    query_norm = _layernorm(query, ln[2], ln[3])

    # 2) word-memory and graph/entity context attentions
    word_ctx = _mha(query_norm, mem, wqkv_ref, bqkv_ref, wout_ref, bout_ref,
                    1, src_mask, heads)
    graph_ctx = _mha(query_norm, ent, wqkv_ref, bqkv_ref, wout_ref, bout_ref,
                     2, ent_mask, heads, score=score)

    # 3) fusion gate: sigmoid(Linear(2D -> 1)([word; graph])) without concat
    fus = fusion_ref[0]                       # (3, D): w_word, w_graph, bias row
    gate_logit = (jnp.sum(word_ctx * fus[0], axis=-1, keepdims=True)
                  + jnp.sum(graph_ctx * fus[1], axis=-1, keepdims=True)
                  + fus[2:3, 0:1])
    gate = jax.nn.sigmoid(gate_logit)
    y = gate * word_ctx + (1.0 - gate) * graph_ctx + query

    # 4) position-wise FFN: LN -> gelu(W1) -> W2 -> + residual
    h = _layernorm(y, ln[4], ln[5])
    inter = jax.nn.gelu(
        jnp.dot(h.reshape(-1, D).astype(BF16), ffw1_ref[0],
                preferred_element_type=F32) + ffb1_ref[0],
        approximate=True)
    out = (jnp.dot(inter.astype(BF16), ffw2_ref[0],
                   preferred_element_type=F32)
           + ffb2_ref[0]).reshape(Bt, T, D) + y

    x_ref[...] = out

    # Fused epilogue: final LayerNorm + 1-head copy attention on the last layer
    @pl.when(layer == n_layers - 1)
    def _():
        S = mem.shape[1]
        xn = _layernorm(out, fln_ref[0], fln_ref[1])
        cq = (jnp.dot(xn.reshape(-1, D).astype(BF16), copyW_ref[0],
                      preferred_element_type=F32) + copyb_ref[0][None, :])
        ck = (jnp.dot(mem.reshape(-1, D), copyW_ref[1],
                      preferred_element_type=F32) + copyb_ref[1][None, :])
        s = jnp.einsum('btd,bsd->bts',
                       cq.astype(BF16).reshape(Bt, T, D),
                       ck.astype(BF16).reshape(Bt, S, D),
                       preferred_element_type=F32)
        s = jnp.where(src_mask, NEG_INF, s)
        out_norm_ref[...] = xn.astype(out_norm_ref.dtype)
        copy_ref[...] = _softmax_rows(s).astype(copy_ref.dtype)


# ------------------------------ pallas glue --------------------------------

def _vmem_limit_bytes():
    cap = 128 * 1024 * 1024
    try:
        info = pltpu.get_tpu_info()
        cap = int(getattr(info, "vmem_capacity_bytes", cap))
    except Exception:
        pass
    # ~75% of physical per-core VMEM (≈48 MiB on v7x, ≈96 MiB on v5e/v6e),
    # capped to leave headroom for compiler scratch.
    return max(32 * 1024 * 1024, min(int(0.75 * cap), 110 * 1024 * 1024))


def run_decoder(x0, mem, ent, score, tgt_pad, src_pad, ent_pad, kp, heads,
                block_b=2):
    B, T, D = x0.shape
    S = mem.shape[1]
    L = kp['w_qkv'].shape[0]
    Bt = max(1, math.gcd(B, block_b))     # amortize weight DMA over Bt rows

    def dspec(a):                          # data: blocked over batch block
        nd = a.ndim
        return pl.BlockSpec((Bt,) + a.shape[1:],
                            lambda b, l, nd=nd: (b,) + (0,) * (nd - 1))

    def lspec(a):                          # per-layer weights
        nd = a.ndim
        return pl.BlockSpec((1,) + a.shape[1:],
                            lambda b, l, nd=nd: (l,) + (0,) * (nd - 1))

    def cspec(a):                          # layer-independent weights (resident)
        nd = a.ndim
        return pl.BlockSpec(a.shape, lambda b, l, nd=nd: (0,) * nd)

    data = [x0, mem, ent, score, tgt_pad, src_pad, ent_pad]
    lweights = [kp['w_qkv'], kp['b_qkv'], kp['w_out'], kp['b_out'], kp['ln'],
                kp['fusion'], kp['ffw1'], kp['ffb1'], kp['ffw2'], kp['ffb2']]
    cweights = [kp['final_ln'], kp['copyW'], kp['copyb']]

    kernel = functools.partial(decoder_kernel, heads=heads)
    out_norm, copy = pl.pallas_call(
        kernel,
        grid=(B // Bt, L),
        in_specs=([dspec(a) for a in data]
                  + [lspec(w) for w in lweights]
                  + [cspec(w) for w in cweights]),
        out_specs=[pl.BlockSpec((Bt, T, D), lambda b, l: (b, 0, 0)),
                   pl.BlockSpec((Bt, T, S), lambda b, l: (b, 0, 0))],
        out_shape=(jax.ShapeDtypeStruct((B, T, D), F32),
                   jax.ShapeDtypeStruct((B, T, S), F32)),
        scratch_shapes=[pltpu.VMEM((Bt, T, D), F32)],
        compiler_params=pltpu.CompilerParams(
            dimension_semantics=("parallel", "arbitrary"),
            vmem_limit_bytes=_vmem_limit_bytes()),
    )(*data, *lweights, *cweights)
    return out_norm, copy


# --------------------------- params / embeddings ----------------------------

def positional_encoding(max_len, dim):
    pos = jnp.arange(max_len, dtype=F32)[:, None]
    div = jnp.exp(jnp.arange(0, dim, 2, dtype=F32) * -(math.log(10000.0) / dim))
    ang = pos * div[None, :]
    pe = jnp.zeros((max_len, dim), F32)
    pe = pe.at[:, 0::2].set(jnp.sin(ang)).at[:, 1::2].set(jnp.cos(ang))
    return pe


def init_params(key, num_layers, d_model, heads, d_ff, vocab_size, max_len=512):
    keys = iter(jax.random.split(key, num_layers * 64 + 32))

    def nrm(shape, scale=0.02):
        return jax.random.normal(next(keys), shape, F32) * scale

    emb = nrm((vocab_size, d_model)).at[0].set(0.0)      # padding_idx = 0
    ones = jnp.ones((d_model,), F32)
    zeros = jnp.zeros((d_model,), F32)

    layers = []
    for _ in range(num_layers):
        attnW = jnp.stack([jnp.stack([nrm((d_model, d_model)) for _ in range(4)])
                           for _ in range(3)])           # (3 attn, q/k/v/o, D, D)
        attnb = jnp.stack([jnp.stack([nrm((d_model,)) for _ in range(4)])
                           for _ in range(3)])           # (3, 4, D)
        layers.append(dict(
            attnW=attnW, attnb=attnb,
            ln=jnp.stack([ones, zeros, ones, zeros, ones, zeros]),  # (6, D)
            fusion_w=nrm((2 * d_model,)), fusion_b=nrm(()),
            ffw1=nrm((d_model, d_ff)), ffb1=nrm((d_ff,)),
            ffw2=nrm((d_ff, d_model)), ffb2=nrm((d_model,)),
        ))

    return dict(
        emb=emb, pe=positional_encoding(max_len, d_model), layers=layers,
        final_ln=jnp.stack([ones, zeros]),
        copyW=jnp.stack([nrm((d_model, d_model)) for _ in range(2)]),   # q, k
        copyb=jnp.stack([nrm((d_model,)) for _ in range(2)]),
        cog_w=nrm((d_model,)), cog_b=nrm(()),
    )


def prepare_kernel_params(params, heads):
    """Repack weights: stack layers, keep matmul weights dense (D, D) in bf16,
    fold the 1/sqrt(dph) query scale, fold the fusion bias into its weight
    block (biases / LN / gate stay f32)."""
    D = params['emb'].shape[1]
    dph = D // heads
    scale = 1.0 / math.sqrt(dph)

    w_qkv, b_qkv, w_out, b_out = [], [], [], []
    ln, fus, ffw1, ffb1, ffw2, ffb2 = [], [], [], [], [], []
    for lp in params['layers']:
        wl, bl, wol, bol = [], [], [], []
        for a in range(3):                 # self / word / graph
            for p in range(3):             # q, k, v
                w = lp['attnW'][a, p]
                b = lp['attnb'][a, p]
                if p == 0:                 # fold query scale
                    w = w * scale
                    b = b * scale
                wl.append(w)
                bl.append(b)
            wol.append(lp['attnW'][a, 3])
            bol.append(lp['attnb'][a, 3])
        w_qkv.append(jnp.stack(wl))        # (9, D, D)
        b_qkv.append(jnp.stack(bl))        # (9, D)
        w_out.append(jnp.stack(wol))       # (3, D, D)
        b_out.append(jnp.stack(bol))       # (3, D)
        ln.append(lp['ln'])
        fw = lp['fusion_w'].reshape(2, D)
        fb_row = jnp.broadcast_to(lp['fusion_b'], (1, D)).astype(F32)
        fus.append(jnp.concatenate([fw, fb_row], axis=0))   # (3, D)
        ffw1.append(lp['ffw1'])
        ffb1.append(lp['ffb1'].reshape(1, -1))
        ffw2.append(lp['ffw2'])
        ffb2.append(lp['ffb2'].reshape(1, -1))

    copy_scale = 1.0 / math.sqrt(D)        # copy attention: 1 head
    copyW = jnp.stack([params['copyW'][0] * copy_scale, params['copyW'][1]])
    copyb = jnp.stack([params['copyb'][0] * copy_scale, params['copyb'][1]])

    return dict(
        w_qkv=jnp.stack(w_qkv).astype(BF16),
        b_qkv=jnp.stack(b_qkv).astype(F32),
        w_out=jnp.stack(w_out).astype(BF16),
        b_out=jnp.stack(b_out).astype(F32),
        ln=jnp.stack(ln).astype(F32),
        fusion=jnp.stack(fus).astype(F32),
        ffw1=jnp.stack(ffw1).astype(BF16), ffb1=jnp.stack(ffb1).astype(F32),
        ffw2=jnp.stack(ffw2).astype(BF16), ffb2=jnp.stack(ffb2).astype(F32),
        final_ln=params['final_ln'].astype(F32),
        copyW=copyW.astype(BF16), copyb=copyb.astype(F32),
    )


# ------------------------------ full forward --------------------------------

def phase1_transformer_decoder_forward(params, kparams, tgt, src_words,
                                       memory_bank, ent_extend, ent_context,
                                       ent_score, heads, padding_idx=0,
                                       block_b=2):
    """tgt: (T, B) int; src_words: (B, S) int; memory_bank: (B, nb, nt, D);
    ent_extend: (B, el, wl) int; ent_context: (B, el, wl, D); ent_score: (B, el, wl)."""
    T, B = tgt.shape
    D = params['emb'].shape[1]

    # embeddings + positional encoding (gather kept wrapper-side)
    emb = params['emb'][tgt]                                     # (T, B, D)
    output = (jnp.transpose(emb, (1, 0, 2)) * math.sqrt(D)
              + params['pe'][None, :T, :])

    src_mem = memory_bank.reshape(B, -1, D).astype(BF16)         # (B, S, D)
    ent_mem = ent_context.reshape(B, -1, D).astype(BF16)         # (B, E, D)
    ent_words = ent_extend.reshape(B, -1)                        # (B, E)
    S, E = src_mem.shape[1], ent_mem.shape[1]

    tgt_words = tgt.T
    tgt_pad = (tgt_words == padding_idx).astype(F32).reshape(B, 1, T)
    src_pad = (src_words == padding_idx).astype(F32).reshape(B, 1, S)
    ent_pad = (ent_words == padding_idx).astype(F32).reshape(B, 1, E)
    score = ent_score.reshape(B, 1, E).astype(F32)

    out_norm, copy = run_decoder(output.astype(F32), src_mem, ent_mem, score,
                                 tgt_pad, src_pad, ent_pad, kparams, heads,
                                 block_b=block_b)

    # copy_or_generate: last-dim-1 sigmoid(Linear) head kept in XLA to keep
    # kernel outputs lane-dense.
    cog = jax.nn.sigmoid(
        jnp.einsum('btd,d->bt', out_norm, params['cog_w'])[..., None]
        + params['cog_b'])

    outputs = jnp.transpose(out_norm, (1, 0, 2))                 # (T, B, D)
    copy = jnp.transpose(copy, (1, 0, 2))                        # (T, B, S)
    copy_or_generate = jnp.transpose(cog, (1, 0, 2))             # (T, B, 1)
    return outputs, {'attn': copy, 'copy_or_generate': copy_or_generate,
                     'src': src_words}


# ---------------------------------- main -------------------------------------

if __name__ == "__main__":
    num_layers, d_model, heads, d_ff, vocab = 2, 32, 4, 64, 50
    B, T = 4, 8
    n_blocks, block_tokens = 2, 8        # -> src len S = 16
    ent_len, word_len = 2, 4             # -> entity kv length E = 8

    key = jax.random.PRNGKey(0)
    k_par, kt, ks, km, ke, kc, kw = jax.random.split(key, 7)

    params = init_params(k_par, num_layers, d_model, heads, d_ff, vocab)
    kparams = prepare_kernel_params(params, heads)

    tgt = jax.random.randint(kt, (T, B), 1, vocab)
    src_words = jax.random.randint(ks, (B, n_blocks * block_tokens), 1, vocab)
    src_words = src_words.at[0, -1].set(0)                   # one pad position
    memory_bank = jax.random.normal(km, (B, n_blocks, block_tokens, d_model), F32)
    ent_extend = jax.random.randint(ke, (B, ent_len, word_len), 1, vocab)
    ent_extend = ent_extend.at[1, -1, -1].set(0)              # one pad entity word
    ent_context = jax.random.normal(kc, (B, ent_len, word_len, d_model), F32)
    ent_score = jax.nn.softmax(jax.random.normal(kw, (B, ent_len, word_len)), axis=-1)

    outputs, extras = phase1_transformer_decoder_forward(
        params, kparams, tgt, src_words, memory_bank, ent_extend, ent_context,
        ent_score, heads, block_b=2)

    jax.block_until_ready((outputs, extras['attn'], extras['copy_or_generate']))
    assert outputs.shape == (T, B, d_model)
    assert extras['attn'].shape == (T, B, n_blocks * block_tokens)
    assert extras['copy_or_generate'].shape == (T, B, 1)
    assert bool(jnp.all(jnp.isfinite(outputs)))
    assert bool(jnp.all(jnp.isfinite(extras['attn'])))
    print("KERNEL_OK")
</pallas_src>

<mosaic_0001>
module attributes {stable_mosaic.version = 11 : i64} {
  func.func @decoder_kernel(%arg0: i32, %arg1: i32, %arg2: memref<2x8x32xf32, #tpu.memory_space<vmem>>, %arg3: memref<2x16x32xbf16, #tpu.memory_space<vmem>>, %arg4: memref<2x8x32xbf16, #tpu.memory_space<vmem>>, %arg5: memref<2x1x8xf32, #tpu.memory_space<vmem>>, %arg6: memref<2x1x8xf32, #tpu.memory_space<vmem>>, %arg7: memref<2x1x16xf32, #tpu.memory_space<vmem>>, %arg8: memref<2x1x8xf32, #tpu.memory_space<vmem>>, %arg9: memref<1x9x32x32xbf16, #tpu.memory_space<vmem>>, %arg10: memref<1x9x32xf32, #tpu.memory_space<vmem>>, %arg11: memref<1x3x32x32xbf16, #tpu.memory_space<vmem>>, %arg12: memref<1x3x32xf32, #tpu.memory_space<vmem>>, %arg13: memref<1x6x32xf32, #tpu.memory_space<vmem>>, %arg14: memref<1x3x32xf32, #tpu.memory_space<vmem>>, %arg15: memref<1x32x64xbf16, #tpu.memory_space<vmem>>, %arg16: memref<1x1x64xf32, #tpu.memory_space<vmem>>, %arg17: memref<1x64x32xbf16, #tpu.memory_space<vmem>>, %arg18: memref<1x1x32xf32, #tpu.memory_space<vmem>>, %arg19: memref<2x32xf32, #tpu.memory_space<vmem>>, %arg20: memref<2x32x32xbf16, #tpu.memory_space<vmem>>, %arg21: memref<2x32xf32, #tpu.memory_space<vmem>>, %arg22: memref<2x8x32xf32, #tpu.memory_space<vmem>>, %arg23: memref<2x8x16xf32, #tpu.memory_space<vmem>>, %arg24: memref<2x8x32xf32, #tpu.memory_space<vmem>>) attributes {dimension_semantics = [#tpu.dimension_semantics<parallel>, #tpu.dimension_semantics<arbitrary>], iteration_bounds = array<i64: 2, 2>, scalar_prefetch = 0 : i64, scratch_operands = 1 : i64, tpu.core_type = #tpu.core_type<tc>, window_params = [{transform_indices = @transform_0, window_bounds = array<i64: 2, 8, 32>}, {transform_indices = @transform_1, window_bounds = array<i64: 2, 16, 32>}, {transform_indices = @transform_2, window_bounds = array<i64: 2, 8, 32>}, {transform_indices = @transform_3, window_bounds = array<i64: 2, 1, 8>}, {transform_indices = @transform_4, window_bounds = array<i64: 2, 1, 8>}, {transform_indices = @transform_5, window_bounds = array<i64: 2, 1, 16>}, {transform_indices = @transform_6, window_bounds = array<i64: 2, 1, 8>}, {transform_indices = @transform_7, window_bounds = array<i64: 1, 9, 32, 32>}, {transform_indices = @transform_8, window_bounds = array<i64: 1, 9, 32>}, {transform_indices = @transform_9, window_bounds = array<i64: 1, 3, 32, 32>}, {transform_indices = @transform_10, window_bounds = array<i64: 1, 3, 32>}, {transform_indices = @transform_11, window_bounds = array<i64: 1, 6, 32>}, {transform_indices = @transform_12, window_bounds = array<i64: 1, 3, 32>}, {transform_indices = @transform_13, window_bounds = array<i64: 1, 32, 64>}, {transform_indices = @transform_14, window_bounds = array<i64: 1, 1, 64>}, {transform_indices = @transform_15, window_bounds = array<i64: 1, 64, 32>}, {transform_indices = @transform_16, window_bounds = array<i64: 1, 1, 32>}, {pipeline_mode = #tpu.pipeline_mode<synchronous>, transform_indices = @transform_17, window_bounds = array<i64: 2, 32>}, {pipeline_mode = #tpu.pipeline_mode<synchronous>, transform_indices = @transform_18, window_bounds = array<i64: 2, 32, 32>}, {pipeline_mode = #tpu.pipeline_mode<synchronous>, transform_indices = @transform_19, window_bounds = array<i64: 2, 32>}, {transform_indices = @transform_20, window_bounds = array<i64: 2, 8, 32>}, {transform_indices = @transform_21, window_bounds = array<i64: 2, 8, 16>}]} {
    %c0_i32 = arith.constant 0 : i32
    %0 = arith.cmpi eq, %arg1, %c0_i32 : i32
    %1 = arith.extui %0 : i1 to i32
    %c0_i32_0 = arith.constant 0 : i32
    %2 = arith.cmpi ne, %1, %c0_i32_0 : i32
    scf.if %2 {
      %c0_222 = arith.constant 0 : index
      %c0_223 = arith.constant 0 : index
      %c0_224 = arith.constant 0 : index
      %568 = vector.load %arg2[%c0_222, %c0_223, %c0_224] : memref<2x8x32xf32, #tpu.memory_space<vmem>>, vector<2x8x32xf32>
      %c0_225 = arith.constant 0 : index
      %c0_226 = arith.constant 0 : index
      %c0_227 = arith.constant 0 : index
      %569 = vector.load %arg24[%c0_225, %c0_226, %c0_227] : memref<2x8x32xf32, #tpu.memory_space<vmem>>, vector<2x8x32xf32>
      tpu.vector_store %arg24[%c0_225, %c0_226, %c0_227], %568 {strides = array<i32>} : memref<2x8x32xf32, #tpu.memory_space<vmem>>, vector<2x8x32xf32>,
    } else {
    }
    %c0 = arith.constant 0 : index
    %c0_1 = arith.constant 0 : index
    %c0_2 = arith.constant 0 : index
    %3 = vector.load %arg24[%c0, %c0_1, %c0_2] : memref<2x8x32xf32, #tpu.memory_space<vmem>>, vector<2x8x32xf32>
    %c0_3 = arith.constant 0 : index
    %c0_4 = arith.constant 0 : index
    %c0_5 = arith.constant 0 : index
    %4 = vector.load %arg3[%c0_3, %c0_4, %c0_5] : memref<2x16x32xbf16, #tpu.memory_space<vmem>>, vector<2x16x32xbf16>
    %c0_6 = arith.constant 0 : index
    %c0_7 = arith.constant 0 : index
    %c0_8 = arith.constant 0 : index
    %5 = vector.load %arg4[%c0_6, %c0_7, %c0_8] : memref<2x8x32xbf16, #tpu.memory_space<vmem>>, vector<2x8x32xbf16>
    %c0_9 = arith.constant 0 : index
    %c0_10 = arith.constant 0 : index
    %c0_11 = arith.constant 0 : index
    %6 = vector.load %arg5[%c0_9, %c0_10, %c0_11] : memref<2x1x8xf32, #tpu.memory_space<vmem>>, vector<2x1x8xf32>
    %c0_12 = arith.constant 0 : index
    %c0_13 = arith.constant 0 : index
    %c0_14 = arith.constant 0 : index
    %7 = vector.load %arg6[%c0_12, %c0_13, %c0_14] : memref<2x1x8xf32, #tpu.memory_space<vmem>>, vector<2x1x8xf32>
    %cst = arith.constant 0.000000e+00 : f32
    %8 = vector.broadcast %cst : f32 to vector<2x1x8xf32>
    %9 = arith.cmpf ogt, %7, %8 : vector<2x1x8xf32>
    %10 = tpu.iota {dimensions = array<i32: 0>} : vector<8x8xi32>
    %11 = tpu.iota {dimensions = array<i32: 1>} : vector<8x8xi32>
    %12 = arith.cmpi sgt, %11, %10 : vector<8x8xi32>
    %13 = vector.shape_cast %12 : vector<8x8xi1> to vector<1x8x8xi1>
    %14 = vector.broadcast %13 : vector<1x8x8xi1> to vector<2x8x8xi1>
    %15 = vector.broadcast %9 : vector<2x1x8xi1> to vector<2x8x8xi1>
    %16 = arith.ori %14, %15 : vector<2x8x8xi1>
    %c0_15 = arith.constant 0 : index
    %c0_16 = arith.constant 0 : index
    %c0_17 = arith.constant 0 : index
    %17 = vector.load %arg7[%c0_15, %c0_16, %c0_17] : memref<2x1x16xf32, #tpu.memory_space<vmem>>, vector<2x1x16xf32>
    %cst_18 = arith.constant 0.000000e+00 : f32
    %18 = vector.broadcast %cst_18 : f32 to vector<2x1x16xf32>
    %19 = arith.cmpf ogt, %17, %18 : vector<2x1x16xf32>
    %c0_19 = arith.constant 0 : index
    %c0_20 = arith.constant 0 : index
    %c0_21 = arith.constant 0 : index
    %20 = vector.load %arg8[%c0_19, %c0_20, %c0_21] : memref<2x1x8xf32, #tpu.memory_space<vmem>>, vector<2x1x8xf32>
    %cst_22 = arith.constant 0.000000e+00 : f32
    %21 = vector.broadcast %cst_22 : f32 to vector<2x1x8xf32>
    %22 = arith.cmpf ogt, %20, %21 : vector<2x1x8xf32>
    %c0_23 = arith.constant 0 : index
    %c0_24 = arith.constant 0 : index
    %c0_25 = arith.constant 0 : index
    %23 = vector.load %arg13[%c0_23, %c0_24, %c0_25] : memref<1x6x32xf32, #tpu.memory_space<vmem>>, vector<1x6x32xf32>
    %24 = vector.shape_cast %23 : vector<1x6x32xf32> to vector<6x32xf32>
    %25 = vector.extract_strided_slice %24 {offsets = [0, 0], sizes = [1, 32], strides = [1, 1]} : vector<6x32xf32> to vector<1x32xf32>
    %26 = vector.shape_cast %25 : vector<1x32xf32> to vector<32xf32>
    %27 = vector.extract_strided_slice %24 {offsets = [1, 0], sizes = [1, 32], strides = [1, 1]} : vector<6x32xf32> to vector<1x32xf32>
    %28 = vector.shape_cast %27 : vector<1x32xf32> to vector<32xf32>
    %cst_26 = arith.constant dense<0.000000e+00> : vector<2x8xf32>
    %29 = vector.multi_reduction <add>, %3, %cst_26 [2] : vector<2x8x32xf32> to vector<2x8xf32>
    %30 = vector.shape_cast %29 : vector<2x8xf32> to vector<2x8x1xf32>
    %cst_27 = arith.constant 3.200000e+01 : f32
    %31 = vector.broadcast %cst_27 : f32 to vector<2x8x1xf32>
    %32 = arith.divf %30, %31 : vector<2x8x1xf32>
    %33 = arith.mulf %3, %3 : vector<2x8x32xf32>
    %cst_28 = arith.constant dense<0.000000e+00> : vector<2x8xf32>
    %34 = vector.multi_reduction <add>, %33, %cst_28 [2] : vector<2x8x32xf32> to vector<2x8xf32>
    %35 = vector.shape_cast %34 : vector<2x8xf32> to vector<2x8x1xf32>
    %cst_29 = arith.constant 3.200000e+01 : f32
    %36 = vector.broadcast %cst_29 : f32 to vector<2x8x1xf32>
    %37 = arith.divf %35, %36 : vector<2x8x1xf32>
    %38 = arith.mulf %32, %32 : vector<2x8x1xf32>
    %39 = arith.subf %37, %38 : vector<2x8x1xf32>
    %40 = vector.broadcast %32 : vector<2x8x1xf32> to vector<2x8x32xf32>
    %41 = arith.subf %3, %40 : vector<2x8x32xf32>
    %cst_30 = arith.constant 9.99999997E-7 : f32
    %42 = vector.broadcast %cst_30 : f32 to vector<2x8x1xf32>
    %43 = arith.addf %39, %42 : vector<2x8x1xf32>
    %44 = math.rsqrt %43 : vector<2x8x1xf32>
    %45 = vector.broadcast %44 : vector<2x8x1xf32> to vector<2x8x32xf32>
    %46 = arith.mulf %41, %45 : vector<2x8x32xf32>
    %47 = vector.shape_cast %26 : vector<32xf32> to vector<1x1x32xf32>
    %48 = vector.broadcast %47 : vector<1x1x32xf32> to vector<2x8x32xf32>
    %49 = arith.mulf %46, %48 : vector<2x8x32xf32>
    %50 = vector.shape_cast %28 : vector<32xf32> to vector<1x1x32xf32>
    %51 = vector.broadcast %50 : vector<1x1x32xf32> to vector<2x8x32xf32>
    %52 = arith.addf %49, %51 : vector<2x8x32xf32>
    %c0_31 = arith.constant 0 : index
    %c0_32 = arith.constant 0 : index
    %c0_33 = arith.constant 0 : index
    %c0_34 = arith.constant 0 : index
    %53 = vector.load %arg9[%c0_31, %c0_32, %c0_33, %c0_34] : memref<1x9x32x32xbf16, #tpu.memory_space<vmem>>, vector<1x1x32x32xbf16>
    %54 = vector.shape_cast %53 : vector<1x1x32x32xbf16> to vector<32x32xbf16>
    %c0_35 = arith.constant 0 : index
    %c0_36 = arith.constant 0 : index
    %c0_37 = arith.constant 0 : index
    %55 = vector.load %arg10[%c0_35, %c0_36, %c0_37] : memref<1x9x32xf32, #tpu.memory_space<vmem>>, vector<1x1x32xf32>
    %56 = vector.shape_cast %55 : vector<1x1x32xf32> to vector<32xf32>
    %57 = vector.shape_cast %52 : vector<2x8x32xf32> to vector<16x32xf32>
    %58 = arith.truncf %57 : vector<16x32xf32> to vector<16x32xbf16>
    %cst_38 = arith.constant dense<0.000000e+00> : vector<16x32xf32>
    %59 = tpu.matmul %58, %54, %cst_38 {dimension_numbers = #tpu.dot_dimension_numbers<[1], [0], [0], [1], [0, 0, 1, 1], [], []>} : vector<16x32xbf16>, vector<32x32xbf16>, vector<16x32xf32> -> vector<16x32xf32>
    %60 = vector.shape_cast %56 : vector<32xf32> to vector<1x32xf32>
    %61 = vector.broadcast %60 : vector<1x32xf32> to vector<16x32xf32>
    %62 = arith.addf %59, %61 : vector<16x32xf32>
    %63 = arith.truncf %62 : vector<16x32xf32> to vector<16x32xbf16>
    %64 = vector.shape_cast %63 : vector<16x32xbf16> to vector<2x8x32xbf16>
    %c0_39 = arith.constant 0 : index
    %c1 = arith.constant 1 : index
    %c0_40 = arith.constant 0 : index
    %c0_41 = arith.constant 0 : index
    %65 = vector.load %arg9[%c0_39, %c1, %c0_40, %c0_41] : memref<1x9x32x32xbf16, #tpu.memory_space<vmem>>, vector<1x1x32x32xbf16>
    %66 = vector.shape_cast %65 : vector<1x1x32x32xbf16> to vector<32x32xbf16>
    %c0_42 = arith.constant 0 : index
    %c1_43 = arith.constant 1 : index
    %c0_44 = arith.constant 0 : index
    %67 = vector.load %arg10[%c0_42, %c1_43, %c0_44] : memref<1x9x32xf32, #tpu.memory_space<vmem>>, vector<1x1x32xf32>
    %68 = vector.shape_cast %67 : vector<1x1x32xf32> to vector<32xf32>
    %69 = vector.shape_cast %52 : vector<2x8x32xf32> to vector<16x32xf32>
    %70 = arith.truncf %69 : vector<16x32xf32> to vector<16x32xbf16>
    %cst_45 = arith.constant dense<0.000000e+00> : vector<16x32xf32>
    %71 = tpu.matmul %70, %66, %cst_45 {dimension_numbers = #tpu.dot_dimension_numbers<[1], [0], [0], [1], [0, 0, 1, 1], [], []>} : vector<16x32xbf16>, vector<32x32xbf16>, vector<16x32xf32> -> vector<16x32xf32>
    %72 = vector.shape_cast %68 : vector<32xf32> to vector<1x32xf32>
    %73 = vector.broadcast %72 : vector<1x32xf32> to vector<16x32xf32>
    %74 = arith.addf %71, %73 : vector<16x32xf32>
    %75 = arith.truncf %74 : vector<16x32xf32> to vector<16x32xbf16>
    %76 = vector.shape_cast %75 : vector<16x32xbf16> to vector<2x8x32xbf16>
    %c0_46 = arith.constant 0 : index
    %c2 = arith.constant 2 : index
    %c0_47 = arith.constant 0 : index
    %c0_48 = arith.constant 0 : index
    %77 = vector.load %arg9[%c0_46, %c2, %c0_47, %c0_48] : memref<1x9x32x32xbf16, #tpu.memory_space<vmem>>, vector<1x1x32x32xbf16>
    %78 = vector.shape_cast %77 : vector<1x1x32x32xbf16> to vector<32x32xbf16>
    %c0_49 = arith.constant 0 : index
    %c2_50 = arith.constant 2 : index
    %c0_51 = arith.constant 0 : index
    %79 = vector.load %arg10[%c0_49, %c2_50, %c0_51] : memref<1x9x32xf32, #tpu.memory_space<vmem>>, vector<1x1x32xf32>
    %80 = vector.shape_cast %79 : vector<1x1x32xf32> to vector<32xf32>
    %81 = vector.shape_cast %52 : vector<2x8x32xf32> to vector<16x32xf32>
    %82 = arith.truncf %81 : vector<16x32xf32> to vector<16x32xbf16>
    %cst_52 = arith.constant dense<0.000000e+00> : vector<16x32xf32>
    %83 = tpu.matmul %82, %78, %cst_52 {dimension_numbers = #tpu.dot_dimension_numbers<[1], [0], [0], [1], [0, 0, 1, 1], [], []>} : vector<16x32xbf16>, vector<32x32xbf16>, vector<16x32xf32> -> vector<16x32xf32>
    %84 = vector.shape_cast %80 : vector<32xf32> to vector<1x32xf32>
    %85 = vector.broadcast %84 : vector<1x32xf32> to vector<16x32xf32>
    %86 = arith.addf %83, %85 : vector<16x32xf32>
    %87 = arith.truncf %86 : vector<16x32xf32> to vector<16x32xbf16>
    %88 = vector.shape_cast %87 : vector<16x32xbf16> to vector<2x8x32xbf16>
    %89 = vector.extract_strided_slice %64 {offsets = [0, 0, 0], sizes = [2, 8, 8], strides = [1, 1, 1]} : vector<2x8x32xbf16> to vector<2x8x8xbf16>
    %90 = vector.extract_strided_slice %76 {offsets = [0, 0, 0], sizes = [2, 8, 8], strides = [1, 1, 1]} : vector<2x8x32xbf16> to vector<2x8x8xbf16>
    "tpu.trace_start"() <{level = 10 : i32, message = "btd,bsd->bts"}> : () -> ()
    %cst_53 = arith.constant dense<0.000000e+00> : vector<2x8x8xf32>
    %91 = tpu.matmul %89, %90, %cst_53 {dimension_numbers = #tpu.dot_dimension_numbers<[2], [2], [1], [1], [0, 0, 0, 1, 1, 1], [0], [0]>} : vector<2x8x8xbf16>, vector<2x8x8xbf16>, vector<2x8x8xf32> -> vector<2x8x8xf32>
    %cst_54 = arith.constant -9.99999984E+17 : f32
    "tpu.trace_stop"() : () -> ()
    %92 = vector.broadcast %cst_54 : f32 to vector<2x8x8xf32>
    %93 = arith.select %16, %92, %91 : vector<2x8x8xi1>, vector<2x8x8xf32>
    %cst_55 = arith.constant dense<0xFF800000> : vector<2x8xf32>
    %94 = vector.multi_reduction <maximumf>, %93, %cst_55 [2] : vector<2x8x8xf32> to vector<2x8xf32>
    %95 = vector.shape_cast %94 : vector<2x8xf32> to vector<2x8x1xf32>
    %96 = vector.broadcast %95 : vector<2x8x1xf32> to vector<2x8x8xf32>
    %97 = arith.subf %93, %96 : vector<2x8x8xf32>
    %98 = math.exp %97 : vector<2x8x8xf32>
    %cst_56 = arith.constant dense<0.000000e+00> : vector<2x8xf32>
    %99 = vector.multi_reduction <add>, %98, %cst_56 [2] : vector<2x8x8xf32> to vector<2x8xf32>
    %100 = vector.shape_cast %99 : vector<2x8xf32> to vector<2x8x1xf32>
    %101 = tpu.reciprocal %100 {approx = true} : vector<2x8x1xf32> -> vector<2x8x1xf32>
    %102 = vector.broadcast %101 : vector<2x8x1xf32> to vector<2x8x8xf32>
    %103 = arith.mulf %98, %102 : vector<2x8x8xf32>
    %104 = arith.truncf %103 : vector<2x8x8xf32> to vector<2x8x8xbf16>
    %105 = vector.extract_strided_slice %88 {offsets = [0, 0, 0], sizes = [2, 8, 8], strides = [1, 1, 1]} : vector<2x8x32xbf16> to vector<2x8x8xbf16>
    "tpu.trace_start"() <{level = 10 : i32, message = "bts,bsd->btd"}> : () -> ()
    %cst_57 = arith.constant dense<0.000000e+00> : vector<2x8x8xf32>
    %106 = tpu.matmul %104, %105, %cst_57 {dimension_numbers = #tpu.dot_dimension_numbers<[2], [1], [1], [2], [0, 0, 0, 1, 1, 2], [0], [0]>} : vector<2x8x8xbf16>, vector<2x8x8xbf16>, vector<2x8x8xf32> -> vector<2x8x8xf32>
    "tpu.trace_stop"() : () -> ()
    %107 = vector.extract_strided_slice %64 {offsets = [0, 0, 8], sizes = [2, 8, 8], strides = [1, 1, 1]} : vector<2x8x32xbf16> to vector<2x8x8xbf16>
    %108 = vector.extract_strided_slice %76 {offsets = [0, 0, 8], sizes = [2, 8, 8], strides = [1, 1, 1]} : vector<2x8x32xbf16> to vector<2x8x8xbf16>
    "tpu.trace_start"() <{level = 10 : i32, message = "btd,bsd->bts"}> : () -> ()
    %cst_58 = arith.constant dense<0.000000e+00> : vector<2x8x8xf32>
    %109 = tpu.matmul %107, %108, %cst_58 {dimension_numbers = #tpu.dot_dimension_numbers<[2], [2], [1], [1], [0, 0, 0, 1, 1, 1], [0], [0]>} : vector<2x8x8xbf16>, vector<2x8x8xbf16>, vector<2x8x8xf32> -> vector<2x8x8xf32>
    %cst_59 = arith.constant -9.99999984E+17 : f32
    "tpu.trace_stop"() : () -> ()
    %110 = vector.broadcast %cst_59 : f32 to vector<2x8x8xf32>
    %111 = arith.select %16, %110, %109 : vector<2x8x8xi1>, vector<2x8x8xf32>
    %cst_60 = arith.constant dense<0xFF800000> : vector<2x8xf32>
    %112 = vector.multi_reduction <maximumf>, %111, %cst_60 [2] : vector<2x8x8xf32> to vector<2x8xf32>
    %113 = vector.shape_cast %112 : vector<2x8xf32> to vector<2x8x1xf32>
    %114 = vector.broadcast %113 : vector<2x8x1xf32> to vector<2x8x8xf32>
    %115 = arith.subf %111, %114 : vector<2x8x8xf32>
    %116 = math.exp %115 : vector<2x8x8xf32>
    %cst_61 = arith.constant dense<0.000000e+00> : vector<2x8xf32>
    %117 = vector.multi_reduction <add>, %116, %cst_61 [2] : vector<2x8x8xf32> to vector<2x8xf32>
    %118 = vector.shape_cast %117 : vector<2x8xf32> to vector<2x8x1xf32>
    %119 = tpu.reciprocal %118 {approx = true} : vector<2x8x1xf32> -> vector<2x8x1xf32>
    %120 = vector.broadcast %119 : vector<2x8x1xf32> to vector<2x8x8xf32>
    %121 = arith.mulf %116, %120 : vector<2x8x8xf32>
    %122 = arith.truncf %121 : vector<2x8x8xf32> to vector<2x8x8xbf16>
    %123 = vector.extract_strided_slice %88 {offsets = [0, 0, 8], sizes = [2, 8, 8], strides = [1, 1, 1]} : vector<2x8x32xbf16> to vector<2x8x8xbf16>
    "tpu.trace_start"() <{level = 10 : i32, message = "bts,bsd->btd"}> : () -> ()
    %cst_62 = arith.constant dense<0.000000e+00> : vector<2x8x8xf32>
    %124 = tpu.matmul %122, %123, %cst_62 {dimension_numbers = #tpu.dot_dimension_numbers<[2], [1], [1], [2], [0, 0, 0, 1, 1, 2], [0], [0]>} : vector<2x8x8xbf16>, vector<2x8x8xbf16>, vector<2x8x8xf32> -> vector<2x8x8xf32>
    "tpu.trace_stop"() : () -> ()
    %125 = vector.extract_strided_slice %64 {offsets = [0, 0, 16], sizes = [2, 8, 8], strides = [1, 1, 1]} : vector<2x8x32xbf16> to vector<2x8x8xbf16>
    %126 = vector.extract_strided_slice %76 {offsets = [0, 0, 16], sizes = [2, 8, 8], strides = [1, 1, 1]} : vector<2x8x32xbf16> to vector<2x8x8xbf16>
    "tpu.trace_start"() <{level = 10 : i32, message = "btd,bsd->bts"}> : () -> ()
    %cst_63 = arith.constant dense<0.000000e+00> : vector<2x8x8xf32>
    %127 = tpu.matmul %125, %126, %cst_63 {dimension_numbers = #tpu.dot_dimension_numbers<[2], [2], [1], [1], [0, 0, 0, 1, 1, 1], [0], [0]>} : vector<2x8x8xbf16>, vector<2x8x8xbf16>, vector<2x8x8xf32> -> vector<2x8x8xf32>
    %cst_64 = arith.constant -9.99999984E+17 : f32
    "tpu.trace_stop"() : () -> ()
    %128 = vector.broadcast %cst_64 : f32 to vector<2x8x8xf32>
    %129 = arith.select %16, %128, %127 : vector<2x8x8xi1>, vector<2x8x8xf32>
    %cst_65 = arith.constant dense<0xFF800000> : vector<2x8xf32>
    %130 = vector.multi_reduction <maximumf>, %129, %cst_65 [2] : vector<2x8x8xf32> to vector<2x8xf32>
    %131 = vector.shape_cast %130 : vector<2x8xf32> to vector<2x8x1xf32>
    %132 = vector.broadcast %131 : vector<2x8x1xf32> to vector<2x8x8xf32>
    %133 = arith.subf %129, %132 : vector<2x8x8xf32>
    %134 = math.exp %133 : vector<2x8x8xf32>
    %cst_66 = arith.constant dense<0.000000e+00> : vector<2x8xf32>
    %135 = vector.multi_reduction <add>, %134, %cst_66 [2] : vector<2x8x8xf32> to vector<2x8xf32>
    %136 = vector.shape_cast %135 : vector<2x8xf32> to vector<2x8x1xf32>
    %137 = tpu.reciprocal %136 {approx = true} : vector<2x8x1xf32> -> vector<2x8x1xf32>
    %138 = vector.broadcast %137 : vector<2x8x1xf32> to vector<2x8x8xf32>
    %139 = arith.mulf %134, %138 : vector<2x8x8xf32>
    %140 = arith.truncf %139 : vector<2x8x8xf32> to vector<2x8x8xbf16>
    %141 = vector.extract_strided_slice %88 {offsets = [0, 0, 16], sizes = [2, 8, 8], strides = [1, 1, 1]} : vector<2x8x32xbf16> to vector<2x8x8xbf16>
    "tpu.trace_start"() <{level = 10 : i32, message = "bts,bsd->btd"}> : () -> ()
    %cst_67 = arith.constant dense<0.000000e+00> : vector<2x8x8xf32>
    %142 = tpu.matmul %140, %141, %cst_67 {dimension_numbers = #tpu.dot_dimension_numbers<[2], [1], [1], [2], [0, 0, 0, 1, 1, 2], [0], [0]>} : vector<2x8x8xbf16>, vector<2x8x8xbf16>, vector<2x8x8xf32> -> vector<2x8x8xf32>
    "tpu.trace_stop"() : () -> ()
    %143 = vector.extract_strided_slice %64 {offsets = [0, 0, 24], sizes = [2, 8, 8], strides = [1, 1, 1]} : vector<2x8x32xbf16> to vector<2x8x8xbf16>
    %144 = vector.extract_strided_slice %76 {offsets = [0, 0, 24], sizes = [2, 8, 8], strides = [1, 1, 1]} : vector<2x8x32xbf16> to vector<2x8x8xbf16>
    "tpu.trace_start"() <{level = 10 : i32, message = "btd,bsd->bts"}> : () -> ()
    %cst_68 = arith.constant dense<0.000000e+00> : vector<2x8x8xf32>
    %145 = tpu.matmul %143, %144, %cst_68 {dimension_numbers = #tpu.dot_dimension_numbers<[2], [2], [1], [1], [0, 0, 0, 1, 1, 1], [0], [0]>} : vector<2x8x8xbf16>, vector<2x8x8xbf16>, vector<2x8x8xf32> -> vector<2x8x8xf32>
    %cst_69 = arith.constant -9.99999984E+17 : f32
    "tpu.trace_stop"() : () -> ()
    %146 = vector.broadcast %cst_69 : f32 to vector<2x8x8xf32>
    %147 = arith.select %16, %146, %145 : vector<2x8x8xi1>, vector<2x8x8xf32>
    %cst_70 = arith.constant dense<0xFF800000> : vector<2x8xf32>
    %148 = vector.multi_reduction <maximumf>, %147, %cst_70 [2] : vector<2x8x8xf32> to vector<2x8xf32>
    %149 = vector.shape_cast %148 : vector<2x8xf32> to vector<2x8x1xf32>
    %150 = vector.broadcast %149 : vector<2x8x1xf32> to vector<2x8x8xf32>
    %151 = arith.subf %147, %150 : vector<2x8x8xf32>
    %152 = math.exp %151 : vector<2x8x8xf32>
    %cst_71 = arith.constant dense<0.000000e+00> : vector<2x8xf32>
    %153 = vector.multi_reduction <add>, %152, %cst_71 [2] : vector<2x8x8xf32> to vector<2x8xf32>
    %154 = vector.shape_cast %153 : vector<2x8xf32> to vector<2x8x1xf32>
    %155 = tpu.reciprocal %154 {approx = true} : vector<2x8x1xf32> -> vector<2x8x1xf32>
    %156 = vector.broadcast %155 : vector<2x8x1xf32> to vector<2x8x8xf32>
    %157 = arith.mulf %152, %156 : vector<2x8x8xf32>
    %158 = arith.truncf %157 : vector<2x8x8xf32> to vector<2x8x8xbf16>
    %159 = vector.extract_strided_slice %88 {offsets = [0, 0, 24], sizes = [2, 8, 8], strides = [1, 1, 1]} : vector<2x8x32xbf16> to vector<2x8x8xbf16>
    "tpu.trace_start"() <{level = 10 : i32, message = "bts,bsd->btd"}> : () -> ()
    %cst_72 = arith.constant dense<0.000000e+00> : vector<2x8x8xf32>
    %160 = tpu.matmul %158, %159, %cst_72 {dimension_numbers = #tpu.dot_dimension_numbers<[2], [1], [1], [2], [0, 0, 0, 1, 1, 2], [0], [0]>} : vector<2x8x8xbf16>, vector<2x8x8xbf16>, vector<2x8x8xf32> -> vector<2x8x8xf32>
    "tpu.trace_stop"() : () -> ()
    %161 = tpu.concatenate %106, %124, %142, %160 in 2 : vector<2x8x8xf32>, vector<2x8x8xf32>, vector<2x8x8xf32>, vector<2x8x8xf32> -> vector<2x8x32xf32>
    %c0_73 = arith.constant 0 : index
    %c0_74 = arith.constant 0 : index
    %c0_75 = arith.constant 0 : index
    %c0_76 = arith.constant 0 : index
    %162 = vector.load %arg11[%c0_73, %c0_74, %c0_75, %c0_76] : memref<1x3x32x32xbf16, #tpu.memory_space<vmem>>, vector<1x1x32x32xbf16>
    %163 = vector.shape_cast %162 : vector<1x1x32x32xbf16> to vector<32x32xbf16>
    %c0_77 = arith.constant 0 : index
    %c0_78 = arith.constant 0 : index
    %c0_79 = arith.constant 0 : index
    %164 = vector.load %arg12[%c0_77, %c0_78, %c0_79] : memref<1x3x32xf32, #tpu.memory_space<vmem>>, vector<1x1x32xf32>
    %165 = vector.shape_cast %164 : vector<1x1x32xf32> to vector<32xf32>
    %166 = vector.shape_cast %161 : vector<2x8x32xf32> to vector<16x32xf32>
    %167 = arith.truncf %166 : vector<16x32xf32> to vector<16x32xbf16>
    %cst_80 = arith.constant dense<0.000000e+00> : vector<16x32xf32>
    %168 = tpu.matmul %167, %163, %cst_80 {dimension_numbers = #tpu.dot_dimension_numbers<[1], [0], [0], [1], [0, 0, 1, 1], [], []>} : vector<16x32xbf16>, vector<32x32xbf16>, vector<16x32xf32> -> vector<16x32xf32>
    %169 = vector.shape_cast %165 : vector<32xf32> to vector<1x32xf32>
    %170 = vector.broadcast %169 : vector<1x32xf32> to vector<16x32xf32>
    %171 = arith.addf %168, %170 : vector<16x32xf32>
    %172 = vector.shape_cast %171 : vector<16x32xf32> to vector<2x8x32xf32>
    %173 = arith.addf %172, %3 : vector<2x8x32xf32>
    %174 = vector.extract_strided_slice %24 {offsets = [2, 0], sizes = [1, 32], strides = [1, 1]} : vector<6x32xf32> to vector<1x32xf32>
    %175 = vector.shape_cast %174 : vector<1x32xf32> to vector<32xf32>
    %176 = vector.extract_strided_slice %24 {offsets = [3, 0], sizes = [1, 32], strides = [1, 1]} : vector<6x32xf32> to vector<1x32xf32>
    %177 = vector.shape_cast %176 : vector<1x32xf32> to vector<32xf32>
    %cst_81 = arith.constant dense<0.000000e+00> : vector<2x8xf32>
    %178 = vector.multi_reduction <add>, %173, %cst_81 [2] : vector<2x8x32xf32> to vector<2x8xf32>
    %179 = vector.shape_cast %178 : vector<2x8xf32> to vector<2x8x1xf32>
    %cst_82 = arith.constant 3.200000e+01 : f32
    %180 = vector.broadcast %cst_82 : f32 to vector<2x8x1xf32>
    %181 = arith.divf %179, %180 : vector<2x8x1xf32>
    %182 = arith.mulf %173, %173 : vector<2x8x32xf32>
    %cst_83 = arith.constant dense<0.000000e+00> : vector<2x8xf32>
    %183 = vector.multi_reduction <add>, %182, %cst_83 [2] : vector<2x8x32xf32> to vector<2x8xf32>
    %184 = vector.shape_cast %183 : vector<2x8xf32> to vector<2x8x1xf32>
    %cst_84 = arith.constant 3.200000e+01 : f32
    %185 = vector.broadcast %cst_84 : f32 to vector<2x8x1xf32>
    %186 = arith.divf %184, %185 : vector<2x8x1xf32>
    %187 = arith.mulf %181, %181 : vector<2x8x1xf32>
    %188 = arith.subf %186, %187 : vector<2x8x1xf32>
    %189 = vector.broadcast %181 : vector<2x8x1xf32> to vector<2x8x32xf32>
    %190 = arith.subf %173, %189 : vector<2x8x32xf32>
    %cst_85 = arith.constant 9.99999997E-7 : f32
    %191 = vector.broadcast %cst_85 : f32 to vector<2x8x1xf32>
    %192 = arith.addf %188, %191 : vector<2x8x1xf32>
    %193 = math.rsqrt %192 : vector<2x8x1xf32>
    %194 = vector.broadcast %193 : vector<2x8x1xf32> to vector<2x8x32xf32>
    %195 = arith.mulf %190, %194 : vector<2x8x32xf32>
    %196 = vector.shape_cast %175 : vector<32xf32> to vector<1x1x32xf32>
    %197 = vector.broadcast %196 : vector<1x1x32xf32> to vector<2x8x32xf32>
    %198 = arith.mulf %195, %197 : vector<2x8x32xf32>
    %199 = vector.shape_cast %177 : vector<32xf32> to vector<1x1x32xf32>
    %200 = vector.broadcast %199 : vector<1x1x32xf32> to vector<2x8x32xf32>
    %201 = arith.addf %198, %200 : vector<2x8x32xf32>
    %c0_86 = arith.constant 0 : index
    %c3 = arith.constant 3 : index
    %c0_87 = arith.constant 0 : index
    %c0_88 = arith.constant 0 : index
    %202 = vector.load %arg9[%c0_86, %c3, %c0_87, %c0_88] : memref<1x9x32x32xbf16, #tpu.memory_space<vmem>>, vector<1x1x32x32xbf16>
    %203 = vector.shape_cast %202 : vector<1x1x32x32xbf16> to vector<32x32xbf16>
    %c0_89 = arith.constant 0 : index
    %c3_90 = arith.constant 3 : index
    %c0_91 = arith.constant 0 : index
    %204 = vector.load %arg10[%c0_89, %c3_90, %c0_91] : memref<1x9x32xf32, #tpu.memory_space<vmem>>, vector<1x1x32xf32>
    %205 = vector.shape_cast %204 : vector<1x1x32xf32> to vector<32xf32>
    %206 = vector.shape_cast %201 : vector<2x8x32xf32> to vector<16x32xf32>
    %207 = arith.truncf %206 : vector<16x32xf32> to vector<16x32xbf16>
    %cst_92 = arith.constant dense<0.000000e+00> : vector<16x32xf32>
    %208 = tpu.matmul %207, %203, %cst_92 {dimension_numbers = #tpu.dot_dimension_numbers<[1], [0], [0], [1], [0, 0, 1, 1], [], []>} : vector<16x32xbf16>, vector<32x32xbf16>, vector<16x32xf32> -> vector<16x32xf32>
    %209 = vector.shape_cast %205 : vector<32xf32> to vector<1x32xf32>
    %210 = vector.broadcast %209 : vector<1x32xf32> to vector<16x32xf32>
    %211 = arith.addf %208, %210 : vector<16x32xf32>
    %212 = arith.truncf %211 : vector<16x32xf32> to vector<16x32xbf16>
    %213 = vector.shape_cast %212 : vector<16x32xbf16> to vector<2x8x32xbf16>
    %c0_93 = arith.constant 0 : index
    %c4 = arith.constant 4 : index
    %c0_94 = arith.constant 0 : index
    %c0_95 = arith.constant 0 : index
    %214 = vector.load %arg9[%c0_93, %c4, %c0_94, %c0_95] : memref<1x9x32x32xbf16, #tpu.memory_space<vmem>>, vector<1x1x32x32xbf16>
    %215 = vector.shape_cast %214 : vector<1x1x32x32xbf16> to vector<32x32xbf16>
    %c0_96 = arith.constant 0 : index
    %c4_97 = arith.constant 4 : index
    %c0_98 = arith.constant 0 : index
    %216 = vector.load %arg10[%c0_96, %c4_97, %c0_98] : memref<1x9x32xf32, #tpu.memory_space<vmem>>, vector<1x1x32xf32>
    %217 = vector.shape_cast %216 : vector<1x1x32xf32> to vector<32xf32>
    %218 = vector.shape_cast %4 : vector<2x16x32xbf16> to vector<32x32xbf16>
    %cst_99 = arith.constant dense<0.000000e+00> : vector<32x32xf32>
    %219 = tpu.matmul %218, %215, %cst_99 {dimension_numbers = #tpu.dot_dimension_numbers<[1], [0], [0], [1], [0, 0, 1, 1], [], []>} : vector<32x32xbf16>, vector<32x32xbf16>, vector<32x32xf32> -> vector<32x32xf32>
    %220 = vector.shape_cast %217 : vector<32xf32> to vector<1x32xf32>
    %221 = vector.broadcast %220 : vector<1x32xf32> to vector<32x32xf32>
    %222 = arith.addf %219, %221 : vector<32x32xf32>
    %223 = arith.truncf %222 : vector<32x32xf32> to vector<32x32xbf16>
    %224 = vector.shape_cast %223 : vector<32x32xbf16> to vector<2x16x32xbf16>
    %c0_100 = arith.constant 0 : index
    %c5 = arith.constant 5 : index
    %c0_101 = arith.constant 0 : index
    %c0_102 = arith.constant 0 : index
    %225 = vector.load %arg9[%c0_100, %c5, %c0_101, %c0_102] : memref<1x9x32x32xbf16, #tpu.memory_space<vmem>>, vector<1x1x32x32xbf16>
    %226 = vector.shape_cast %225 : vector<1x1x32x32xbf16> to vector<32x32xbf16>
    %c0_103 = arith.constant 0 : index
    %c5_104 = arith.constant 5 : index
    %c0_105 = arith.constant 0 : index
    %227 = vector.load %arg10[%c0_103, %c5_104, %c0_105] : memref<1x9x32xf32, #tpu.memory_space<vmem>>, vector<1x1x32xf32>
    %228 = vector.shape_cast %227 : vector<1x1x32xf32> to vector<32xf32>
    %229 = vector.shape_cast %4 : vector<2x16x32xbf16> to vector<32x32xbf16>
    %cst_106 = arith.constant dense<0.000000e+00> : vector<32x32xf32>
    %230 = tpu.matmul %229, %226, %cst_106 {dimension_numbers = #tpu.dot_dimension_numbers<[1], [0], [0], [1], [0, 0, 1, 1], [], []>} : vector<32x32xbf16>, vector<32x32xbf16>, vector<32x32xf32> -> vector<32x32xf32>
    %231 = vector.shape_cast %228 : vector<32xf32> to vector<1x32xf32>
    %232 = vector.broadcast %231 : vector<1x32xf32> to vector<32x32xf32>
    %233 = arith.addf %230, %232 : vector<32x32xf32>
    %234 = arith.truncf %233 : vector<32x32xf32> to vector<32x32xbf16>
    %235 = vector.shape_cast %234 : vector<32x32xbf16> to vector<2x16x32xbf16>
    %236 = vector.extract_strided_slice %213 {offsets = [0, 0, 0], sizes = [2, 8, 8], strides = [1, 1, 1]} : vector<2x8x32xbf16> to vector<2x8x8xbf16>
    %237 = vector.extract_strided_slice %224 {offsets = [0, 0, 0], sizes = [2, 16, 8], strides = [1, 1, 1]} : vector<2x16x32xbf16> to vector<2x16x8xbf16>
    "tpu.trace_start"() <{level = 10 : i32, message = "btd,bsd->bts"}> : () -> ()
    %cst_107 = arith.constant dense<0.000000e+00> : vector<2x8x16xf32>
    %238 = tpu.matmul %236, %237, %cst_107 {dimension_numbers = #tpu.dot_dimension_numbers<[2], [2], [1], [1], [0, 0, 0, 1, 1, 1], [0], [0]>} : vector<2x8x8xbf16>, vector<2x16x8xbf16>, vector<2x8x16xf32> -> vector<2x8x16xf32>
    %cst_108 = arith.constant -9.99999984E+17 : f32
    "tpu.trace_stop"() : () -> ()
    %239 = vector.shape_cast %19 : vector<2x1x16xi1> to vector<2x1x16xi1>
    %240 = vector.broadcast %239 : vector<2x1x16xi1> to vector<2x8x16xi1>
    %241 = vector.broadcast %cst_108 : f32 to vector<2x8x16xf32>
    %242 = arith.select %240, %241, %238 : vector<2x8x16xi1>, vector<2x8x16xf32>
    %cst_109 = arith.constant dense<0xFF800000> : vector<2x8xf32>
    %243 = vector.multi_reduction <maximumf>, %242, %cst_109 [2] : vector<2x8x16xf32> to vector<2x8xf32>
    %244 = vector.shape_cast %243 : vector<2x8xf32> to vector<2x8x1xf32>
    %245 = vector.broadcast %244 : vector<2x8x1xf32> to vector<2x8x16xf32>
    %246 = arith.subf %242, %245 : vector<2x8x16xf32>
    %247 = math.exp %246 : vector<2x8x16xf32>
    %cst_110 = arith.constant dense<0.000000e+00> : vector<2x8xf32>
    %248 = vector.multi_reduction <add>, %247, %cst_110 [2] : vector<2x8x16xf32> to vector<2x8xf32>
    %249 = vector.shape_cast %248 : vector<2x8xf32> to vector<2x8x1xf32>
    %250 = tpu.reciprocal %249 {approx = true} : vector<2x8x1xf32> -> vector<2x8x1xf32>
    %251 = vector.broadcast %250 : vector<2x8x1xf32> to vector<2x8x16xf32>
    %252 = arith.mulf %247, %251 : vector<2x8x16xf32>
    %253 = arith.truncf %252 : vector<2x8x16xf32> to vector<2x8x16xbf16>
    %254 = vector.extract_strided_slice %235 {offsets = [0, 0, 0], sizes = [2, 16, 8], strides = [1, 1, 1]} : vector<2x16x32xbf16> to vector<2x16x8xbf16>
    "tpu.trace_start"() <{level = 10 : i32, message = "bts,bsd->btd"}> : () -> ()
    %cst_111 = arith.constant dense<0.000000e+00> : vector<2x8x8xf32>
    %255 = tpu.matmul %253, %254, %cst_111 {dimension_numbers = #tpu.dot_dimension_numbers<[2], [1], [1], [2], [0, 0, 0, 1, 1, 2], [0], [0]>} : vector<2x8x16xbf16>, vector<2x16x8xbf16>, vector<2x8x8xf32> -> vector<2x8x8xf32>
    "tpu.trace_stop"() : () -> ()
    %256 = vector.extract_strided_slice %213 {offsets = [0, 0, 8], sizes = [2, 8, 8], strides = [1, 1, 1]} : vector<2x8x32xbf16> to vector<2x8x8xbf16>
    %257 = vector.extract_strided_slice %224 {offsets = [0, 0, 8], sizes = [2, 16, 8], strides = [1, 1, 1]} : vector<2x16x32xbf16> to vector<2x16x8xbf16>
    "tpu.trace_start"() <{level = 10 : i32, message = "btd,bsd->bts"}> : () -> ()
    %cst_112 = arith.constant dense<0.000000e+00> : vector<2x8x16xf32>
    %258 = tpu.matmul %256, %257, %cst_112 {dimension_numbers = #tpu.dot_dimension_numbers<[2], [2], [1], [1], [0, 0, 0, 1, 1, 1], [0], [0]>} : vector<2x8x8xbf16>, vector<2x16x8xbf16>, vector<2x8x16xf32> -> vector<2x8x16xf32>
    %cst_113 = arith.constant -9.99999984E+17 : f32
    "tpu.trace_stop"() : () -> ()
    %259 = vector.shape_cast %19 : vector<2x1x16xi1> to vector<2x1x16xi1>
    %260 = vector.broadcast %259 : vector<2x1x16xi1> to vector<2x8x16xi1>
    %261 = vector.broadcast %cst_113 : f32 to vector<2x8x16xf32>
    %262 = arith.select %260, %261, %258 : vector<2x8x16xi1>, vector<2x8x16xf32>
    %cst_114 = arith.constant dense<0xFF800000> : vector<2x8xf32>
    %263 = vector.multi_reduction <maximumf>, %262, %cst_114 [2] : vector<2x8x16xf32> to vector<2x8xf32>
    %264 = vector.shape_cast %263 : vector<2x8xf32> to vector<2x8x1xf32>
    %265 = vector.broadcast %264 : vector<2x8x1xf32> to vector<2x8x16xf32>
    %266 = arith.subf %262, %265 : vector<2x8x16xf32>
    %267 = math.exp %266 : vector<2x8x16xf32>
    %cst_115 = arith.constant dense<0.000000e+00> : vector<2x8xf32>
    %268 = vector.multi_reduction <add>, %267, %cst_115 [2] : vector<2x8x16xf32> to vector<2x8xf32>
    %269 = vector.shape_cast %268 : vector<2x8xf32> to vector<2x8x1xf32>
    %270 = tpu.reciprocal %269 {approx = true} : vector<2x8x1xf32> -> vector<2x8x1xf32>
    %271 = vector.broadcast %270 : vector<2x8x1xf32> to vector<2x8x16xf32>
    %272 = arith.mulf %267, %271 : vector<2x8x16xf32>
    %273 = arith.truncf %272 : vector<2x8x16xf32> to vector<2x8x16xbf16>
    %274 = vector.extract_strided_slice %235 {offsets = [0, 0, 8], sizes = [2, 16, 8], strides = [1, 1, 1]} : vector<2x16x32xbf16> to vector<2x16x8xbf16>
    "tpu.trace_start"() <{level = 10 : i32, message = "bts,bsd->btd"}> : () -> ()
    %cst_116 = arith.constant dense<0.000000e+00> : vector<2x8x8xf32>
    %275 = tpu.matmul %273, %274, %cst_116 {dimension_numbers = #tpu.dot_dimension_numbers<[2], [1], [1], [2], [0, 0, 0, 1, 1, 2], [0], [0]>} : vector<2x8x16xbf16>, vector<2x16x8xbf16>, vector<2x8x8xf32> -> vector<2x8x8xf32>
    "tpu.trace_stop"() : () -> ()
    %276 = vector.extract_strided_slice %213 {offsets = [0, 0, 16], sizes = [2, 8, 8], strides = [1, 1, 1]} : vector<2x8x32xbf16> to vector<2x8x8xbf16>
    %277 = vector.extract_strided_slice %224 {offsets = [0, 0, 16], sizes = [2, 16, 8], strides = [1, 1, 1]} : vector<2x16x32xbf16> to vector<2x16x8xbf16>
    "tpu.trace_start"() <{level = 10 : i32, message = "btd,bsd->bts"}> : () -> ()
    %cst_117 = arith.constant dense<0.000000e+00> : vector<2x8x16xf32>
    %278 = tpu.matmul %276, %277, %cst_117 {dimension_numbers = #tpu.dot_dimension_numbers<[2], [2], [1], [1], [0, 0, 0, 1, 1, 1], [0], [0]>} : vector<2x8x8xbf16>, vector<2x16x8xbf16>, vector<2x8x16xf32> -> vector<2x8x16xf32>
    %cst_118 = arith.constant -9.99999984E+17 : f32
    "tpu.trace_stop"() : () -> ()
    %279 = vector.shape_cast %19 : vector<2x1x16xi1> to vector<2x1x16xi1>
    %280 = vector.broadcast %279 : vector<2x1x16xi1> to vector<2x8x16xi1>
    %281 = vector.broadcast %cst_118 : f32 to vector<2x8x16xf32>
    %282 = arith.select %280, %281, %278 : vector<2x8x16xi1>, vector<2x8x16xf32>
    %cst_119 = arith.constant dense<0xFF800000> : vector<2x8xf32>
    %283 = vector.multi_reduction <maximumf>, %282, %cst_119 [2] : vector<2x8x16xf32> to vector<2x8xf32>
    %284 = vector.shape_cast %283 : vector<2x8xf32> to vector<2x8x1xf32>
    %285 = vector.broadcast %284 : vector<2x8x1xf32> to vector<2x8x16xf32>
    %286 = arith.subf %282, %285 : vector<2x8x16xf32>
    %287 = math.exp %286 : vector<2x8x16xf32>
    %cst_120 = arith.constant dense<0.000000e+00> : vector<2x8xf32>
    %288 = vector.multi_reduction <add>, %287, %cst_120 [2] : vector<2x8x16xf32> to vector<2x8xf32>
    %289 = vector.shape_cast %288 : vector<2x8xf32> to vector<2x8x1xf32>
    %290 = tpu.reciprocal %289 {approx = true} : vector<2x8x1xf32> -> vector<2x8x1xf32>
    %291 = vector.broadcast %290 : vector<2x8x1xf32> to vector<2x8x16xf32>
    %292 = arith.mulf %287, %291 : vector<2x8x16xf32>
    %293 = arith.truncf %292 : vector<2x8x16xf32> to vector<2x8x16xbf16>
    %294 = vector.extract_strided_slice %235 {offsets = [0, 0, 16], sizes = [2, 16, 8], strides = [1, 1, 1]} : vector<2x16x32xbf16> to vector<2x16x8xbf16>
    "tpu.trace_start"() <{level = 10 : i32, message = "bts,bsd->btd"}> : () -> ()
    %cst_121 = arith.constant dense<0.000000e+00> : vector<2x8x8xf32>
    %295 = tpu.matmul %293, %294, %cst_121 {dimension_numbers = #tpu.dot_dimension_numbers<[2], [1], [1], [2], [0, 0, 0, 1, 1, 2], [0], [0]>} : vector<2x8x16xbf16>, vector<2x16x8xbf16>, vector<2x8x8xf32> -> vector<2x8x8xf32>
    "tpu.trace_stop"() : () -> ()
    %296 = vector.extract_strided_slice %213 {offsets = [0, 0, 24], sizes = [2, 8, 8], strides = [1, 1, 1]} : vector<2x8x32xbf16> to vector<2x8x8xbf16>
    %297 = vector.extract_strided_slice %224 {offsets = [0, 0, 24], sizes = [2, 16, 8], strides = [1, 1, 1]} : vector<2x16x32xbf16> to vector<2x16x8xbf16>
    "tpu.trace_start"() <{level = 10 : i32, message = "btd,bsd->bts"}> : () -> ()
    %cst_122 = arith.constant dense<0.000000e+00> : vector<2x8x16xf32>
    %298 = tpu.matmul %296, %297, %cst_122 {dimension_numbers = #tpu.dot_dimension_numbers<[2], [2], [1], [1], [0, 0, 0, 1, 1, 1], [0], [0]>} : vector<2x8x8xbf16>, vector<2x16x8xbf16>, vector<2x8x16xf32> -> vector<2x8x16xf32>
    %cst_123 = arith.constant -9.99999984E+17 : f32
    "tpu.trace_stop"() : () -> ()
    %299 = vector.shape_cast %19 : vector<2x1x16xi1> to vector<2x1x16xi1>
    %300 = vector.broadcast %299 : vector<2x1x16xi1> to vector<2x8x16xi1>
    %301 = vector.broadcast %cst_123 : f32 to vector<2x8x16xf32>
    %302 = arith.select %300, %301, %298 : vector<2x8x16xi1>, vector<2x8x16xf32>
    %cst_124 = arith.constant dense<0xFF800000> : vector<2x8xf32>
    %303 = vector.multi_reduction <maximumf>, %302, %cst_124 [2] : vector<2x8x16xf32> to vector<2x8xf32>
    %304 = vector.shape_cast %303 : vector<2x8xf32> to vector<2x8x1xf32>
    %305 = vector.broadcast %304 : vector<2x8x1xf32> to vector<2x8x16xf32>
    %306 = arith.subf %302, %305 : vector<2x8x16xf32>
    %307 = math.exp %306 : vector<2x8x16xf32>
    %cst_125 = arith.constant dense<0.000000e+00> : vector<2x8xf32>
    %308 = vector.multi_reduction <add>, %307, %cst_125 [2] : vector<2x8x16xf32> to vector<2x8xf32>
    %309 = vector.shape_cast %308 : vector<2x8xf32> to vector<2x8x1xf32>
    %310 = tpu.reciprocal %309 {approx = true} : vector<2x8x1xf32> -> vector<2x8x1xf32>
    %311 = vector.broadcast %310 : vector<2x8x1xf32> to vector<2x8x16xf32>
    %312 = arith.mulf %307, %311 : vector<2x8x16xf32>
    %313 = arith.truncf %312 : vector<2x8x16xf32> to vector<2x8x16xbf16>
    %314 = vector.extract_strided_slice %235 {offsets = [0, 0, 24], sizes = [2, 16, 8], strides = [1, 1, 1]} : vector<2x16x32xbf16> to vector<2x16x8xbf16>
    "tpu.trace_start"() <{level = 10 : i32, message = "bts,bsd->btd"}> : () -> ()
    %cst_126 = arith.constant dense<0.000000e+00> : vector<2x8x8xf32>
    %315 = tpu.matmul %313, %314, %cst_126 {dimension_numbers = #tpu.dot_dimension_numbers<[2], [1], [1], [2], [0, 0, 0, 1, 1, 2], [0], [0]>} : vector<2x8x16xbf16>, vector<2x16x8xbf16>, vector<2x8x8xf32> -> vector<2x8x8xf32>
    "tpu.trace_stop"() : () -> ()
    %316 = tpu.concatenate %255, %275, %295, %315 in 2 : vector<2x8x8xf32>, vector<2x8x8xf32>, vector<2x8x8xf32>, vector<2x8x8xf32> -> vector<2x8x32xf32>
    %c0_127 = arith.constant 0 : index
    %c1_128 = arith.constant 1 : index
    %c0_129 = arith.constant 0 : index
    %c0_130 = arith.constant 0 : index
    %317 = vector.load %arg11[%c0_127, %c1_128, %c0_129, %c0_130] : memref<1x3x32x32xbf16, #tpu.memory_space<vmem>>, vector<1x1x32x32xbf16>
    %318 = vector.shape_cast %317 : vector<1x1x32x32xbf16> to vector<32x32xbf16>
    %c0_131 = arith.constant 0 : index
    %c1_132 = arith.constant 1 : index
    %c0_133 = arith.constant 0 : index
    %319 = vector.load %arg12[%c0_131, %c1_132, %c0_133] : memref<1x3x32xf32, #tpu.memory_space<vmem>>, vector<1x1x32xf32>
    %320 = vector.shape_cast %319 : vector<1x1x32xf32> to vector<32xf32>
    %321 = vector.shape_cast %316 : vector<2x8x32xf32> to vector<16x32xf32>
    %322 = arith.truncf %321 : vector<16x32xf32> to vector<16x32xbf16>
    %cst_134 = arith.constant dense<0.000000e+00> : vector<16x32xf32>
    %323 = tpu.matmul %322, %318, %cst_134 {dimension_numbers = #tpu.dot_dimension_numbers<[1], [0], [0], [1], [0, 0, 1, 1], [], []>} : vector<16x32xbf16>, vector<32x32xbf16>, vector<16x32xf32> -> vector<16x32xf32>
    %324 = vector.shape_cast %320 : vector<32xf32> to vector<1x32xf32>
    %325 = vector.broadcast %324 : vector<1x32xf32> to vector<16x32xf32>
    %326 = arith.addf %323, %325 : vector<16x32xf32>
    %327 = vector.shape_cast %326 : vector<16x32xf32> to vector<2x8x32xf32>
    %c0_135 = arith.constant 0 : index
    %c6 = arith.constant 6 : index
    %c0_136 = arith.constant 0 : index
    %c0_137 = arith.constant 0 : index
    %328 = vector.load %arg9[%c0_135, %c6, %c0_136, %c0_137] : memref<1x9x32x32xbf16, #tpu.memory_space<vmem>>, vector<1x1x32x32xbf16>
    %329 = vector.shape_cast %328 : vector<1x1x32x32xbf16> to vector<32x32xbf16>
    %c0_138 = arith.constant 0 : index
    %c6_139 = arith.constant 6 : index
    %c0_140 = arith.constant 0 : index
    %330 = vector.load %arg10[%c0_138, %c6_139, %c0_140] : memref<1x9x32xf32, #tpu.memory_space<vmem>>, vector<1x1x32xf32>
    %331 = vector.shape_cast %330 : vector<1x1x32xf32> to vector<32xf32>
    %332 = vector.shape_cast %201 : vector<2x8x32xf32> to vector<16x32xf32>
    %333 = arith.truncf %332 : vector<16x32xf32> to vector<16x32xbf16>
    %cst_141 = arith.constant dense<0.000000e+00> : vector<16x32xf32>
    %334 = tpu.matmul %333, %329, %cst_141 {dimension_numbers = #tpu.dot_dimension_numbers<[1], [0], [0], [1], [0, 0, 1, 1], [], []>} : vector<16x32xbf16>, vector<32x32xbf16>, vector<16x32xf32> -> vector<16x32xf32>
    %335 = vector.shape_cast %331 : vector<32xf32> to vector<1x32xf32>
    %336 = vector.broadcast %335 : vector<1x32xf32> to vector<16x32xf32>
    %337 = arith.addf %334, %336 : vector<16x32xf32>
    %338 = arith.truncf %337 : vector<16x32xf32> to vector<16x32xbf16>
    %339 = vector.shape_cast %338 : vector<16x32xbf16> to vector<2x8x32xbf16>
    %c0_142 = arith.constant 0 : index
    %c7 = arith.constant 7 : index
    %c0_143 = arith.constant 0 : index
    %c0_144 = arith.constant 0 : index
    %340 = vector.load %arg9[%c0_142, %c7, %c0_143, %c0_144] : memref<1x9x32x32xbf16, #tpu.memory_space<vmem>>, vector<1x1x32x32xbf16>
    %341 = vector.shape_cast %340 : vector<1x1x32x32xbf16> to vector<32x32xbf16>
    %c0_145 = arith.constant 0 : index
    %c7_146 = arith.constant 7 : index
    %c0_147 = arith.constant 0 : index
    %342 = vector.load %arg10[%c0_145, %c7_146, %c0_147] : memref<1x9x32xf32, #tpu.memory_space<vmem>>, vector<1x1x32xf32>
    %343 = vector.shape_cast %342 : vector<1x1x32xf32> to vector<32xf32>
    %344 = vector.shape_cast %5 : vector<2x8x32xbf16> to vector<16x32xbf16>
    %cst_148 = arith.constant dense<0.000000e+00> : vector<16x32xf32>
    %345 = tpu.matmul %344, %341, %cst_148 {dimension_numbers = #tpu.dot_dimension_numbers<[1], [0], [0], [1], [0, 0, 1, 1], [], []>} : vector<16x32xbf16>, vector<32x32xbf16>, vector<16x32xf32> -> vector<16x32xf32>
    %346 = vector.shape_cast %343 : vector<32xf32> to vector<1x32xf32>
    %347 = vector.broadcast %346 : vector<1x32xf32> to vector<16x32xf32>
    %348 = arith.addf %345, %347 : vector<16x32xf32>
    %349 = arith.truncf %348 : vector<16x32xf32> to vector<16x32xbf16>
    %350 = vector.shape_cast %349 : vector<16x32xbf16> to vector<2x8x32xbf16>
    %c0_149 = arith.constant 0 : index
    %c8 = arith.constant 8 : index
    %c0_150 = arith.constant 0 : index
    %c0_151 = arith.constant 0 : index
    %351 = vector.load %arg9[%c0_149, %c8, %c0_150, %c0_151] : memref<1x9x32x32xbf16, #tpu.memory_space<vmem>>, vector<1x1x32x32xbf16>
    %352 = vector.shape_cast %351 : vector<1x1x32x32xbf16> to vector<32x32xbf16>
    %c0_152 = arith.constant 0 : index
    %c8_153 = arith.constant 8 : index
    %c0_154 = arith.constant 0 : index
    %353 = vector.load %arg10[%c0_152, %c8_153, %c0_154] : memref<1x9x32xf32, #tpu.memory_space<vmem>>, vector<1x1x32xf32>
    %354 = vector.shape_cast %353 : vector<1x1x32xf32> to vector<32xf32>
    %355 = vector.shape_cast %5 : vector<2x8x32xbf16> to vector<16x32xbf16>
    %cst_155 = arith.constant dense<0.000000e+00> : vector<16x32xf32>
    %356 = tpu.matmul %355, %352, %cst_155 {dimension_numbers = #tpu.dot_dimension_numbers<[1], [0], [0], [1], [0, 0, 1, 1], [], []>} : vector<16x32xbf16>, vector<32x32xbf16>, vector<16x32xf32> -> vector<16x32xf32>
    %357 = vector.shape_cast %354 : vector<32xf32> to vector<1x32xf32>
    %358 = vector.broadcast %357 : vector<1x32xf32> to vector<16x32xf32>
    %359 = arith.addf %356, %358 : vector<16x32xf32>
    %360 = arith.truncf %359 : vector<16x32xf32> to vector<16x32xbf16>
    %361 = vector.shape_cast %360 : vector<16x32xbf16> to vector<2x8x32xbf16>
    %362 = vector.extract_strided_slice %339 {offsets = [0, 0, 0], sizes = [2, 8, 8], strides = [1, 1, 1]} : vector<2x8x32xbf16> to vector<2x8x8xbf16>
    %363 = vector.extract_strided_slice %350 {offsets = [0, 0, 0], sizes = [2, 8, 8], strides = [1, 1, 1]} : vector<2x8x32xbf16> to vector<2x8x8xbf16>
    "tpu.trace_start"() <{level = 10 : i32, message = "btd,bsd->bts"}> : () -> ()
    %cst_156 = arith.constant dense<0.000000e+00> : vector<2x8x8xf32>
    %364 = tpu.matmul %362, %363, %cst_156 {dimension_numbers = #tpu.dot_dimension_numbers<[2], [2], [1], [1], [0, 0, 0, 1, 1, 1], [0], [0]>} : vector<2x8x8xbf16>, vector<2x8x8xbf16>, vector<2x8x8xf32> -> vector<2x8x8xf32>
    %cst_157 = arith.constant -9.99999984E+17 : f32
    "tpu.trace_stop"() : () -> ()
    %365 = vector.shape_cast %22 : vector<2x1x8xi1> to vector<2x1x8xi1>
    %366 = vector.broadcast %365 : vector<2x1x8xi1> to vector<2x8x8xi1>
    %367 = vector.broadcast %cst_157 : f32 to vector<2x8x8xf32>
    %368 = arith.select %366, %367, %364 : vector<2x8x8xi1>, vector<2x8x8xf32>
    %cst_158 = arith.constant dense<0xFF800000> : vector<2x8xf32>
    %369 = vector.multi_reduction <maximumf>, %368, %cst_158 [2] : vector<2x8x8xf32> to vector<2x8xf32>
    %370 = vector.shape_cast %369 : vector<2x8xf32> to vector<2x8x1xf32>
    %371 = vector.broadcast %370 : vector<2x8x1xf32> to vector<2x8x8xf32>
    %372 = arith.subf %368, %371 : vector<2x8x8xf32>
    %373 = math.exp %372 : vector<2x8x8xf32>
    %374 = vector.broadcast %6 : vector<2x1x8xf32> to vector<2x8x8xf32>
    %375 = arith.mulf %373, %374 : vector<2x8x8xf32>
    %cst_159 = arith.constant dense<0.000000e+00> : vector<2x8xf32>
    %376 = vector.multi_reduction <add>, %375, %cst_159 [2] : vector<2x8x8xf32> to vector<2x8xf32>
    %377 = vector.shape_cast %376 : vector<2x8xf32> to vector<2x8x1xf32>
    %cst_160 = arith.constant 9.99999982E-14 : f32
    %378 = vector.broadcast %cst_160 : f32 to vector<2x8x1xf32>
    %379 = arith.addf %377, %378 : vector<2x8x1xf32>
    %380 = tpu.reciprocal %379 {approx = true} : vector<2x8x1xf32> -> vector<2x8x1xf32>
    %381 = vector.broadcast %380 : vector<2x8x1xf32> to vector<2x8x8xf32>
    %382 = arith.mulf %375, %381 : vector<2x8x8xf32>
    %383 = arith.truncf %382 : vector<2x8x8xf32> to vector<2x8x8xbf16>
    %384 = vector.extract_strided_slice %361 {offsets = [0, 0, 0], sizes = [2, 8, 8], strides = [1, 1, 1]} : vector<2x8x32xbf16> to vector<2x8x8xbf16>
    "tpu.trace_start"() <{level = 10 : i32, message = "bts,bsd->btd"}> : () -> ()
    %cst_161 = arith.constant dense<0.000000e+00> : vector<2x8x8xf32>
    %385 = tpu.matmul %383, %384, %cst_161 {dimension_numbers = #tpu.dot_dimension_numbers<[2], [1], [1], [2], [0, 0, 0, 1, 1, 2], [0], [0]>} : vector<2x8x8xbf16>, vector<2x8x8xbf16>, vector<2x8x8xf32> -> vector<2x8x8xf32>
    "tpu.trace_stop"() : () -> ()
    %386 = vector.extract_strided_slice %339 {offsets = [0, 0, 8], sizes = [2, 8, 8], strides = [1, 1, 1]} : vector<2x8x32xbf16> to vector<2x8x8xbf16>
    %387 = vector.extract_strided_slice %350 {offsets = [0, 0, 8], sizes = [2, 8, 8], strides = [1, 1, 1]} : vector<2x8x32xbf16> to vector<2x8x8xbf16>
    "tpu.trace_start"() <{level = 10 : i32, message = "btd,bsd->bts"}> : () -> ()
    %cst_162 = arith.constant dense<0.000000e+00> : vector<2x8x8xf32>
    %388 = tpu.matmul %386, %387, %cst_162 {dimension_numbers = #tpu.dot_dimension_numbers<[2], [2], [1], [1], [0, 0, 0, 1, 1, 1], [0], [0]>} : vector<2x8x8xbf16>, vector<2x8x8xbf16>, vector<2x8x8xf32> -> vector<2x8x8xf32>
    %cst_163 = arith.constant -9.99999984E+17 : f32
    "tpu.trace_stop"() : () -> ()
    %389 = vector.shape_cast %22 : vector<2x1x8xi1> to vector<2x1x8xi1>
    %390 = vector.broadcast %389 : vector<2x1x8xi1> to vector<2x8x8xi1>
    %391 = vector.broadcast %cst_163 : f32 to vector<2x8x8xf32>
    %392 = arith.select %390, %391, %388 : vector<2x8x8xi1>, vector<2x8x8xf32>
    %cst_164 = arith.constant dense<0xFF800000> : vector<2x8xf32>
    %393 = vector.multi_reduction <maximumf>, %392, %cst_164 [2] : vector<2x8x8xf32> to vector<2x8xf32>
    %394 = vector.shape_cast %393 : vector<2x8xf32> to vector<2x8x1xf32>
    %395 = vector.broadcast %394 : vector<2x8x1xf32> to vector<2x8x8xf32>
    %396 = arith.subf %392, %395 : vector<2x8x8xf32>
    %397 = math.exp %396 : vector<2x8x8xf32>
    %398 = vector.broadcast %6 : vector<2x1x8xf32> to vector<2x8x8xf32>
    %399 = arith.mulf %397, %398 : vector<2x8x8xf32>
    %cst_165 = arith.constant dense<0.000000e+00> : vector<2x8xf32>
    %400 = vector.multi_reduction <add>, %399, %cst_165 [2] : vector<2x8x8xf32> to vector<2x8xf32>
    %401 = vector.shape_cast %400 : vector<2x8xf32> to vector<2x8x1xf32>
    %cst_166 = arith.constant 9.99999982E-14 : f32
    %402 = vector.broadcast %cst_166 : f32 to vector<2x8x1xf32>
    %403 = arith.addf %401, %402 : vector<2x8x1xf32>
    %404 = tpu.reciprocal %403 {approx = true} : vector<2x8x1xf32> -> vector<2x8x1xf32>
    %405 = vector.broadcast %404 : vector<2x8x1xf32> to vector<2x8x8xf32>
    %406 = arith.mulf %399, %405 : vector<2x8x8xf32>
    %407 = arith.truncf %406 : vector<2x8x8xf32> to vector<2x8x8xbf16>
    %408 = vector.extract_strided_slice %361 {offsets = [0, 0, 8], sizes = [2, 8, 8], strides = [1, 1, 1]} : vector<2x8x32xbf16> to vector<2x8x8xbf16>
    "tpu.trace_start"() <{level = 10 : i32, message = "bts,bsd->btd"}> : () -> ()
    %cst_167 = arith.constant dense<0.000000e+00> : vector<2x8x8xf32>
    %409 = tpu.matmul %407, %408, %cst_167 {dimension_numbers = #tpu.dot_dimension_numbers<[2], [1], [1], [2], [0, 0, 0, 1, 1, 2], [0], [0]>} : vector<2x8x8xbf16>, vector<2x8x8xbf16>, vector<2x8x8xf32> -> vector<2x8x8xf32>
    "tpu.trace_stop"() : () -> ()
    %410 = vector.extract_strided_slice %339 {offsets = [0, 0, 16], sizes = [2, 8, 8], strides = [1, 1, 1]} : vector<2x8x32xbf16> to vector<2x8x8xbf16>
    %411 = vector.extract_strided_slice %350 {offsets = [0, 0, 16], sizes = [2, 8, 8], strides = [1, 1, 1]} : vector<2x8x32xbf16> to vector<2x8x8xbf16>
    "tpu.trace_start"() <{level = 10 : i32, message = "btd,bsd->bts"}> : () -> ()
    %cst_168 = arith.constant dense<0.000000e+00> : vector<2x8x8xf32>
    %412 = tpu.matmul %410, %411, %cst_168 {dimension_numbers = #tpu.dot_dimension_numbers<[2], [2], [1], [1], [0, 0, 0, 1, 1, 1], [0], [0]>} : vector<2x8x8xbf16>, vector<2x8x8xbf16>, vector<2x8x8xf32> -> vector<2x8x8xf32>
    %cst_169 = arith.constant -9.99999984E+17 : f32
    "tpu.trace_stop"() : () -> ()
    %413 = vector.shape_cast %22 : vector<2x1x8xi1> to vector<2x1x8xi1>
    %414 = vector.broadcast %413 : vector<2x1x8xi1> to vector<2x8x8xi1>
    %415 = vector.broadcast %cst_169 : f32 to vector<2x8x8xf32>
    %416 = arith.select %414, %415, %412 : vector<2x8x8xi1>, vector<2x8x8xf32>
    %cst_170 = arith.constant dense<0xFF800000> : vector<2x8xf32>
    %417 = vector.multi_reduction <maximumf>, %416, %cst_170 [2] : vector<2x8x8xf32> to vector<2x8xf32>
    %418 = vector.shape_cast %417 : vector<2x8xf32> to vector<2x8x1xf32>
    %419 = vector.broadcast %418 : vector<2x8x1xf32> to vector<2x8x8xf32>
    %420 = arith.subf %416, %419 : vector<2x8x8xf32>
    %421 = math.exp %420 : vector<2x8x8xf32>
    %422 = vector.broadcast %6 : vector<2x1x8xf32> to vector<2x8x8xf32>
    %423 = arith.mulf %421, %422 : vector<2x8x8xf32>
    %cst_171 = arith.constant dense<0.000000e+00> : vector<2x8xf32>
    %424 = vector.multi_reduction <add>, %423, %cst_171 [2] : vector<2x8x8xf32> to vector<2x8xf32>
    %425 = vector.shape_cast %424 : vector<2x8xf32> to vector<2x8x1xf32>
    %cst_172 = arith.constant 9.99999982E-14 : f32
    %426 = vector.broadcast %cst_172 : f32 to vector<2x8x1xf32>
    %427 = arith.addf %425, %426 : vector<2x8x1xf32>
    %428 = tpu.reciprocal %427 {approx = true} : vector<2x8x1xf32> -> vector<2x8x1xf32>
    %429 = vector.broadcast %428 : vector<2x8x1xf32> to vector<2x8x8xf32>
    %430 = arith.mulf %423, %429 : vector<2x8x8xf32>
    %431 = arith.truncf %430 : vector<2x8x8xf32> to vector<2x8x8xbf16>
    %432 = vector.extract_strided_slice %361 {offsets = [0, 0, 16], sizes = [2, 8, 8], strides = [1, 1, 1]} : vector<2x8x32xbf16> to vector<2x8x8xbf16>
    "tpu.trace_start"() <{level = 10 : i32, message = "bts,bsd->btd"}> : () -> ()
    %cst_173 = arith.constant dense<0.000000e+00> : vector<2x8x8xf32>
    %433 = tpu.matmul %431, %432, %cst_173 {dimension_numbers = #tpu.dot_dimension_numbers<[2], [1], [1], [2], [0, 0, 0, 1, 1, 2], [0], [0]>} : vector<2x8x8xbf16>, vector<2x8x8xbf16>, vector<2x8x8xf32> -> vector<2x8x8xf32>
    "tpu.trace_stop"() : () -> ()
    %434 = vector.extract_strided_slice %339 {offsets = [0, 0, 24], sizes = [2, 8, 8], strides = [1, 1, 1]} : vector<2x8x32xbf16> to vector<2x8x8xbf16>
    %435 = vector.extract_strided_slice %350 {offsets = [0, 0, 24], sizes = [2, 8, 8], strides = [1, 1, 1]} : vector<2x8x32xbf16> to vector<2x8x8xbf16>
    "tpu.trace_start"() <{level = 10 : i32, message = "btd,bsd->bts"}> : () -> ()
    %cst_174 = arith.constant dense<0.000000e+00> : vector<2x8x8xf32>
    %436 = tpu.matmul %434, %435, %cst_174 {dimension_numbers = #tpu.dot_dimension_numbers<[2], [2], [1], [1], [0, 0, 0, 1, 1, 1], [0], [0]>} : vector<2x8x8xbf16>, vector<2x8x8xbf16>, vector<2x8x8xf32> -> vector<2x8x8xf32>
    %cst_175 = arith.constant -9.99999984E+17 : f32
    "tpu.trace_stop"() : () -> ()
    %437 = vector.shape_cast %22 : vector<2x1x8xi1> to vector<2x1x8xi1>
    %438 = vector.broadcast %437 : vector<2x1x8xi1> to vector<2x8x8xi1>
    %439 = vector.broadcast %cst_175 : f32 to vector<2x8x8xf32>
    %440 = arith.select %438, %439, %436 : vector<2x8x8xi1>, vector<2x8x8xf32>
    %cst_176 = arith.constant dense<0xFF800000> : vector<2x8xf32>
    %441 = vector.multi_reduction <maximumf>, %440, %cst_176 [2] : vector<2x8x8xf32> to vector<2x8xf32>
    %442 = vector.shape_cast %441 : vector<2x8xf32> to vector<2x8x1xf32>
    %443 = vector.broadcast %442 : vector<2x8x1xf32> to vector<2x8x8xf32>
    %444 = arith.subf %440, %443 : vector<2x8x8xf32>
    %445 = math.exp %444 : vector<2x8x8xf32>
    %446 = vector.broadcast %6 : vector<2x1x8xf32> to vector<2x8x8xf32>
    %447 = arith.mulf %445, %446 : vector<2x8x8xf32>
    %cst_177 = arith.constant dense<0.000000e+00> : vector<2x8xf32>
    %448 = vector.multi_reduction <add>, %447, %cst_177 [2] : vector<2x8x8xf32> to vector<2x8xf32>
    %449 = vector.shape_cast %448 : vector<2x8xf32> to vector<2x8x1xf32>
    %cst_178 = arith.constant 9.99999982E-14 : f32
    %450 = vector.broadcast %cst_178 : f32 to vector<2x8x1xf32>
    %451 = arith.addf %449, %450 : vector<2x8x1xf32>
    %452 = tpu.reciprocal %451 {approx = true} : vector<2x8x1xf32> -> vector<2x8x1xf32>
    %453 = vector.broadcast %452 : vector<2x8x1xf32> to vector<2x8x8xf32>
    %454 = arith.mulf %447, %453 : vector<2x8x8xf32>
    %455 = arith.truncf %454 : vector<2x8x8xf32> to vector<2x8x8xbf16>
    %456 = vector.extract_strided_slice %361 {offsets = [0, 0, 24], sizes = [2, 8, 8], strides = [1, 1, 1]} : vector<2x8x32xbf16> to vector<2x8x8xbf16>
    "tpu.trace_start"() <{level = 10 : i32, message = "bts,bsd->btd"}> : () -> ()
    %cst_179 = arith.constant dense<0.000000e+00> : vector<2x8x8xf32>
    %457 = tpu.matmul %455, %456, %cst_179 {dimension_numbers = #tpu.dot_dimension_numbers<[2], [1], [1], [2], [0, 0, 0, 1, 1, 2], [0], [0]>} : vector<2x8x8xbf16>, vector<2x8x8xbf16>, vector<2x8x8xf32> -> vector<2x8x8xf32>
    "tpu.trace_stop"() : () -> ()
    %458 = tpu.concatenate %385, %409, %433, %457 in 2 : vector<2x8x8xf32>, vector<2x8x8xf32>, vector<2x8x8xf32>, vector<2x8x8xf32> -> vector<2x8x32xf32>
    %c0_180 = arith.constant 0 : index
    %c2_181 = arith.constant 2 : index
    %c0_182 = arith.constant 0 : index
    %c0_183 = arith.constant 0 : index
    %459 = vector.load %arg11[%c0_180, %c2_181, %c0_182, %c0_183] : memref<1x3x32x32xbf16, #tpu.memory_space<vmem>>, vector<1x1x32x32xbf16>
    %460 = vector.shape_cast %459 : vector<1x1x32x32xbf16> to vector<32x32xbf16>
    %c0_184 = arith.constant 0 : index
    %c2_185 = arith.constant 2 : index
    %c0_186 = arith.constant 0 : index
    %461 = vector.load %arg12[%c0_184, %c2_185, %c0_186] : memref<1x3x32xf32, #tpu.memory_space<vmem>>, vector<1x1x32xf32>
    %462 = vector.shape_cast %461 : vector<1x1x32xf32> to vector<32xf32>
    %463 = vector.shape_cast %458 : vector<2x8x32xf32> to vector<16x32xf32>
    %464 = arith.truncf %463 : vector<16x32xf32> to vector<16x32xbf16>
    %cst_187 = arith.constant dense<0.000000e+00> : vector<16x32xf32>
    %465 = tpu.matmul %464, %460, %cst_187 {dimension_numbers = #tpu.dot_dimension_numbers<[1], [0], [0], [1], [0, 0, 1, 1], [], []>} : vector<16x32xbf16>, vector<32x32xbf16>, vector<16x32xf32> -> vector<16x32xf32>
    %466 = vector.shape_cast %462 : vector<32xf32> to vector<1x32xf32>
    %467 = vector.broadcast %466 : vector<1x32xf32> to vector<16x32xf32>
    %468 = arith.addf %465, %467 : vector<16x32xf32>
    %469 = vector.shape_cast %468 : vector<16x32xf32> to vector<2x8x32xf32>
    %c0_188 = arith.constant 0 : index
    %c0_189 = arith.constant 0 : index
    %c0_190 = arith.constant 0 : index
    %470 = vector.load %arg14[%c0_188, %c0_189, %c0_190] : memref<1x3x32xf32, #tpu.memory_space<vmem>>, vector<1x3x32xf32>
    %471 = vector.shape_cast %470 : vector<1x3x32xf32> to vector<3x32xf32>
    %472 = vector.extract_strided_slice %471 {offsets = [0, 0], sizes = [1, 32], strides = [1, 1]} : vector<3x32xf32> to vector<1x32xf32>
    %473 = vector.shape_cast %472 : vector<1x32xf32> to vector<32xf32>
    %474 = vector.shape_cast %473 : vector<32xf32> to vector<1x1x32xf32>
    %475 = vector.broadcast %474 : vector<1x1x32xf32> to vector<2x8x32xf32>
    %476 = arith.mulf %327, %475 : vector<2x8x32xf32>
    %cst_191 = arith.constant dense<0.000000e+00> : vector<2x8xf32>
    %477 = vector.multi_reduction <add>, %476, %cst_191 [2] : vector<2x8x32xf32> to vector<2x8xf32>
    %478 = vector.shape_cast %477 : vector<2x8xf32> to vector<2x8x1xf32>
    %479 = vector.extract_strided_slice %471 {offsets = [1, 0], sizes = [1, 32], strides = [1, 1]} : vector<3x32xf32> to vector<1x32xf32>
    %480 = vector.shape_cast %479 : vector<1x32xf32> to vector<32xf32>
    %481 = vector.shape_cast %480 : vector<32xf32> to vector<1x1x32xf32>
    %482 = vector.broadcast %481 : vector<1x1x32xf32> to vector<2x8x32xf32>
    %483 = arith.mulf %469, %482 : vector<2x8x32xf32>
    %cst_192 = arith.constant dense<0.000000e+00> : vector<2x8xf32>
    %484 = vector.multi_reduction <add>, %483, %cst_192 [2] : vector<2x8x32xf32> to vector<2x8xf32>
    %485 = vector.shape_cast %484 : vector<2x8xf32> to vector<2x8x1xf32>
    %486 = arith.addf %478, %485 : vector<2x8x1xf32>
    %487 = vector.extract_strided_slice %471 {offsets = [2, 0], sizes = [1, 1], strides = [1, 1]} : vector<3x32xf32> to vector<1x1xf32>
    %488 = vector.shape_cast %487 : vector<1x1xf32> to vector<1x1x1xf32>
    %489 = vector.broadcast %488 : vector<1x1x1xf32> to vector<2x8x1xf32>
    %490 = arith.addf %486, %489 : vector<2x8x1xf32>
    %491 = arith.negf %490 : vector<2x8x1xf32>
    %492 = math.exp %491 : vector<2x8x1xf32>
    %cst_193 = arith.constant 1.000000e+00 : f32
    %493 = vector.broadcast %cst_193 : f32 to vector<2x8x1xf32>
    %494 = arith.addf %493, %492 : vector<2x8x1xf32>
    %495 = arith.divf %493, %494 : vector<2x8x1xf32>
    %496 = vector.broadcast %495 : vector<2x8x1xf32> to vector<2x8x32xf32>
    %497 = arith.mulf %496, %327 : vector<2x8x32xf32>
    %cst_194 = arith.constant 1.000000e+00 : f32
    %498 = vector.broadcast %cst_194 : f32 to vector<2x8x1xf32>
    %499 = arith.subf %498, %495 : vector<2x8x1xf32>
    %500 = vector.broadcast %499 : vector<2x8x1xf32> to vector<2x8x32xf32>
    %501 = arith.mulf %500, %469 : vector<2x8x32xf32>
    %502 = arith.addf %497, %501 : vector<2x8x32xf32>
    %503 = arith.addf %502, %173 : vector<2x8x32xf32>
    %504 = vector.extract_strided_slice %24 {offsets = [4, 0], sizes = [1, 32], strides = [1, 1]} : vector<6x32xf32> to vector<1x32xf32>
    %505 = vector.shape_cast %504 : vector<1x32xf32> to vector<32xf32>
    %506 = vector.extract_strided_slice %24 {offsets = [5, 0], sizes = [1, 32], strides = [1, 1]} : vector<6x32xf32> to vector<1x32xf32>
    %507 = vector.shape_cast %506 : vector<1x32xf32> to vector<32xf32>
    %cst_195 = arith.constant dense<0.000000e+00> : vector<2x8xf32>
    %508 = vector.multi_reduction <add>, %503, %cst_195 [2] : vector<2x8x32xf32> to vector<2x8xf32>
    %509 = vector.shape_cast %508 : vector<2x8xf32> to vector<2x8x1xf32>
    %cst_196 = arith.constant 3.200000e+01 : f32
    %510 = vector.broadcast %cst_196 : f32 to vector<2x8x1xf32>
    %511 = arith.divf %509, %510 : vector<2x8x1xf32>
    %512 = arith.mulf %503, %503 : vector<2x8x32xf32>
    %cst_197 = arith.constant dense<0.000000e+00> : vector<2x8xf32>
    %513 = vector.multi_reduction <add>, %512, %cst_197 [2] : vector<2x8x32xf32> to vector<2x8xf32>
    %514 = vector.shape_cast %513 : vector<2x8xf32> to vector<2x8x1xf32>
    %cst_198 = arith.constant 3.200000e+01 : f32
    %515 = vector.broadcast %cst_198 : f32 to vector<2x8x1xf32>
    %516 = arith.divf %514, %515 : vector<2x8x1xf32>
    %517 = arith.mulf %511, %511 : vector<2x8x1xf32>
    %518 = arith.subf %516, %517 : vector<2x8x1xf32>
    %519 = vector.broadcast %511 : vector<2x8x1xf32> to vector<2x8x32xf32>
    %520 = arith.subf %503, %519 : vector<2x8x32xf32>
    %cst_199 = arith.constant 9.99999997E-7 : f32
    %521 = vector.broadcast %cst_199 : f32 to vector<2x8x1xf32>
    %522 = arith.addf %518, %521 : vector<2x8x1xf32>
    %523 = math.rsqrt %522 : vector<2x8x1xf32>
    %524 = vector.broadcast %523 : vector<2x8x1xf32> to vector<2x8x32xf32>
    %525 = arith.mulf %520, %524 : vector<2x8x32xf32>
    %526 = vector.shape_cast %505 : vector<32xf32> to vector<1x1x32xf32>
    %527 = vector.broadcast %526 : vector<1x1x32xf32> to vector<2x8x32xf32>
    %528 = arith.mulf %525, %527 : vector<2x8x32xf32>
    %529 = vector.shape_cast %507 : vector<32xf32> to vector<1x1x32xf32>
    %530 = vector.broadcast %529 : vector<1x1x32xf32> to vector<2x8x32xf32>
    %531 = arith.addf %528, %530 : vector<2x8x32xf32>
    %532 = vector.shape_cast %531 : vector<2x8x32xf32> to vector<16x32xf32>
    %533 = arith.truncf %532 : vector<16x32xf32> to vector<16x32xbf16>
    %c0_200 = arith.constant 0 : index
    %c0_201 = arith.constant 0 : index
    %c0_202 = arith.constant 0 : index
    %534 = vector.load %arg15[%c0_200, %c0_201, %c0_202] : memref<1x32x64xbf16, #tpu.memory_space<vmem>>, vector<1x32x64xbf16>
    %535 = vector.shape_cast %534 : vector<1x32x64xbf16> to vector<32x64xbf16>
    %cst_203 = arith.constant dense<0.000000e+00> : vector<16x64xf32>
    %536 = tpu.matmul %533, %535, %cst_203 {dimension_numbers = #tpu.dot_dimension_numbers<[1], [0], [0], [1], [0, 0, 1, 1], [], []>} : vector<16x32xbf16>, vector<32x64xbf16>, vector<16x64xf32> -> vector<16x64xf32>
    %c0_204 = arith.constant 0 : index
    %c0_205 = arith.constant 0 : index
    %c0_206 = arith.constant 0 : index
    %537 = vector.load %arg16[%c0_204, %c0_205, %c0_206] : memref<1x1x64xf32, #tpu.memory_space<vmem>>, vector<1x1x64xf32>
    %538 = vector.shape_cast %537 : vector<1x1x64xf32> to vector<1x64xf32>
    %539 = vector.broadcast %538 : vector<1x64xf32> to vector<16x64xf32>
    %540 = arith.addf %536, %539 : vector<16x64xf32>
    %541 = arith.mulf %540, %540 : vector<16x64xf32>
    %542 = arith.mulf %540, %541 : vector<16x64xf32>
    %cst_207 = arith.constant 4.471500e-02 : f32
    %543 = vector.broadcast %cst_207 : f32 to vector<16x64xf32>
    %544 = arith.mulf %543, %542 : vector<16x64xf32>
    %545 = arith.addf %540, %544 : vector<16x64xf32>
    %cst_208 = arith.constant 0.797884583 : f32
    %546 = vector.broadcast %cst_208 : f32 to vector<16x64xf32>
    %547 = arith.mulf %546, %545 : vector<16x64xf32>
    %548 = math.tanh %547 : vector<16x64xf32>
    %cst_209 = arith.constant 1.000000e+00 : f32
    %549 = vector.broadcast %cst_209 : f32 to vector<16x64xf32>
    %550 = arith.addf %549, %548 : vector<16x64xf32>
    %cst_210 = arith.constant 5.000000e-01 : f32
    %551 = vector.broadcast %cst_210 : f32 to vector<16x64xf32>
    %552 = arith.mulf %551, %550 : vector<16x64xf32>
    %553 = arith.mulf %540, %552 : vector<16x64xf32>
    %554 = arith.truncf %553 : vector<16x64xf32> to vector<16x64xbf16>
    %c0_211 = arith.constant 0 : index
    %c0_212 = arith.constant 0 : index
    %c0_213 = arith.constant 0 : index
    %555 = vector.load %arg17[%c0_211, %c0_212, %c0_213] : memref<1x64x32xbf16, #tpu.memory_space<vmem>>, vector<1x64x32xbf16>
    %556 = vector.shape_cast %555 : vector<1x64x32xbf16> to vector<64x32xbf16>
    %cst_214 = arith.constant dense<0.000000e+00> : vector<16x32xf32>
    %557 = tpu.matmul %554, %556, %cst_214 {dimension_numbers = #tpu.dot_dimension_numbers<[1], [0], [0], [1], [0, 0, 1, 1], [], []>} : vector<16x64xbf16>, vector<64x32xbf16>, vector<16x32xf32> -> vector<16x32xf32>
    %c0_215 = arith.constant 0 : index
    %c0_216 = arith.constant 0 : index
    %c0_217 = arith.constant 0 : index
    %558 = vector.load %arg18[%c0_215, %c0_216, %c0_217] : memref<1x1x32xf32, #tpu.memory_space<vmem>>, vector<1x1x32xf32>
    %559 = vector.shape_cast %558 : vector<1x1x32xf32> to vector<1x32xf32>
    %560 = vector.broadcast %559 : vector<1x32xf32> to vector<16x32xf32>
    %561 = arith.addf %557, %560 : vector<16x32xf32>
    %562 = vector.shape_cast %561 : vector<16x32xf32> to vector<2x8x32xf32>
    %563 = arith.addf %562, %503 : vector<2x8x32xf32>
    %c0_218 = arith.constant 0 : index
    %c0_219 = arith.constant 0 : index
    %c0_220 = arith.constant 0 : index
    %564 = vector.load %arg24[%c0_218, %c0_219, %c0_220] : memref<2x8x32xf32, #tpu.memory_space<vmem>>, vector<2x8x32xf32>
    tpu.vector_store %arg24[%c0_218, %c0_219, %c0_220], %563 {strides = array<i32>} : memref<2x8x32xf32, #tpu.memory_space<vmem>>, vector<2x8x32xf32>,
    %c1_i32 = arith.constant 1 : i32
    %565 = arith.cmpi eq, %arg1, %c1_i32 : i32
    %566 = arith.extui %565 : i1 to i32
    %c0_i32_221 = arith.constant 0 : i32
    %567 = arith.cmpi ne, %566, %c0_i32_221 : i32
    scf.if %567 {
      %c0_222 = arith.constant 0 : index
      %c0_223 = arith.constant 0 : index
      %568 = vector.load %arg19[%c0_222, %c0_223] : memref<2x32xf32, #tpu.memory_space<vmem>>, vector<1x32xf32>
      %569 = vector.shape_cast %568 : vector<1x32xf32> to vector<32xf32>
      %c1_224 = arith.constant 1 : index
      %c0_225 = arith.constant 0 : index
      %570 = vector.load %arg19[%c1_224, %c0_225] : memref<2x32xf32, #tpu.memory_space<vmem>>, vector<1x32xf32>
      %571 = vector.shape_cast %570 : vector<1x32xf32> to vector<32xf32>
      %cst_226 = arith.constant dense<0.000000e+00> : vector<2x8xf32>
      %572 = vector.multi_reduction <add>, %563, %cst_226 [2] : vector<2x8x32xf32> to vector<2x8xf32>
      %573 = vector.shape_cast %572 : vector<2x8xf32> to vector<2x8x1xf32>
      %cst_227 = arith.constant 3.200000e+01 : f32
      %574 = vector.broadcast %cst_227 : f32 to vector<2x8x1xf32>
      %575 = arith.divf %573, %574 : vector<2x8x1xf32>
      %576 = arith.mulf %563, %563 : vector<2x8x32xf32>
      %cst_228 = arith.constant dense<0.000000e+00> : vector<2x8xf32>
      %577 = vector.multi_reduction <add>, %576, %cst_228 [2] : vector<2x8x32xf32> to vector<2x8xf32>
      %578 = vector.shape_cast %577 : vector<2x8xf32> to vector<2x8x1xf32>
      %cst_229 = arith.constant 3.200000e+01 : f32
      %579 = vector.broadcast %cst_229 : f32 to vector<2x8x1xf32>
      %580 = arith.divf %578, %579 : vector<2x8x1xf32>
      %581 = arith.mulf %575, %575 : vector<2x8x1xf32>
      %582 = arith.subf %580, %581 : vector<2x8x1xf32>
      %583 = vector.broadcast %575 : vector<2x8x1xf32> to vector<2x8x32xf32>
      %584 = arith.subf %563, %583 : vector<2x8x32xf32>
      %cst_230 = arith.constant 9.99999997E-7 : f32
      %585 = vector.broadcast %cst_230 : f32 to vector<2x8x1xf32>
      %586 = arith.addf %582, %585 : vector<2x8x1xf32>
      %587 = math.rsqrt %586 : vector<2x8x1xf32>
      %588 = vector.broadcast %587 : vector<2x8x1xf32> to vector<2x8x32xf32>
      %589 = arith.mulf %584, %588 : vector<2x8x32xf32>
      %590 = vector.shape_cast %569 : vector<32xf32> to vector<1x1x32xf32>
      %591 = vector.broadcast %590 : vector<1x1x32xf32> to vector<2x8x32xf32>
      %592 = arith.mulf %589, %591 : vector<2x8x32xf32>
      %593 = vector.shape_cast %571 : vector<32xf32> to vector<1x1x32xf32>
      %594 = vector.broadcast %593 : vector<1x1x32xf32> to vector<2x8x32xf32>
      %595 = arith.addf %592, %594 : vector<2x8x32xf32>
      %596 = vector.shape_cast %595 : vector<2x8x32xf32> to vector<16x32xf32>
      %597 = arith.truncf %596 : vector<16x32xf32> to vector<16x32xbf16>
      %c0_231 = arith.constant 0 : index
      %c0_232 = arith.constant 0 : index
      %c0_233 = arith.constant 0 : index
      %598 = vector.load %arg20[%c0_231, %c0_232, %c0_233] : memref<2x32x32xbf16, #tpu.memory_space<vmem>>, vector<1x32x32xbf16>
      %599 = vector.shape_cast %598 : vector<1x32x32xbf16> to vector<32x32xbf16>
      %cst_234 = arith.constant dense<0.000000e+00> : vector<16x32xf32>
      %600 = tpu.matmul %597, %599, %cst_234 {dimension_numbers = #tpu.dot_dimension_numbers<[1], [0], [0], [1], [0, 0, 1, 1], [], []>} : vector<16x32xbf16>, vector<32x32xbf16>, vector<16x32xf32> -> vector<16x32xf32>
      %c0_235 = arith.constant 0 : index
      %c0_236 = arith.constant 0 : index
      %601 = vector.load %arg21[%c0_235, %c0_236] : memref<2x32xf32, #tpu.memory_space<vmem>>, vector<1x32xf32>
      %602 = vector.shape_cast %601 : vector<1x32xf32> to vector<32xf32>
      %603 = vector.shape_cast %602 : vector<32xf32> to vector<1x32xf32>
      %604 = vector.broadcast %603 : vector<1x32xf32> to vector<16x32xf32>
      %605 = arith.addf %600, %604 : vector<16x32xf32>
      %606 = vector.shape_cast %4 : vector<2x16x32xbf16> to vector<32x32xbf16>
      %c1_237 = arith.constant 1 : index
      %c0_238 = arith.constant 0 : index
      %c0_239 = arith.constant 0 : index
      %607 = vector.load %arg20[%c1_237, %c0_238, %c0_239] : memref<2x32x32xbf16, #tpu.memory_space<vmem>>, vector<1x32x32xbf16>
      %608 = vector.shape_cast %607 : vector<1x32x32xbf16> to vector<32x32xbf16>
      %cst_240 = arith.constant dense<0.000000e+00> : vector<32x32xf32>
      %609 = tpu.matmul %606, %608, %cst_240 {dimension_numbers = #tpu.dot_dimension_numbers<[1], [0], [0], [1], [0, 0, 1, 1], [], []>} : vector<32x32xbf16>, vector<32x32xbf16>, vector<32x32xf32> -> vector<32x32xf32>
      %c1_241 = arith.constant 1 : index
      %c0_242 = arith.constant 0 : index
      %610 = vector.load %arg21[%c1_241, %c0_242] : memref<2x32xf32, #tpu.memory_space<vmem>>, vector<1x32xf32>
      %611 = vector.shape_cast %610 : vector<1x32xf32> to vector<32xf32>
      %612 = vector.shape_cast %611 : vector<32xf32> to vector<1x32xf32>
      %613 = vector.broadcast %612 : vector<1x32xf32> to vector<32x32xf32>
      %614 = arith.addf %609, %613 : vector<32x32xf32>
      %615 = arith.truncf %605 : vector<16x32xf32> to vector<16x32xbf16>
      %616 = vector.shape_cast %615 : vector<16x32xbf16> to vector<2x8x32xbf16>
      %617 = arith.truncf %614 : vector<32x32xf32> to vector<32x32xbf16>
      %618 = vector.shape_cast %617 : vector<32x32xbf16> to vector<2x16x32xbf16>
      "tpu.trace_start"() <{level = 10 : i32, message = "btd,bsd->bts"}> : () -> ()
      %cst_243 = arith.constant dense<0.000000e+00> : vector<2x8x16xf32>
      %619 = tpu.matmul %616, %618, %cst_243 {dimension_numbers = #tpu.dot_dimension_numbers<[2], [2], [1], [1], [0, 0, 0, 1, 1, 1], [0], [0]>} : vector<2x8x32xbf16>, vector<2x16x32xbf16>, vector<2x8x16xf32> -> vector<2x8x16xf32>
      %cst_244 = arith.constant -9.99999984E+17 : f32
      "tpu.trace_stop"() : () -> ()
      %620 = vector.shape_cast %19 : vector<2x1x16xi1> to vector<2x1x16xi1>
      %621 = vector.broadcast %620 : vector<2x1x16xi1> to vector<2x8x16xi1>
      %622 = vector.broadcast %cst_244 : f32 to vector<2x8x16xf32>
      %623 = arith.select %621, %622, %619 : vector<2x8x16xi1>, vector<2x8x16xf32>
      %c0_245 = arith.constant 0 : index
      %c0_246 = arith.constant 0 : index
      %c0_247 = arith.constant 0 : index
      %624 = vector.load %arg22[%c0_245, %c0_246, %c0_247] : memref<2x8x32xf32, #tpu.memory_space<vmem>>, vector<2x8x32xf32>
      tpu.vector_store %arg22[%c0_245, %c0_246, %c0_247], %595 {strides = array<i32>} : memref<2x8x32xf32, #tpu.memory_space<vmem>>, vector<2x8x32xf32>,
      %cst_248 = arith.constant dense<0xFF800000> : vector<2x8xf32>
      %625 = vector.multi_reduction <maximumf>, %623, %cst_248 [2] : vector<2x8x16xf32> to vector<2x8xf32>
      %626 = vector.shape_cast %625 : vector<2x8xf32> to vector<2x8x1xf32>
      %627 = vector.broadcast %626 : vector<2x8x1xf32> to vector<2x8x16xf32>
      %628 = arith.subf %623, %627 : vector<2x8x16xf32>
      %629 = math.exp %628 : vector<2x8x16xf32>
      %cst_249 = arith.constant dense<0.000000e+00> : vector<2x8xf32>
      %630 = vector.multi_reduction <add>, %629, %cst_249 [2] : vector<2x8x16xf32> to vector<2x8xf32>
      %631 = vector.shape_cast %630 : vector<2x8xf32> to vector<2x8x1xf32>
      %632 = tpu.reciprocal %631 {approx = true} : vector<2x8x1xf32> -> vector<2x8x1xf32>
      %633 = vector.broadcast %632 : vector<2x8x1xf32> to vector<2x8x16xf32>
      %634 = arith.mulf %629, %633 : vector<2x8x16xf32>
      %c0_250 = arith.constant 0 : index
      %c0_251 = arith.constant 0 : index
      %c0_252 = arith.constant 0 : index
      %635 = vector.load %arg23[%c0_250, %c0_251, %c0_252] : memref<2x8x16xf32, #tpu.memory_space<vmem>>, vector<2x8x16xf32>
      tpu.vector_store %arg23[%c0_250, %c0_251, %c0_252], %634 {strides = array<i32>} : memref<2x8x16xf32, #tpu.memory_space<vmem>>, vector<2x8x16xf32>,
    } else {
    }
    return
  }
  func.func @transform_0(%arg0: i32, %arg1: i32) -> (i32, i32, i32) {
    %c0_i32 = arith.constant 0 : i32
    %c0_i32_0 = arith.constant 0 : i32
    %c0_i32_1 = arith.constant 0 : i32
    return %arg0, %c0_i32, %c0_i32_0 : i32, i32, i32
  }
  func.func @transform_1(%arg0: i32, %arg1: i32) -> (i32, i32, i32) {
    %c0_i32 = arith.constant 0 : i32
    %c0_i32_0 = arith.constant 0 : i32
    %c0_i32_1 = arith.constant 0 : i32
    return %arg0, %c0_i32, %c0_i32_0 : i32, i32, i32
  }
  func.func @transform_2(%arg0: i32, %arg1: i32) -> (i32, i32, i32) {
    %c0_i32 = arith.constant 0 : i32
    %c0_i32_0 = arith.constant 0 : i32
    %c0_i32_1 = arith.constant 0 : i32
    return %arg0, %c0_i32, %c0_i32_0 : i32, i32, i32
  }
  func.func @transform_3(%arg0: i32, %arg1: i32) -> (i32, i32, i32) {
    %c0_i32 = arith.constant 0 : i32
    %c0_i32_0 = arith.constant 0 : i32
    %c0_i32_1 = arith.constant 0 : i32
    return %arg0, %c0_i32, %c0_i32_0 : i32, i32, i32
  }
  func.func @transform_4(%arg0: i32, %arg1: i32) -> (i32, i32, i32) {
    %c0_i32 = arith.constant 0 : i32
    %c0_i32_0 = arith.constant 0 : i32
    %c0_i32_1 = arith.constant 0 : i32
    return %arg0, %c0_i32, %c0_i32_0 : i32, i32, i32
  }
  func.func @transform_5(%arg0: i32, %arg1: i32) -> (i32, i32, i32) {
    %c0_i32 = arith.constant 0 : i32
    %c0_i32_0 = arith.constant 0 : i32
    %c0_i32_1 = arith.constant 0 : i32
    return %arg0, %c0_i32, %c0_i32_0 : i32, i32, i32
  }
  func.func @transform_6(%arg0: i32, %arg1: i32) -> (i32, i32, i32) {
    %c0_i32 = arith.constant 0 : i32
    %c0_i32_0 = arith.constant 0 : i32
    %c0_i32_1 = arith.constant 0 : i32
    return %arg0, %c0_i32, %c0_i32_0 : i32, i32, i32
  }
  func.func @transform_7(%arg0: i32, %arg1: i32) -> (i32, i32, i32, i32) {
    %c0_i32 = arith.constant 0 : i32
    %c0_i32_0 = arith.constant 0 : i32
    %c0_i32_1 = arith.constant 0 : i32
    %c0_i32_2 = arith.constant 0 : i32
    return %arg1, %c0_i32, %c0_i32_0, %c0_i32_1 : i32, i32, i32, i32
  }
  func.func @transform_8(%arg0: i32, %arg1: i32) -> (i32, i32, i32) {
    %c0_i32 = arith.constant 0 : i32
    %c0_i32_0 = arith.constant 0 : i32
    %c0_i32_1 = arith.constant 0 : i32
    return %arg1, %c0_i32, %c0_i32_0 : i32, i32, i32
  }
  func.func @transform_9(%arg0: i32, %arg1: i32) -> (i32, i32, i32, i32) {
    %c0_i32 = arith.constant 0 : i32
    %c0_i32_0 = arith.constant 0 : i32
    %c0_i32_1 = arith.constant 0 : i32
    %c0_i32_2 = arith.constant 0 : i32
    return %arg1, %c0_i32, %c0_i32_0, %c0_i32_1 : i32, i32, i32, i32
  }
  func.func @transform_10(%arg0: i32, %arg1: i32) -> (i32, i32, i32) {
    %c0_i32 = arith.constant 0 : i32
    %c0_i32_0 = arith.constant 0 : i32
    %c0_i32_1 = arith.constant 0 : i32
    return %arg1, %c0_i32, %c0_i32_0 : i32, i32, i32
  }
  func.func @transform_11(%arg0: i32, %arg1: i32) -> (i32, i32, i32) {
    %c0_i32 = arith.constant 0 : i32
    %c0_i32_0 = arith.constant 0 : i32
    %c0_i32_1 = arith.constant 0 : i32
    return %arg1, %c0_i32, %c0_i32_0 : i32, i32, i32
  }
  func.func @transform_12(%arg0: i32, %arg1: i32) -> (i32, i32, i32) {
    %c0_i32 = arith.constant 0 : i32
    %c0_i32_0 = arith.constant 0 : i32
    %c0_i32_1 = arith.constant 0 : i32
    return %arg1, %c0_i32, %c0_i32_0 : i32, i32, i32
  }
  func.func @transform_13(%arg0: i32, %arg1: i32) -> (i32, i32, i32) {
    %c0_i32 = arith.constant 0 : i32
    %c0_i32_0 = arith.constant 0 : i32
    %c0_i32_1 = arith.constant 0 : i32
    return %arg1, %c0_i32, %c0_i32_0 : i32, i32, i32
  }
  func.func @transform_14(%arg0: i32, %arg1: i32) -> (i32, i32, i32) {
    %c0_i32 = arith.constant 0 : i32
    %c0_i32_0 = arith.constant 0 : i32
    %c0_i32_1 = arith.constant 0 : i32
    return %arg1, %c0_i32, %c0_i32_0 : i32, i32, i32
  }
  func.func @transform_15(%arg0: i32, %arg1: i32) -> (i32, i32, i32) {
    %c0_i32 = arith.constant 0 : i32
    %c0_i32_0 = arith.constant 0 : i32
    %c0_i32_1 = arith.constant 0 : i32
    return %arg1, %c0_i32, %c0_i32_0 : i32, i32, i32
  }
  func.func @transform_16(%arg0: i32, %arg1: i32) -> (i32, i32, i32) {
    %c0_i32 = arith.constant 0 : i32
    %c0_i32_0 = arith.constant 0 : i32
    %c0_i32_1 = arith.constant 0 : i32
    return %arg1, %c0_i32, %c0_i32_0 : i32, i32, i32
  }
  func.func @transform_17(%arg0: i32, %arg1: i32) -> (i32, i32) {
    %c0_i32 = arith.constant 0 : i32
    %c0_i32_0 = arith.constant 0 : i32
    %c0_i32_1 = arith.constant 0 : i32
    return %c0_i32, %c0_i32_0 : i32, i32
  }
  func.func @transform_18(%arg0: i32, %arg1: i32) -> (i32, i32, i32) {
    %c0_i32 = arith.constant 0 : i32
    %c0_i32_0 = arith.constant 0 : i32
    %c0_i32_1 = arith.constant 0 : i32
    %c0_i32_2 = arith.constant 0 : i32
    return %c0_i32, %c0_i32_0, %c0_i32_1 : i32, i32, i32
  }
  func.func @transform_19(%arg0: i32, %arg1: i32) -> (i32, i32) {
    %c0_i32 = arith.constant 0 : i32
    %c0_i32_0 = arith.constant 0 : i32
    %c0_i32_1 = arith.constant 0 : i32
    return %c0_i32, %c0_i32_0 : i32, i32
  }
  func.func @transform_20(%arg0: i32, %arg1: i32) -> (i32, i32, i32) {
    %c0_i32 = arith.constant 0 : i32
    %c0_i32_0 = arith.constant 0 : i32
    %c0_i32_1 = arith.constant 0 : i32
    return %arg0, %c0_i32, %c0_i32_0 : i32, i32, i32
  }
  func.func @transform_21(%arg0: i32, %arg1: i32) -> (i32, i32, i32) {
    %c0_i32 = arith.constant 0 : i32
    %c0_i32_0 = arith.constant 0 : i32
    %c0_i32_1 = arith.constant 0 : i32
    return %arg0, %c0_i32, %c0_i32_0 : i32, i32, i32
  }
}

</mosaic_0001>

<bundles_post_ra>
// kernel: tpu_custom_call.1
= control target key start
LH: loop header
LB: loop body
LE: loop exit
PB: predicated region body
PF: predicated region fallthrough
CT: control target
= control target key end

     0   :  { %s10353_s0 = inlined_call_operand.hbm [shape: f32[4,8,32], index: 0, kind: input, shape index: {}]   ;;  %s10354_s1 = inlined_call_operand.hbm [shape: bf16[4,16,32], index: 1, kind: input, shape index: {}]   ;;  %s10355_s2 = inlined_call_operand.hbm [shape: bf16[4,8,32], index: 2, kind: input, shape index: {}]   ;;  %s10356_s3 = inlined_call_operand.hbm [shape: f32[4,1,8], index: 3, kind: input, shape index: {}]   ;;  %s10357_s4 = inlined_call_operand.hbm [shape: f32[4,1,8], index: 4, kind: input, shape index: {}]   ;;  %s10358_s5 = inlined_call_operand.hbm [shape: f32[4,1,16], index: 5, kind: input, shape index: {}]   ;;  %s10359_s6 = inlined_call_operand.hbm [shape: f32[4,1,8], index: 6, kind: input, shape index: {}]   ;;  %s10360_s7 = inlined_call_operand.hbm [shape: bf16[2,9,32,32], index: 7, kind: input, shape index: {}]   ;;  %s10361_s8 = inlined_call_operand.hbm [shape: f32[2,9,32], index: 8, kind: input, shape index: {}]   ;;  %s10362_s9 = inlined_call_operand.hbm [shape: bf16[2,3,32,32], index: 9, kind: input, shape index: {}]   ;;  %s10363_s10 = inlined_call_operand.hbm [shape: f32[2,3,32], index: 10, kind: input, shape index: {}]   ;;  %s10364_s11 = inlined_call_operand.hbm [shape: f32[2,6,32], index: 11, kind: input, shape index: {}]   ;;  %s10365_s12 = inlined_call_operand.hbm [shape: f32[2,3,32], index: 12, kind: input, shape index: {}]   ;;  %s10366_s13 = inlined_call_operand.hbm [shape: bf16[2,32,64], index: 13, kind: input, shape index: {}]   ;;  %s10367_s14 = inlined_call_operand.hbm [shape: f32[2,1,64], index: 14, kind: input, shape index: {}]   ;;  %s10368_s15 = inlined_call_operand.hbm [shape: bf16[2,64,32], index: 15, kind: input, shape index: {}]   ;;  %s10369_s16 = inlined_call_operand.hbm [shape: f32[2,1,32], index: 16, kind: input, shape index: {}]   ;;  %s10370_s17 = inlined_call_operand.hbm [shape: f32[2,32], index: 17, kind: input, shape index: {}]   ;;  %s10371_s18 = inlined_call_operand.hbm [shape: bf16[2,32,32], index: 18, kind: input, shape index: {}]   ;;  %s10372_s19 = inlined_call_operand.hbm [shape: f32[2,32], index: 19, kind: input, shape index: {}]   ;;  %s10373_s20 = inlined_call_operand.hbm [shape: f32[4,8,32], index: 20, kind: output, shape index: {0}]   ;;  %s10374_s21 = inlined_call_operand.hbm [shape: f32[4,8,16], index: 21, kind: output, shape index: {1}]  }
   0x1   :  { %10443 = sst [smem:[#allocation69_spill]] %s10353_s0 }
   0x2   :  { %10444 = sst [smem:[#allocation70_spill]] %s10354_s1 }
   0x3   :  { %10445 = sst [smem:[#allocation71_spill]] %s10355_s2 }
   0x4   :  { %10446 = sst [smem:[#allocation72_spill]] %s10356_s3 }
   0x5   :  { %10447 = sst [smem:[#allocation73_spill]] %s10357_s4 }
   0x6   :  { %10448 = sst [smem:[#allocation74_spill]] %s10358_s5 }
   0x7   :  { %10449 = sst [smem:[#allocation75_spill]] %s10359_s6 }
   0x8   :  { %10450 = sst [smem:[#allocation76_spill]] %s10360_s7 }
   0x9   :  { %10451 = sst [smem:[#allocation77_spill]] %s10361_s8 }
   0xa   :  { %10452 = sst [smem:[#allocation78_spill]] %s10362_s9 }
   0xb   :  { %10453 = sst [smem:[#allocation79_spill]] %s10363_s10 }
   0xc   :  { %10454 = sst [smem:[#allocation80_spill]] %s10364_s11 }
   0xd   :  { %10455 = sst [smem:[#allocation81_spill]] %s10365_s12 }
   0xe   :  { %10456 = sst [smem:[#allocation82_spill]] %s10367_s14 }
   0xf   :  { %10457 = sst [smem:[#allocation83_spill]] %s10369_s16 }
  0x10   :  { %10458 = sst [smem:[#allocation84_spill]] %s10370_s17 }
  0x11   :  { %10459 = sst [smem:[#allocation85_spill]] %s10371_s18 }
  0x12   :  { %10460 = sst [smem:[#allocation86_spill]] %s10372_s19 }
  0x13   :  { %10461 = sst [smem:[#allocation87_spill]] %s10373_s20 }
  0x14   :  { %10462 = sst [smem:[#allocation88_spill]] %s10374_s21 }
  0x15   :  { %27 = vsyncpa [#allocation4], 0 }
  0x16   :  { %29 = vsyncpa [#allocation4 + $0x1], 0 }
  0x17   :  { %30 = vsyncpa [#allocation7], 0 }
  0x18   :  { %32 = vsyncpa [#allocation7 + $0x1], 0 }
  0x19   :  { %33 = vsyncpa [#allocation10], 0 }
  0x1a   :  { %35 = vsyncpa [#allocation10 + $0x1], 0 }
  0x1b   :  { %36 = vsyncpa [#allocation13], 0 }
  0x1c   :  { %38 = vsyncpa [#allocation13 + $0x1], 0 }
  0x1d   :  { %39 = vsyncpa [#allocation16], 0 }
  0x1e   :  { %41 = vsyncpa [#allocation16 + $0x1], 0 }
  0x1f   :  { %42 = vsyncpa [#allocation19], 0 }
  0x20   :  { %44 = vsyncpa [#allocation19 + $0x1], 0 }
  0x21   :  { %45 = vsyncpa [#allocation22], 0 }
  0x22   :  { %47 = vsyncpa [#allocation22 + $0x1], 0 }
  0x23   :  { %48 = vsyncpa [#allocation25], 0 }
  0x24   :  { %50 = vsyncpa [#allocation25 + $0x1], 0 }
  0x25   :  { %51 = vsyncpa [#allocation28], 0 }
  0x26   :  { %53 = vsyncpa [#allocation28 + $0x1], 0 }
  0x27   :  { %54 = vsyncpa [#allocation31], 0 }
  0x28   :  { %55 = vsyncpa [#allocation34], 0 }
  0x29   :  { %56 = vsyncpa [#allocation5], 0 }
  0x2a   :  { %58 = vsyncpa [#allocation5 + $0x1], 0 }
  0x2b   :  { %59 = vsyncpa [#allocation37], 0 }
  0x2c   :  { %61 = vsyncpa [#allocation37 + $0x1], 0  ;;  %s8421_s2 = smov 0   ;;  %s8423_s25 = smov 0  }
  0x2d   :  { %s8425_s26 = smov 0   ;;  %s8427_s27 = smov 0  }
  0x2e   :  { %s8429_s3 = smov 0   ;;  %s8431_s28 = smov 0  }
  0x2f   :  { %s8433_s29 = smov 0   ;;  %s8435_s0 = smov 0  }
  0x30   :  { %s8437_s4 = smov 0   ;;  %s8439_s30 = smov 0  }
  0x31   :  { %s8441_s5 = smov 0  }
  0x32 LB: > { %10463 = sst [smem:[#allocation51_spill]] %s8231_s25  ;;  %s8477_s22 = sadd.s32 4294967295, %s8267_s5   ;;  %s8267_s5 = sphi %s8441_s5, %s67_s5   ;;  %s8263_s30 = sphi %s8439_s30, %s10595_s30   ;;  %s8259_s4 = sphi %s8437_s4, %s10594_s4   ;;  %s8255_s0 = sphi %s8435_s0, %s10593_s0   ;;  %s8251_s29 = sphi %s8433_s29, %s10592_s29   ;;  %s8247_s28 = sphi %s8431_s28, %s10589_s28   ;;  %s8243_s3 = sphi %s8429_s3, %s10588_s3   ;;  %s8239_s27 = sphi %s8427_s27, %s10587_s27   ;;  %s8235_s26 = sphi %s8425_s26, %s10586_s26   ;;  %s8231_s25 = sphi %s8423_s25, %s10585_s25   ;;  %s8227_s2 = sphi %s8421_s2, %s10584_s2  }
  0x33   : > { %10464 = sst [smem:[#allocation52_spill]] %s8235_s26  ;;  %s6229_s23 = sadd.s32 4294967294, %s8267_s5  }
  0x34   : > { %10465 = sst [smem:[#allocation53_spill]] %s8239_s27  ;;  %s76_s1 = sadd.s32 1, %s8259_s4 }
  0x35   : > { %10466 = sst [smem:[#allocation54_spill]] %s8243_s3  ;;  %s79_s24 = sadd.s32 1, %s8263_s30 }
  0x36   : > { %10467 = sst [smem:[#allocation55_spill]] %s8247_s28  ;;  %p77_p0 = scmp.ge.s32.totalorder %s76_s1, 2 }
  0x37   : > { %10468 = sst [smem:[#allocation56_spill]] %s8251_s29  ;;  %s86_s21 = sadd.s32 1, %s8247_s28 }
  0x38   : > { %10469 = sst [smem:[#allocation57_spill]] %s8255_s0  ;;  %p10391_p1 = scmp.ne.s32.totalorder %s8247_s28, %s8243_s3 }
  0x39   : > { %10470 = sst [smem:[#allocation58_spill]] %s8267_s5  ;;  %p94_p2 = scmp.eq.s32.totalorder %s8267_s5, 0 }
  0x3a   : > { %10471 = sst [smem:[#allocation59_spill]] %s8477_s22  ;;  %s10597_s1 = smov (%p77_p0, %s76_s1), 0 }
  0x3b   : > { %10472 = sst [smem:[#allocation60_spill]] %s10597_s1  ;;  %s10599_s24 = smov (!%p77_p0, %s79_s24), %s8263_s30 }
  0x3c   : > { %p8494_p3 = por %p94_p2, %p10391_p1  ;;  %p10390_p4 = scmp.ne.s32.totalorder %s8243_s3, %s8239_s27 }
  0x3d   : > { %p81_p5 = scmp.ge.s32.totalorder %s10599_s24, 2  ;;  %p10402_p6 = scmp.eq.s32.totalorder %s8477_s22, 0 }
  0x3e   : > { %s10473_s20 = scalar_select %p8494_p3, 1, 0 }
  0x3f   : > { %s265_s0 = ssub.s32 %s8259_s4, %s10597_s1  ;;  %s268_s29 = sadd.s32 1, %s8235_s26 }
  0x40   : > { %s10601_s24 = smov (%p81_p5, %s10599_s24), 0  ;;  %p8511_p7 = por %p10402_p6, %p10390_p4 }
  0x41   : > { %10474 = sst [smem:[#allocation61_spill]] %s10601_s24  ;;  %p266_p8 = scmp.eq.s32.totalorder %s265_s0, 0 }
  0x42   : > { %s10475_s16 = scalar_select %p8511_p7, 1, 0 }
  0x43   : > { %s83_s14 = ssub.s32 %s8263_s30, %s10601_s24  ;;  %p275_p9 = scmp.ne.s32.totalorder %s8235_s26, %s8231_s25 }
  0x44   : > { %10476 = sst [smem:[#allocation62_spill]] %s10475_s16  ;;  %p84_p10 = scmp.eq.s32.totalorder %s83_s14, 0 }
  0x45   : > { %p281_p11 = scmp.ne.s32.totalorder %s8231_s25, %s8227_s2  ;;  %p8529_p12 = por %p275_p9, %p94_p2 }
  0x46   : > { %s8522_s1 = scalar_select %p266_p8, %s8235_s26, %s268_s29  }
  0x47   : > { %s8525_s12 = scalar_select %p84_p10, %s8247_s28, %s86_s21  }
  0x48   : > { %10477 = sst [smem:[#allocation63_spill]] %s8522_s1  ;;  %p8535_p13 = por %p281_p11, %p10402_p6 }
  0x49   : > { %10478 = sst [smem:[#allocation64_spill]] %s8525_s12  ;;  %p602_p0 = scmp.eq.s32.totalorder %s8477_s22, 3 }
  0x4a   : > { %s10479_s10 = scalar_select %p8529_p12, 1, 0 }
  0x4b   : > { %s10480_s6 = scalar_select %p8535_p13, 1, 0 }
  0x4c   : > { %p608_p5 = scmp.eq.s32.totalorder %s6229_s23, 3  ;;  %p6230_p4 = scmp.ge.s32.totalorder %s8267_s5, 1 }
  0x4d   : > { %10481 = sst [smem:[#allocation65_spill]] %s10480_s6  ;;  %p641_p1 = scmp.lt.s32.totalorder %s8267_s5, 5 }
  0x4e   : > { %p10482_p7 = scmp.ne.s32.totalorder %s8247_s28, %s8243_s3  ;;  %p10485_p10 = scmp.ne.s32.totalorder %s8243_s3, %s8239_s27 }
  0x4f   : > { %p8556_p2 = pnand %p6230_p4, %p641_p1  ;;  %s8269_s29 = smov [#allocation30]  }
  0x50   : > { %p8545_p8 = por %p602_p0, %p10482_p7  ;;  %p8552_p3 = por %p608_p5, %p10485_p10 }
  0x51   : > { %s10488_s2 = scalar_select %p8556_p2, 1, 0 }
  0x52   : > { %s10483_s14 = scalar_select %p8545_p8, 1, 0 }
  0x53   : > { %s10486_s21 = scalar_select %p8552_p3, 1, 0 }
  0x54   : > { %10484 = sst [smem:[#allocation66_spill]] %s10483_s14  ;;  %p7159_p9 = pneg %p8556_p2 }
  0x55   : > { %10487 = sst [smem:[#allocation67_spill]] %s10486_s21  ;;  %s654_s0 = sshll.u32 %s8269_s29, 4  ;;  %s655_s0 = int_to_ptr.vmem [resolvable:$true] %s654_s0 }
  0x56   : > { %10489 = sst [smem:[#allocation68_spill]] %s10488_s2  ;;  %s8270_s23 = smov [#allocation32]  }
  0x57   : > { %s664_s24 = sshll.u32 %s8270_s23, 4  ;;  %p8564_p7 = pnand %p7159_p9, %p10402_p6  ;;  %s8568_s24 = int_to_ptr.vmem [resolvable:$true] %s664_s24 }
  0x58   : > { %s10491_s17 = sld [smem:[#allocation84_spill]] }
  0x59   : > { %p8578_p4 = pneg %p8564_p7 }
  0x5e   : > { %s7513_s27 = scalar_lea.hbm %s10491_s17, 32 }
  0x5f   : > { %p7514_p1 = scmp.ne.s32.totalorder %s10491_s17, %s7513_s27  ;;  %p7520_p5 = scmp.lt.u32.totalorder %s7513_s27, %s10491_s17 }
  0x61   : > { %p7516_p11 = pnand %p8578_p4, %p7514_p1 }
  0x63   : > { %p7517_p0 = pneg %p7516_p11 }
  0x65   : > { %p7522_p10 = pnand %p7520_p5, %p7517_p0 }
  0x67   : > { %7525 = shalt.err (!%p7522_p10)
}
  0x68   : > { %s7526_s1 = scalar_lea.vmem %s655_s0, 32  ;;  %p7534_p8 = scmp.lt.s32.totalorder %s655_s0, %s655_s0 }
  0x69   : > { %p7527_p9 = scmp.ne.s32.totalorder %s655_s0, %s7526_s1  ;;  %p7535_p13 = scmp.lt.s32.totalorder %s7526_s1, %s7526_s1 }
  0x6b   : > { %p7529_p6 = pnand %p7527_p9, %p8578_p4  ;;  %p7536_p2 = por %p7535_p13, %p7534_p8 }
  0x6d   : > { %p7530_p3 = pneg %p7529_p6 }
  0x6f   : > { %p7537_p12 = pnand %p7536_p2, %p7530_p3 }
  0x71   : > { %7540 = shalt.err (!%p7537_p12)
}
  0x72   : > { %7162 = dma.hbm_to_vmem [thread:$0]  (!%p8564_p7), %s10491_s17, 32, %s655_s0, [#allocation31]  }
  0x73   : > { %s10493_s18 = sld [smem:[#allocation85_spill]] }
  0x79   : > { %s7541_s21 = scalar_lea.hbm %s10493_s18, 512 }
  0x7a   : > { %p7542_p6 = scmp.ne.s32.totalorder %s10493_s18, %s7541_s21  ;;  %p7548_p3 = scmp.lt.u32.totalorder %s7541_s21, %s10493_s18 }
  0x7c   : > { %p7544_p1 = pnand %p7542_p6, %p8578_p4 }
  0x7e   : > { %p7545_p13 = pneg %p7544_p1 }
  0x80   : > { %p7550_p12 = pnand %p7548_p3, %p7545_p13 }
  0x82   : > { %7553 = shalt.err (!%p7550_p12)
}
  0x83   : > { %s7554_s0 = scalar_lea.vmem %s8568_s24, 512  ;;  %p7562_p0 = scmp.lt.s32.totalorder %s8568_s24, %s8568_s24 }
  0x84   : > { %p7555_p8 = scmp.ne.s32.totalorder %s8568_s24, %s7554_s0  ;;  %p7563_p5 = scmp.lt.s32.totalorder %s7554_s0, %s7554_s0 }
  0x86   : > { %p7557_p2 = pnand %p7555_p8, %p8578_p4  ;;  %p7564_p10 = por %p7563_p5, %p7562_p0 }
  0x88   : > { %p7558_p11 = pneg %p7557_p2 }
  0x8a   : > { %p7565_p9 = pnand %p7564_p10, %p7558_p11 }
  0x8c   : > { %7568 = shalt.err (!%p7565_p9)
}
  0x8d   : > { %s8271_s22 = smov 64   ;;  %s8272_s16 = smov 4  }
  0x8e   : > { %7165 = dma.hbm_to_vmem [thread:$0]  (!%p8564_p7), %s10493_s18, 512, %s8568_s24, [#allocation31], %s8271_s22, %s8271_s22, %s8272_s16  }
  0x8f   : > { %s8273_s25 = smov [#allocation33]   ;;  %s10494_s19 = sld [smem:[#allocation86_spill]] }
  0x90   : > { %s678_s27 = sshll.u32 %s8273_s25, 4  ;;  %s679_s27 = int_to_ptr.vmem [resolvable:$true] %s678_s27 }
  0x95   : > { %s7569_s1 = scalar_lea.hbm %s10494_s19, 32 }
  0x96   : > { %p7570_p6 = scmp.ne.s32.totalorder %s10494_s19, %s7569_s1  ;;  %p7576_p3 = scmp.lt.u32.totalorder %s7569_s1, %s10494_s19 }
  0x98   : > { %p7572_p1 = pnand %p7570_p6, %p8578_p4 }
  0x9a   : > { %p7573_p13 = pneg %p7572_p1 }
  0x9c   : > { %p7578_p12 = pnand %p7576_p3, %p7573_p13 }
  0x9e   : > { %7581 = shalt.err (!%p7578_p12)
}
  0x9f   : > { %s7582_s24 = scalar_lea.vmem %s679_s27, 32  ;;  %p7590_p0 = scmp.lt.s32.totalorder %s679_s27, %s679_s27 }
  0xa0   : > { %p7583_p8 = scmp.ne.s32.totalorder %s679_s27, %s7582_s24  ;;  %p7591_p5 = scmp.lt.s32.totalorder %s7582_s24, %s7582_s24 }
  0xa2   : > { %p7585_p2 = pnand %p7583_p8, %p8578_p4  ;;  %p7592_p10 = por %p7591_p5, %p7590_p0 }
  0xa4   : > { %p7586_p11 = pneg %p7585_p2 }
  0xa6   : > { %p7593_p9 = pnand %p7592_p10, %p7586_p11 }
  0xa8   : > { %7596 = shalt.err (!%p7593_p9)
}
  0xa9   : > { %7168 = dma.hbm_to_vmem [thread:$0]  (!%p8564_p7), %s10494_s19, 32, %s679_s27, [#allocation34]  }
  0xaa   : > { %p6234_p6 = scmp.ge.s32.totalorder %s8267_s5, 4 }
  0xab   : > { %s8637_s3 = sand.u32 (!%p6234_p6), 1, %s8247_s28   ;;  %s10414_s2 = sshll.u32 (!%p6234_p6), %s8263_s30, 8 }
  0xac   : > { %685 = sbr.rel (%p6234_p6) target bundleno = 643 (0x283), region = 28  ;;  %s10413_s29 = sshll.u32 (!%p6234_p6), %s8637_s3, 4 }
  0xad   : > { %s8642_s16 = sand.u32 (!%p6234_p6), 1, %s8267_s5   ;;  %s10495_s14 = sld [smem:[#allocation70_spill]] (!%p6234_p6) }
  0xae   : > { %s714_s27 = scalar_lea.vmem (!%p6234_p6), [#allocation6], %s10413_s29  ;;  %s10416_s23 = scalar_lea.sflag (!%p6234_p6), [#allocation7], %s8642_s16 }
  0xaf   : > { %s722_s21 = sshll.u32 (!%p6234_p6), %s714_s27, 4  ;;  %p10496_p4 = scmp.ne.s32.totalorder (!%p6234_p6), %s10473_s20, 0  ;;  %s8653_s21 = int_to_ptr.vmem [resolvable:$true] %s722_s21 }
  0xb3   : > { %s8649_s25 = scalar_lea.hbm %s10495_s14, %s10414_s2  ;;  %s7601_s17 = scalar_lea.hbm %s10495_s14, 512 }
  0xb4   : > { %s7597_s1 = scalar_lea.hbm %s8649_s25, 256  ;;  %p7602_p3 = scmp.lt.u32.totalorder %s8649_s25, %s10495_s14 }
  0xb5   : > { %p7598_p7 = scmp.ne.s32.totalorder %s8649_s25, %s7597_s1  ;;  %p7603_p12 = scmp.lt.u32.totalorder %s7601_s17, %s7597_s1 }
  0xb6   : > { %p7605_p2 = scmp.lt.u32.totalorder %s7597_s1, %s8649_s25 }
  0xb7   : > { %p7599_p1 = pnand %p7598_p7, %p10496_p4  ;;  %p7604_p8 = por %p7603_p12, %p7602_p3 }
  0xb9   : > { %p7600_p13 = pneg %p7599_p1  ;;  %p7606_p11 = por %p7605_p2, %p7604_p8 }
  0xbb   : > { %p7607_p0 = pnand %p7606_p11, %p7600_p13 }
  0xbd   : > { %7610 = shalt.err (!%p7607_p0)
}
  0xbe   : > { %s7611_s6 = scalar_lea.vmem %s8653_s21, 256  ;;  %s8274_s27 = smov [#allocation6]  }
  0xbf   : > { %p7612_p5 = scmp.ne.s32.totalorder %s8653_s21, %s7611_s6  ;;  %s7615_s0 = sshll.u32 %s8274_s27, 4  ;;  %s7616_s0 = int_to_ptr.vmem [resolvable:$false] %s7615_s0 }
  0xc0   : > { %s7617_s24 = scalar_lea.vmem %s7616_s0, 512  ;;  %p7618_p6 = scmp.lt.s32.totalorder %s8653_s21, %s7616_s0 }
  0xc1   : > { %p7613_p10 = pnand %p7612_p5, %p10496_p4  ;;  %p7619_p7 = scmp.lt.s32.totalorder %s7617_s24, %s7611_s6 }
  0xc3   : > { %p7614_p9 = pneg %p7613_p10  ;;  %p7620_p1 = por %p7619_p7, %p7618_p6 }
  0xc5   : > { %p7621_p3 = pnand %p7620_p1, %p7614_p9 }
  0xc7   : > { %7624 = shalt.err (!%p7621_p3)
}
  0xc8   : > { %s10417_s1 = smov 64   ;;  %s10419_s17 = smov 4  }
  0xc9   : > { %7116 = dma.hbm_to_vmem [thread:$0]  (%p10496_p4), %s8649_s25, 256, %s8653_s21, %s10416_s23, %s10417_s1, %s10417_s1, %s10419_s17  }
  0xca   : > { %s8683_s22 = sshll.u32 %s8637_s3, 1  ;;  %s8686_s12 = sshll.u32 %s8263_s30, 5 }
  0xcb   : > { %s10497_s0 = sld [smem:[#allocation72_spill]]  ;;  %s757_s2 = scalar_lea.vmem [#allocation9], %s8683_s22 }
  0xcc   : > { %s764_s14 = sshll.u32 %s757_s2, 4  ;;  %s10421_s25 = scalar_lea.sflag [#allocation10], %s8642_s16  ;;  %s8695_s14 = int_to_ptr.vmem [resolvable:$true] %s764_s14 }
  0xd1   : > { %s10498_s24 = smov %s10497_s0  ;;  %s8692_s29 = scalar_lea.hbm %s10497_s0, %s8686_s12 }
  0xd2   : > { %s7625_s21 = scalar_lea.hbm %s8692_s29, 32  ;;  %s7629_s6 = scalar_lea.hbm %s10498_s24, 64 }
  0xd3   : > { %p7626_p13 = scmp.ne.s32.totalorder %s8692_s29, %s7625_s21  ;;  %p7630_p2 = scmp.lt.u32.totalorder %s8692_s29, %s10498_s24 }
  0xd4   : > { %p7631_p11 = scmp.lt.u32.totalorder %s7629_s6, %s7625_s21  ;;  %p7633_p5 = scmp.lt.u32.totalorder %s7625_s21, %s8692_s29 }
  0xd5   : > { %p7627_p12 = pnand %p7626_p13, %p10496_p4 }
  0xd6   : > { %p7632_p0 = por %p7631_p11, %p7630_p2 }
  0xd7   : > { %p7628_p8 = pneg %p7627_p12 }
  0xd8   : > { %p7634_p10 = por %p7633_p5, %p7632_p0 }
  0xda   : > { %p7635_p9 = pnand %p7634_p10, %p7628_p8 }
  0xdc   : > { %7638 = shalt.err (!%p7635_p9)
}
  0xdd   : > { %s7639_s2 = scalar_lea.vmem %s8695_s14, 32  ;;  %s8277_s23 = smov [#allocation9]  }
  0xde   : > { %p7640_p6 = scmp.ne.s32.totalorder %s8695_s14, %s7639_s2  ;;  %s7643_s1 = sshll.u32 %s8277_s23, 4  ;;  %s7644_s1 = int_to_ptr.vmem [resolvable:$false] %s7643_s1 }
  0xdf   : > { %s7645_s27 = scalar_lea.vmem %s7644_s1, 64  ;;  %p7646_p3 = scmp.lt.s32.totalorder %s8695_s14, %s7644_s1 }
  0xe0   : > { %p7641_p7 = pnand %p7640_p6, %p10496_p4  ;;  %p7647_p13 = scmp.lt.s32.totalorder %s7645_s27, %s7639_s2 }
  0xe2   : > { %p7642_p1 = pneg %p7641_p7  ;;  %p7648_p12 = por %p7647_p13, %p7646_p3 }
  0xe4   : > { %p7649_p2 = pnand %p7648_p12, %p7642_p1 }
  0xe6   : > { %7652 = shalt.err (!%p7649_p2)
}
  0xe7   : > { %s10426_s21 = smov 16   ;;  %s10428_s6 = smov 1  }
  0xe8   : > { %7118 = dma.hbm_to_vmem [thread:$0]  (%p10496_p4), %s8692_s29, 32, %s8695_s14, %s10421_s25, %s10426_s21, %s10426_s21, %s10428_s6  }
  0xe9   : > { %s10499_s23 = sld [smem:[#allocation74_spill]]  ;;  %s799_s27 = scalar_lea.vmem [#allocation12], %s8683_s22 }
  0xea   : > { %s806_s17 = sshll.u32 %s799_s27, 4  ;;  %s10425_s18 = scalar_lea.sflag [#allocation13], %s8642_s16  ;;  %s8731_s17 = int_to_ptr.vmem [resolvable:$true] %s806_s17 }
  0xef   : > { %s8728_s1 = scalar_lea.hbm %s10499_s23, %s8686_s12  ;;  %s7657_s0 = scalar_lea.hbm %s10499_s23, 64 }
  0xf0   : > { %s7653_s19 = scalar_lea.hbm %s8728_s1, 32  ;;  %p7658_p5 = scmp.lt.u32.totalorder %s8728_s1, %s10499_s23 }
  0xf1   : > { %p7654_p8 = scmp.ne.s32.totalorder %s8728_s1, %s7653_s19  ;;  %p7659_p10 = scmp.lt.u32.totalorder %s7657_s0, %s7653_s19 }
  0xf2   : > { %p7661_p6 = scmp.lt.u32.totalorder %s7653_s19, %s8728_s1 }
  0xf3   : > { %p7655_p11 = pnand %p7654_p8, %p10496_p4  ;;  %p7660_p9 = por %p7659_p10, %p7658_p5 }
  0xf5   : > { %p7656_p0 = pneg %p7655_p11  ;;  %p7662_p7 = por %p7661_p6, %p7660_p9 }
  0xf7   : > { %p7663_p1 = pnand %p7662_p7, %p7656_p0 }
  0xf9   : > { %7666 = shalt.err (!%p7663_p1)
}
  0xfa   : > { %s7667_s27 = scalar_lea.vmem %s8731_s17, 32  ;;  %s8280_s29 = smov [#allocation12]  }
  0xfb   : > { %p7668_p3 = scmp.ne.s32.totalorder %s8731_s17, %s7667_s27  ;;  %s7671_s14 = sshll.u32 %s8280_s29, 4  ;;  %s7672_s14 = int_to_ptr.vmem [resolvable:$false] %s7671_s14 }
  0xfc   : > { %s7673_s25 = scalar_lea.vmem %s7672_s14, 64  ;;  %p7674_p2 = scmp.lt.s32.totalorder %s8731_s17, %s7672_s14 }
  0xfd   : > { %p7669_p13 = pnand %p7668_p3, %p10496_p4  ;;  %p7675_p8 = scmp.lt.s32.totalorder %s7673_s25, %s7667_s27 }
  0xff   : > { %p7670_p12 = pneg %p7669_p13  ;;  %p7676_p11 = por %p7675_p8, %p7674_p2 }
 0x101   : > { %p7677_p5 = pnand %p7676_p11, %p7670_p12 }
 0x103   : > { %7680 = shalt.err (!%p7677_p5)
}
 0x104   : > { %7120 = dma.hbm_to_vmem [thread:$0]  (%p10496_p4), %s8728_s1, 32, %s8731_s17, %s10425_s18, %s10426_s21, %s10426_s21, %s10428_s6  }
 0x105   : > { %s8761_s19 = sand.u32 1, %s8235_s26   ;;  %s7104_s0 = smul.u32 2304, %s8259_s4 }
 0x106   : > { %s7103_s2 = smul.u32 144, %s8761_s19  ;;  %s10500_s7 = sld [smem:[#allocation76_spill]] }
 0x107   : > { %s7106_s23 = smul.u32 768, %s8259_s4  ;;  %s10501_s9 = sld [smem:[#allocation78_spill]] }
 0x108   : > { %s841_s24 = scalar_lea.vmem [#allocation15], %s7103_s2  ;;  %s10435_s21 = scalar_lea.sflag [#allocation16], %s8642_s16 }
 0x109   : > { %s848_s28 = sshll.u32 %s841_s24, 4  ;;  %p10502_p10 = scmp.ne.s32.totalorder %s10479_s10, 0  ;;  %s8772_s28 = int_to_ptr.vmem [resolvable:$true] %s848_s28 }
 0x10c   : > { %s8768_s14 = scalar_lea.hbm %s10500_s7, %s7104_s0  ;;  %s7685_s29 = scalar_lea.hbm %s10500_s7, 4608 }
 0x10d   : > { %s8777_s18 = scalar_lea.hbm %s10501_s9, %s7106_s23  ;;  %s7681_s6 = scalar_lea.hbm %s8768_s14, 2304 }
 0x10e   : > { %p7682_p0 = scmp.ne.s32.totalorder %s8768_s14, %s7681_s6  ;;  %p7686_p7 = scmp.lt.u32.totalorder %s8768_s14, %s10500_s7 }
 0x10f   : > { %p7687_p1 = scmp.lt.u32.totalorder %s7685_s29, %s7681_s6  ;;  %p7689_p13 = scmp.lt.u32.totalorder %s7681_s6, %s8768_s14 }
 0x110   : > { %p7683_p9 = pnand %p7682_p0, %p10502_p10 }
 0x111   : > { %p7688_p3 = por %p7687_p1, %p7686_p7 }
 0x112   : > { %p7684_p6 = pneg %p7683_p9 }
 0x113   : > { %p7690_p12 = por %p7689_p13, %p7688_p3 }
 0x115   : > { %p7691_p2 = pnand %p7690_p12, %p7684_p6 }
 0x117   : > { %7694 = shalt.err (!%p7691_p2)
}
 0x118   : > { %s7695_s24 = scalar_lea.vmem %s8772_s28, 2304  ;;  %s8281_s23 = smov [#allocation15]  }
 0x119   : > { %p7696_p8 = scmp.ne.s32.totalorder %s8772_s28, %s7695_s24  ;;  %s7699_s17 = sshll.u32 %s8281_s23, 4  ;;  %s7700_s17 = int_to_ptr.vmem [resolvable:$false] %s7699_s17 }
 0x11a   : > { %s7701_s25 = scalar_lea.vmem %s7700_s17, 4608  ;;  %p7702_p0 = scmp.lt.s32.totalorder %s8772_s28, %s7700_s17 }
 0x11b   : > { %p7697_p11 = pnand %p7696_p8, %p10502_p10  ;;  %p7703_p9 = scmp.lt.s32.totalorder %s7701_s25, %s7695_s24 }
 0x11d   : > { %p7698_p5 = pneg %p7697_p11  ;;  %p7704_p7 = por %p7703_p9, %p7702_p0 }
 0x11f   : > { %p7705_p1 = pnand %p7704_p7, %p7698_p5 }
 0x121   : > { %7708 = shalt.err (!%p7705_p1)
}
 0x122   : > { %s10503_s6 = smov 4   ;;  %s10504_s1 = smov 64  }
 0x123   : > { %7122 = dma.hbm_to_vmem [thread:$0]  (%p10502_p10), %s8768_s14, 2304, %s8772_s28, %s10435_s21, %s10504_s1, %s10504_s1, %s10503_s6  }
 0x124   : > { %s10505_s0 = smul.u32 48, %s8761_s19  ;;  %s6264_s2 = sshll.u32 %s8761_s19, 3 }
 0x125   : > { %s10434_s24 = scalar_lea.sflag [#allocation19], %s8642_s16  ;;  %s7709_s23 = scalar_lea.hbm %s8777_s18, 768 }
 0x126   : > { %s883_s27 = scalar_lea.vmem [#allocation18], %s10505_s0  ;;  %p7710_p6 = scmp.ne.s32.totalorder %s8777_s18, %s7709_s23 }
 0x127   : > { %s890_s29 = sshll.u32 %s883_s27, 4  ;;  %s7713_s7 = scalar_lea.hbm %s10501_s9, 1536  ;;  %s8808_s29 = int_to_ptr.vmem [resolvable:$true] %s890_s29 }
 0x128   : > { %p7711_p3 = pnand %p7710_p6, %p10502_p10  ;;  %p7714_p12 = scmp.lt.u32.totalorder %s8777_s18, %s10501_s9 }
 0x129   : > { %p7715_p2 = scmp.lt.u32.totalorder %s7713_s7, %s7709_s23  ;;  %p7717_p11 = scmp.lt.u32.totalorder %s7709_s23, %s8777_s18 }
 0x12a   : > { %p7712_p13 = pneg %p7711_p3 }
 0x12b   : > { %p7716_p8 = por %p7715_p2, %p7714_p12 }
 0x12d   : > { %p7718_p5 = por %p7717_p11, %p7716_p8 }
 0x12f   : > { %p7719_p0 = pnand %p7718_p5, %p7712_p13 }
 0x131   : > { %7722 = shalt.err (!%p7719_p0)
}
 0x132   : > { %s7723_s28 = scalar_lea.vmem %s8808_s29, 768  ;;  %s8282_s14 = smov [#allocation18]  }
 0x133   : > { %p7724_p9 = scmp.ne.s32.totalorder %s8808_s29, %s7723_s28  ;;  %s7727_s0 = sshll.u32 %s8282_s14, 4  ;;  %s7728_s0 = int_to_ptr.vmem [resolvable:$false] %s7727_s0 }
 0x134   : > { %s7729_s26 = scalar_lea.vmem %s7728_s0, 1536  ;;  %p7730_p6 = scmp.lt.s32.totalorder %s8808_s29, %s7728_s0 }
 0x135   : > { %p7725_p7 = pnand %p7724_p9, %p10502_p10  ;;  %p7731_p3 = scmp.lt.s32.totalorder %s7729_s26, %s7723_s28 }
 0x137   : > { %p7726_p1 = pneg %p7725_p7  ;;  %p7732_p12 = por %p7731_p3, %p7730_p6 }
 0x139   : > { %p7733_p2 = pnand %p7732_p12, %p7726_p1 }
 0x13b   : > { %7736 = shalt.err (!%p7733_p2)
}
 0x13c   : > { %7124 = dma.hbm_to_vmem [thread:$0]  (%p10502_p10), %s8777_s18, 768, %s8808_s29, %s10434_s24, %s10504_s1, %s10504_s1, %s10503_s6  }
 0x13d   : > { %s6265_s7 = sshll.u32 %s8259_s4, 7  ;;  %s10506_s11 = sld [smem:[#allocation80_spill]] }
 0x13e   : > { %s922_s17 = scalar_lea.vmem [#allocation21], %s6264_s2  ;;  %s6258_s28 = sshll.u32 %s8761_s19, 4 }
 0x13f   : > { %s929_s25 = sshll.u32 %s922_s17, 4  ;;  %s10433_s14 = scalar_lea.sflag [#allocation22], %s8642_s16  ;;  %s8846_s25 = int_to_ptr.vmem [resolvable:$true] %s929_s25 }
 0x143   : > { %s8842_s23 = scalar_lea.hbm %s10506_s11, %s6265_s7  ;;  %s7741_s26 = scalar_lea.hbm %s10506_s11, 256 }
 0x144   : > { %s7737_s0 = scalar_lea.hbm %s8842_s23, 128  ;;  %p7742_p5 = scmp.lt.u32.totalorder %s8842_s23, %s10506_s11 }
 0x145   : > { %p7738_p13 = scmp.ne.s32.totalorder %s8842_s23, %s7737_s0  ;;  %p7743_p0 = scmp.lt.u32.totalorder %s7741_s26, %s7737_s0 }
 0x146   : > { %p7745_p7 = scmp.lt.u32.totalorder %s7737_s0, %s8842_s23 }
 0x147   : > { %p7739_p8 = pnand %p7738_p13, %p10502_p10  ;;  %p7744_p9 = por %p7743_p0, %p7742_p5 }
 0x149   : > { %p7740_p11 = pneg %p7739_p8  ;;  %p7746_p1 = por %p7745_p7, %p7744_p9 }
 0x14b   : > { %p7747_p6 = pnand %p7746_p1, %p7740_p11 }
 0x14d   : > { %7750 = shalt.err (!%p7747_p6)
}
 0x14e   : > { %s7751_s2 = scalar_lea.vmem %s8846_s25, 128  ;;  %s8283_s27 = smov [#allocation21]  }
 0x14f   : > { %p7752_p3 = scmp.ne.s32.totalorder %s8846_s25, %s7751_s2  ;;  %s7755_s17 = sshll.u32 %s8283_s27, 4  ;;  %s7756_s17 = int_to_ptr.vmem [resolvable:$false] %s7755_s17 }
 0x150   : > { %s7757_s18 = scalar_lea.vmem %s7756_s17, 256  ;;  %p7758_p13 = scmp.lt.s32.totalorder %s8846_s25, %s7756_s17 }
 0x151   : > { %p7753_p12 = pnand %p7752_p3, %p10502_p10  ;;  %p7759_p8 = scmp.lt.s32.totalorder %s7757_s18, %s7751_s2 }
 0x153   : > { %p7754_p2 = pneg %p7753_p12  ;;  %p7760_p5 = por %p7759_p8, %p7758_p13 }
 0x155   : > { %p7761_p0 = pnand %p7760_p5, %p7754_p2 }
 0x157   : > { %7764 = shalt.err (!%p7761_p0)
}
 0x158   : > { %7126 = dma.hbm_to_vmem [thread:$0]  (%p10502_p10), %s8842_s23, 128, %s8846_s25, %s10433_s14  }
 0x159   : > { %s6497_s0 = sshll.u32 %s8259_s4, 8  ;;  %s10507_s8 = sld [smem:[#allocation77_spill]] }
 0x15a   : > { %s8881_s5 = scalar_lea.vmem [#allocation17], %s6258_s28  ;;  %s8887_s18 = scalar_lea.hbm %s10366_s13, %s6497_s0 }
 0x15b   : > { %s958_s23 = scalar_lea.vmem [#allocation24], %s6258_s28  ;;  %s10436_s29 = scalar_lea.sflag [#allocation25], %s8642_s16 }
 0x15c   : > { %s965_s25 = sshll.u32 %s958_s23, 4  ;;  %s7765_s26 = scalar_lea.hbm %s8887_s18, 256  ;;  %s8891_s25 = int_to_ptr.vmem [resolvable:$true] %s965_s25 }
 0x15d   : > { %p7766_p11 = scmp.ne.s32.totalorder %s8887_s18, %s7765_s26  ;;  %p7770_p1 = scmp.lt.u32.totalorder %s8887_s18, %s10366_s13 }
 0x15e   : > { %p7773_p12 = scmp.lt.u32.totalorder %s7765_s26, %s8887_s18 }
 0x15f   : > { %s8877_s7 = scalar_lea.hbm %s10507_s8, %s6497_s0  ;;  %p7767_p9 = pnand %p7766_p11, %p10502_p10 }
 0x160   : > { %s7769_s0 = scalar_lea.hbm %s10366_s13, 512 }
 0x161   : > { %p7768_p7 = pneg %p7767_p9  ;;  %p7771_p6 = scmp.lt.u32.totalorder %s7769_s0, %s7765_s26 }
 0x163   : > { %p7772_p3 = por %p7771_p6, %p7770_p1 }
 0x165   : > { %p7774_p2 = por %p7773_p12, %p7772_p3 }
 0x167   : > { %p7775_p13 = pnand %p7774_p2, %p7768_p7 }
 0x169   : > { %7778 = shalt.err (!%p7775_p13)
}
 0x16a   : > { %s7779_s28 = scalar_lea.vmem %s8891_s25, 256  ;;  %s8284_s24 = smov [#allocation24]  }
 0x16b   : > { %p7780_p8 = scmp.ne.s32.totalorder %s8891_s25, %s7779_s28  ;;  %s7783_s14 = sshll.u32 %s8284_s24, 4  ;;  %s7784_s14 = int_to_ptr.vmem [resolvable:$false] %s7783_s14 }
 0x16c   : > { %s7785_s23 = scalar_lea.vmem %s7784_s14, 512  ;;  %p7786_p11 = scmp.lt.s32.totalorder %s8891_s25, %s7784_s14 }
 0x16d   : > { %p7781_p5 = pnand %p7780_p8, %p10502_p10  ;;  %p7787_p9 = scmp.lt.s32.totalorder %s7785_s23, %s7779_s28 }
 0x16f   : > { %p7782_p0 = pneg %p7781_p5  ;;  %p7788_p1 = por %p7787_p9, %p7786_p11 }
 0x171   : > { %p7789_p6 = pnand %p7788_p1, %p7782_p0 }
 0x173   : > { %7792 = shalt.err (!%p7789_p6)
}
 0x174   : > { %7128 = dma.hbm_to_vmem [thread:$0]  (%p10502_p10), %s8887_s18, 256, %s8891_s25, %s10436_s29, %s10504_s1, %s10504_s1, %s10503_s6  }
 0x175   : > { %s6272_s26 = sshll.u32 %s8761_s19, 5  ;;  %s6499_s0 = sshll.u32 %s8259_s4, 9 }
 0x176   : > { %s8925_s28 = scalar_lea.hbm %s10368_s15, %s6499_s0  ;;  %s996_s24 = scalar_lea.vmem [#allocation27], %s6272_s26 }
 0x177   : > { %s1003_s14 = sshll.u32 %s996_s24, 4  ;;  %s10437_s23 = scalar_lea.sflag [#allocation28], %s8642_s16  ;;  %s8927_s14 = int_to_ptr.vmem [resolvable:$true] %s1003_s14 }
 0x178   : > { %s7793_s21 = scalar_lea.hbm %s8925_s28, 512  ;;  %s7797_s27 = scalar_lea.hbm %s10368_s15, 1024 }
 0x179   : > { %p7794_p7 = scmp.ne.s32.totalorder %s8925_s28, %s7793_s21  ;;  %p7798_p2 = scmp.lt.u32.totalorder %s8925_s28, %s10368_s15 }
 0x17a   : > { %p7799_p13 = scmp.lt.u32.totalorder %s7797_s27, %s7793_s21  ;;  %p7801_p5 = scmp.lt.u32.totalorder %s7793_s21, %s8925_s28 }
 0x17b   : > { %p7795_p3 = pnand %p7794_p7, %p10502_p10 }
 0x17c   : > { %p7800_p8 = por %p7799_p13, %p7798_p2 }
 0x17d   : > { %p7796_p12 = pneg %p7795_p3 }
 0x17e   : > { %p7802_p0 = por %p7801_p5, %p7800_p8 }
 0x180   : > { %p7803_p11 = pnand %p7802_p0, %p7796_p12 }
 0x182   : > { %7806 = shalt.err (!%p7803_p11)
}
 0x183   : > { %s7807_s26 = scalar_lea.vmem %s8927_s14, 512  ;;  %s8285_s24 = smov [#allocation27]  }
 0x184   : > { %p7808_p9 = scmp.ne.s32.totalorder %s8927_s14, %s7807_s26  ;;  %s7811_s18 = sshll.u32 %s8285_s24, 4  ;;  %s7812_s18 = int_to_ptr.vmem [resolvable:$false] %s7811_s18 }
 0x185   : > { %s7813_s25 = scalar_lea.vmem %s7812_s18, 1024  ;;  %p7814_p7 = scmp.lt.s32.totalorder %s8927_s14, %s7812_s18 }
 0x186   : > { %p7809_p1 = pnand %p7808_p9, %p10502_p10  ;;  %p7815_p3 = scmp.lt.s32.totalorder %s7813_s25, %s7807_s26 }
 0x188   : > { %p7810_p6 = pneg %p7809_p1  ;;  %p7816_p2 = por %p7815_p3, %p7814_p7 }
 0x18a   : > { %p7817_p13 = pnand %p7816_p2, %p7810_p6 }
 0x18c   : > { %7820 = shalt.err (!%p7817_p13)
}
 0x18d   : > { %7130 = dma.hbm_to_vmem [thread:$0]  (%p10502_p10), %s8925_s28, 512, %s8927_s14, %s10437_s23, %s10504_s1, %s10504_s1, %s10503_s6  }
 0x18e   : > { %s10508_s21 = sshll.u32 %s8263_s30, 8  ;;  %s10509_s17 = sld [smem:[#allocation69_spill]] }
 0x18f   : > { %s10510_s24 = sshll.u32 %s8637_s3, 4  ;;  %s6242_s29 = sshll.u32 %s8637_s3, 3 }
 0x190   : > { %s693_s18 = scalar_lea.vmem [#allocation3], %s10510_s24  ;;  %s690_s2 = scalar_lea.sflag [#allocation4], %s8637_s3 }
 0x191   : > { %s700_s25 = sshll.u32 %s693_s18, 4  ;;  %s8965_s25 = int_to_ptr.vmem [resolvable:$true] %s700_s25 }
 0x194   : > { %s8961_s26 = scalar_lea.hbm %s10509_s17, %s10508_s21  ;;  %s7825_s21 = scalar_lea.hbm %s10509_s17, 512 }
 0x195   : > { %s7821_s9 = scalar_lea.hbm %s8961_s26, 256  ;;  %p7826_p0 = scmp.lt.u32.totalorder %s8961_s26, %s10509_s17 }
 0x196   : > { %p7822_p12 = scmp.ne.s32.totalorder %s8961_s26, %s7821_s9  ;;  %p7827_p11 = scmp.lt.u32.totalorder %s7825_s21, %s7821_s9 }
 0x197   : > { %p7829_p1 = scmp.lt.u32.totalorder %s7821_s9, %s8961_s26 }
 0x198   : > { %p7823_p8 = pnand %p7822_p12, %p10496_p4  ;;  %p7828_p9 = por %p7827_p11, %p7826_p0 }
 0x19a   : > { %p7824_p5 = pneg %p7823_p8  ;;  %p7830_p6 = por %p7829_p1, %p7828_p9 }
 0x19c   : > { %p7831_p7 = pnand %p7830_p6, %p7824_p5 }
 0x19e   : > { %7834 = shalt.err (!%p7831_p7)
}
 0x19f   : > { %s7835_s24 = scalar_lea.vmem %s8965_s25, 256  ;;  %s8286_s18 = smov [#allocation3]  }
 0x1a0   : > { %p7836_p3 = scmp.ne.s32.totalorder %s8965_s25, %s7835_s24  ;;  %s7839_s28 = sshll.u32 %s8286_s18, 4  ;;  %s7840_s28 = int_to_ptr.vmem [resolvable:$false] %s7839_s28 }
 0x1a1   : > { %s7841_s14 = scalar_lea.vmem %s7840_s28, 512  ;;  %p7842_p12 = scmp.lt.s32.totalorder %s8965_s25, %s7840_s28 }
 0x1a2   : > { %p7837_p2 = pnand %p7836_p3, %p10496_p4  ;;  %p7843_p8 = scmp.lt.s32.totalorder %s7841_s14, %s7835_s24 }
 0x1a4   : > { %p7838_p13 = pneg %p7837_p2  ;;  %p7844_p0 = por %p7843_p8, %p7842_p12 }
 0x1a6   : > { %p7845_p11 = pnand %p7844_p0, %p7838_p13 }
 0x1a8   : > { %7848 = shalt.err (!%p7845_p11)
}
 0x1a9   : > { %s8287_s9 = smov 128   ;;  %s8288_s21 = smov 8  }
 0x1aa   : > { %7115 = dma.hbm_to_vmem [thread:$0]  (%p10496_p4), %s8961_s26, 256, %s8965_s25, %s690_s2, %s8287_s9, %s8287_s9, %s8288_s21  }
 0x1ab   : > { %s6492_s27 = sshll.u32 %s8263_s30, 7  ;;  %s10511_s18 = sld [smem:[#allocation71_spill]] }
 0x1ac   : > { %s736_s14 = scalar_lea.vmem [#allocation8], %s6242_s29 }
 0x1ad   : > { %s743_s23 = sshll.u32 %s736_s14, 4  ;;  %s9003_s23 = int_to_ptr.vmem [resolvable:$true] %s743_s23 }
 0x1b1   : > { %s8999_s28 = scalar_lea.hbm %s10511_s18, %s6492_s27  ;;  %s7853_s25 = scalar_lea.hbm %s10511_s18, 256 }
 0x1b2   : > { %s7849_s11 = scalar_lea.hbm %s8999_s28, 128  ;;  %p7854_p6 = scmp.lt.u32.totalorder %s8999_s28, %s10511_s18 }
 0x1b3   : > { %p7850_p5 = scmp.ne.s32.totalorder %s8999_s28, %s7849_s11  ;;  %p7855_p7 = scmp.lt.u32.totalorder %s7853_s25, %s7849_s11 }
 0x1b4   : > { %p7857_p2 = scmp.lt.u32.totalorder %s7849_s11, %s8999_s28 }
 0x1b5   : > { %p7851_p9 = pnand %p7850_p5, %p10496_p4  ;;  %p7856_p3 = por %p7855_p7, %p7854_p6 }
 0x1b7   : > { %p7852_p1 = pneg %p7851_p9  ;;  %p7858_p13 = por %p7857_p2, %p7856_p3 }
 0x1b9   : > { %p7859_p12 = pnand %p7858_p13, %p7852_p1 }
 0x1bb   : > { %7862 = shalt.err (!%p7859_p12)
}
 0x1bc   : > { %s7863_s3 = scalar_lea.vmem %s9003_s23, 128  ;;  %s8289_s29 = smov [#allocation8]  }
 0x1bd   : > { %p7864_p8 = scmp.ne.s32.totalorder %s9003_s23, %s7863_s3  ;;  %s7867_s24 = sshll.u32 %s8289_s29, 4  ;;  %s7868_s24 = int_to_ptr.vmem [resolvable:$false] %s7867_s24 }
 0x1be   : > { %s7869_s14 = scalar_lea.vmem %s7868_s24, 256  ;;  %p7870_p5 = scmp.lt.s32.totalorder %s9003_s23, %s7868_s24 }
 0x1bf   : > { %p7865_p0 = pnand %p7864_p8, %p10496_p4  ;;  %p7871_p9 = scmp.lt.s32.totalorder %s7869_s14, %s7863_s3 }
 0x1c1   : > { %p7866_p11 = pneg %p7865_p0  ;;  %p7872_p6 = por %p7871_p9, %p7870_p5 }
 0x1c3   : > { %p7873_p7 = pnand %p7872_p6, %p7866_p11 }
 0x1c5   : > { %7876 = shalt.err (!%p7873_p7)
}
 0x1c6   : > { %s10512_s11 = scalar_lea.sflag [#allocation7], %s8642_s16  ;;  %s10513_s25 = sld [smem:[#allocation73_spill]] }
 0x1c7   : > { %7117 = dma.hbm_to_vmem [thread:$0]  (%p10496_p4), %s8999_s28, 128, %s9003_s23, %s10512_s11, %s10504_s1, %s10504_s1, %s10503_s6  }
 0x1c8   : > { %s778_s0 = scalar_lea.vmem [#allocation11], %s8683_s22 }
 0x1c9   : > { %s785_s3 = sshll.u32 %s778_s0, 4  ;;  %s9038_s3 = int_to_ptr.vmem [resolvable:$true] %s785_s3 }
 0x1cc   : > { %s10514_s24 = smov %s10513_s25  ;;  %s9035_s27 = scalar_lea.hbm %s10513_s25, %s8686_s12 }
 0x1cd   : > { %s7877_s29 = scalar_lea.hbm %s9035_s27, 32  ;;  %s7881_s1 = scalar_lea.hbm %s10514_s24, 64 }
 0x1ce   : > { %p7878_p1 = scmp.ne.s32.totalorder %s9035_s27, %s7877_s29  ;;  %p7882_p13 = scmp.lt.u32.totalorder %s9035_s27, %s10514_s24 }
 0x1cf   : > { %p7883_p12 = scmp.lt.u32.totalorder %s7881_s1, %s7877_s29  ;;  %p7885_p0 = scmp.lt.u32.totalorder %s7877_s29, %s9035_s27 }
 0x1d0   : > { %p7879_p3 = pnand %p7878_p1, %p10496_p4 }
 0x1d1   : > { %p7884_p8 = por %p7883_p12, %p7882_p13 }
 0x1d2   : > { %p7880_p2 = pneg %p7879_p3 }
 0x1d3   : > { %p7886_p11 = por %p7885_p0, %p7884_p8 }
 0x1d5   : > { %p7887_p5 = pnand %p7886_p11, %p7880_p2 }
 0x1d7   : > { %7890 = shalt.err (!%p7887_p5)
}
 0x1d8   : > { %s7891_s11 = scalar_lea.vmem %s9038_s3, 32  ;;  %s8290_s2 = smov [#allocation11]  }
 0x1d9   : > { %p7892_p9 = scmp.ne.s32.totalorder %s9038_s3, %s7891_s11  ;;  %s7895_s26 = sshll.u32 %s8290_s2, 4  ;;  %s7896_s26 = int_to_ptr.vmem [resolvable:$false] %s7895_s26 }
 0x1da   : > { %s7897_s25 = scalar_lea.vmem %s7896_s26, 64  ;;  %p7898_p1 = scmp.lt.s32.totalorder %s9038_s3, %s7896_s26 }
 0x1db   : > { %p7893_p6 = pnand %p7892_p9, %p10496_p4  ;;  %p7899_p3 = scmp.lt.s32.totalorder %s7897_s25, %s7891_s11 }
 0x1dd   : > { %p7894_p7 = pneg %p7893_p6  ;;  %p7900_p13 = por %p7899_p3, %p7898_p1 }
 0x1df   : > { %p7901_p12 = pnand %p7900_p13, %p7894_p7 }
 0x1e1   : > { %7904 = shalt.err (!%p7901_p12)
}
 0x1e2   : > { %s10515_s0 = smov 1   ;;  %s10516_s29 = smov 16  }
 0x1e3   : > { %s10517_s14 = scalar_lea.sflag [#allocation10], %s8642_s16  ;;  %s10518_s23 = sld [smem:[#allocation75_spill]] }
 0x1e4   : > { %7119 = dma.hbm_to_vmem [thread:$0]  (%p10496_p4), %s9035_s27, 32, %s9038_s3, %s10517_s14, %s10516_s29, %s10516_s29, %s10515_s0  }
 0x1e5   : > { %s820_s11 = scalar_lea.vmem [#allocation14], %s8683_s22  ;;  %s10519_s26 = sshll.u32 %s8881_s5, 4  ;;  %s9077_s26 = int_to_ptr.vmem [resolvable:$true] %s10519_s26 }
 0x1e6   : > { %s827_s2 = sshll.u32 %s820_s11, 4  ;;  %s9073_s2 = int_to_ptr.vmem [resolvable:$true] %s827_s2 }
 0x1e9   : > { %s9070_s28 = scalar_lea.hbm %s10518_s23, %s8686_s12  ;;  %s7909_s12 = scalar_lea.hbm %s10518_s23, 64 }
 0x1ea   : > { %s7905_s25 = scalar_lea.hbm %s9070_s28, 32  ;;  %p7910_p11 = scmp.lt.u32.totalorder %s9070_s28, %s10518_s23 }
 0x1eb   : > { %p7906_p2 = scmp.ne.s32.totalorder %s9070_s28, %s7905_s25  ;;  %p7911_p5 = scmp.lt.u32.totalorder %s7909_s12, %s7905_s25 }
 0x1ec   : > { %p7913_p6 = scmp.lt.u32.totalorder %s7905_s25, %s9070_s28 }
 0x1ed   : > { %p7907_p8 = pnand %p7906_p2, %p10496_p4  ;;  %p7912_p9 = por %p7911_p5, %p7910_p11 }
 0x1ef   : > { %p7908_p0 = pneg %p7907_p8  ;;  %p7914_p7 = por %p7913_p6, %p7912_p9 }
 0x1f1   : > { %p7915_p1 = pnand %p7914_p7, %p7908_p0 }
 0x1f3   : > { %7918 = shalt.err (!%p7915_p1)
}
 0x1f4   : > { %s7919_s22 = scalar_lea.vmem %s9073_s2, 32  ;;  %s8291_s5 = smov [#allocation14]  }
 0x1f5   : > { %p7920_p3 = scmp.ne.s32.totalorder %s9073_s2, %s7919_s22  ;;  %s7923_s1 = sshll.u32 %s8291_s5, 4  ;;  %s7924_s1 = int_to_ptr.vmem [resolvable:$false] %s7923_s1 }
 0x1f6   : > { %s7925_s11 = scalar_lea.vmem %s7924_s1, 64  ;;  %p7926_p2 = scmp.lt.s32.totalorder %s9073_s2, %s7924_s1 }
 0x1f7   : > { %p7921_p13 = pnand %p7920_p3, %p10496_p4  ;;  %p7927_p8 = scmp.lt.s32.totalorder %s7925_s11, %s7919_s22 }
 0x1f9   : > { %p7922_p12 = pneg %p7921_p13  ;;  %p7928_p11 = por %p7927_p8, %p7926_p2 }
 0x1fb   : > { %p7929_p5 = pnand %p7928_p11, %p7922_p12 }
 0x1fd   : > { %7932 = shalt.err (!%p7929_p5)
}
 0x1fe   : > { %s10520_s25 = scalar_lea.sflag [#allocation13], %s8642_s16  ;;  %s7933_s27 = scalar_lea.hbm %s8877_s7, 256 }
 0x1ff   : > { %7121 = dma.hbm_to_vmem [thread:$0]  (%p10496_p4), %s9070_s28, 32, %s9073_s2, %s10520_s25, %s10516_s29, %s10516_s29, %s10515_s0  }
 0x200   : > { %p7934_p0 = scmp.ne.s32.totalorder %s8877_s7, %s7933_s27  ;;  %s7937_s12 = scalar_lea.hbm %s10507_s8, 512 }
 0x201   : > { %p7938_p7 = scmp.lt.u32.totalorder %s8877_s7, %s10507_s8  ;;  %p7939_p1 = scmp.lt.u32.totalorder %s7937_s12, %s7933_s27 }
 0x202   : > { %p7935_p9 = pnand %p7934_p0, %p10502_p10  ;;  %p7941_p13 = scmp.lt.u32.totalorder %s7933_s27, %s8877_s7 }
 0x203   : > { %p7940_p3 = por %p7939_p1, %p7938_p7 }
 0x204   : > { %p7936_p6 = pneg %p7935_p9 }
 0x205   : > { %p7942_p12 = por %p7941_p13, %p7940_p3 }
 0x207   : > { %p7943_p2 = pnand %p7942_p12, %p7936_p6 }
 0x209   : > { %7946 = shalt.err (!%p7943_p2)
}
 0x20a   : > { %s7947_s0 = scalar_lea.vmem %s9077_s26, 256  ;;  %s8292_s29 = smov [#allocation17]  }
 0x20b   : > { %p7948_p4 = scmp.ne.s32.totalorder %s9077_s26, %s7947_s0  ;;  %s7951_s28 = sshll.u32 %s8292_s29, 4  ;;  %s7952_s28 = int_to_ptr.vmem [resolvable:$false] %s7951_s28 }
 0x20c   : > { %s7953_s2 = scalar_lea.vmem %s7952_s28, 512  ;;  %p7954_p5 = scmp.lt.s32.totalorder %s9077_s26, %s7952_s28 }
 0x20d   : > { %p7949_p8 = pnand %p7948_p4, %p10502_p10  ;;  %p7955_p0 = scmp.lt.s32.totalorder %s7953_s2, %s7947_s0 }
 0x20f   : > { %p7950_p11 = pneg %p7949_p8  ;;  %p7956_p9 = por %p7955_p0, %p7954_p5 }
 0x211   : > { %p7957_p7 = pnand %p7956_p9, %p7950_p11 }
 0x213   : > { %7960 = shalt.err (!%p7957_p7)
}
 0x214   : > { %s10521_s22 = scalar_lea.sflag [#allocation16], %s8642_s16  ;;  %s6262_s5 = sshll.u32 %s8761_s19, 2 }
 0x215   : > { %7123 = dma.hbm_to_vmem [thread:$0]  (%p10502_p10), %s8877_s7, 256, %s9077_s26, %s10521_s22, %s8287_s9, %s8287_s9, %s8288_s21  }
 0x216   : > { %s6263_s1 = sshll.u32 %s8259_s4, 6  ;;  %s10522_s27 = sld [smem:[#allocation79_spill]] }
 0x217   : > { %s904_s12 = scalar_lea.vmem [#allocation20], %s6262_s5  ;;  %s10524_s29 = sld [smem:[#allocation81_spill]] }
 0x218   : > { %s911_s14 = sshll.u32 %s904_s12, 4  ;;  %s912_s14 = int_to_ptr.vmem [resolvable:$true] %s911_s14 }
 0x21c   : > { %s10523_s20 = smov %s10522_s27  ;;  %s9136_s3 = scalar_lea.hbm %s10522_s27, %s6263_s1 }
 0x21d   : > { %s10525_s8 = smov %s10524_s29  ;;  %s9143_s28 = scalar_lea.hbm %s10524_s29, %s6263_s1 }
 0x21e   : > { %s7961_s7 = scalar_lea.hbm %s9136_s3, 64  ;;  %s7965_s26 = scalar_lea.hbm %s10523_s20, 128 }
 0x21f   : > { %p7962_p6 = scmp.ne.s32.totalorder %s9136_s3, %s7961_s7  ;;  %p7966_p13 = scmp.lt.u32.totalorder %s9136_s3, %s10523_s20 }
 0x220   : > { %p7967_p12 = scmp.lt.u32.totalorder %s7965_s26, %s7961_s7  ;;  %p7969_p4 = scmp.lt.u32.totalorder %s7961_s7, %s9136_s3 }
 0x221   : > { %p7963_p1 = pnand %p7962_p6, %p10502_p10 }
 0x222   : > { %p7968_p2 = por %p7967_p12, %p7966_p13 }
 0x223   : > { %p7964_p3 = pneg %p7963_p1 }
 0x224   : > { %p7970_p8 = por %p7969_p4, %p7968_p2 }
 0x226   : > { %p7971_p11 = pnand %p7970_p8, %p7964_p3 }
 0x228   : > { %7974 = shalt.err (!%p7971_p11)
}
 0x229   : > { %s7975_s1 = scalar_lea.vmem %s912_s14, 64  ;;  %s8293_s11 = smov [#allocation20]  }
 0x22a   : > { %p7976_p5 = scmp.ne.s32.totalorder %s912_s14, %s7975_s1  ;;  %s7979_s25 = sshll.u32 %s8293_s11, 4  ;;  %s7980_s25 = int_to_ptr.vmem [resolvable:$false] %s7979_s25 }
 0x22b   : > { %s7981_s27 = scalar_lea.vmem %s7980_s25, 128  ;;  %p7982_p7 = scmp.lt.s32.totalorder %s912_s14, %s7980_s25 }
 0x22c   : > { %p7977_p0 = pnand %p7976_p5, %p10502_p10  ;;  %p7983_p6 = scmp.lt.s32.totalorder %s7981_s27, %s7975_s1 }
 0x22e   : > { %p7978_p9 = pneg %p7977_p0  ;;  %p7984_p1 = por %p7983_p6, %p7982_p7 }
 0x230   : > { %p7985_p12 = pnand %p7984_p1, %p7978_p9 }
 0x232   : > { %7988 = shalt.err (!%p7985_p12)
}
 0x233   : > { %s10526_s12 = scalar_lea.sflag [#allocation19], %s8642_s16  ;;  %s940_s6 = scalar_lea.vmem [#allocation23], %s6262_s5 }
 0x234   : > { %7125 = dma.hbm_to_vmem [thread:$0]  (%p10502_p10), %s9136_s3, 64, %s912_s14, %s10526_s12  }
 0x235   : > { %s947_s0 = sshll.u32 %s940_s6, 4  ;;  %s6271_s29 = sshll.u32 %s8259_s4, 4  ;;  %s948_s0 = int_to_ptr.vmem [resolvable:$true] %s947_s0 }
 0x236   : > { %s7989_s7 = scalar_lea.hbm %s9143_s28, 64  ;;  %s7993_s26 = scalar_lea.hbm %s10525_s8, 128 }
 0x237   : > { %p7990_p3 = scmp.ne.s32.totalorder %s9143_s28, %s7989_s7  ;;  %p7994_p4 = scmp.lt.u32.totalorder %s9143_s28, %s10525_s8 }
 0x238   : > { %p7995_p8 = scmp.lt.u32.totalorder %s7993_s26, %s7989_s7  ;;  %p7997_p5 = scmp.lt.u32.totalorder %s7989_s7, %s9143_s28 }
 0x239   : > { %p7991_p13 = pnand %p7990_p3, %p10502_p10 }
 0x23a   : > { %p7996_p11 = por %p7995_p8, %p7994_p4 }
 0x23b   : > { %p7992_p2 = pneg %p7991_p13 }
 0x23c   : > { %p7998_p0 = por %p7997_p5, %p7996_p11 }
 0x23e   : > { %p7999_p9 = pnand %p7998_p0, %p7992_p2 }
 0x240   : > { %8002 = shalt.err (!%p7999_p9)
}
 0x241   : > { %s8003_s5 = scalar_lea.vmem %s948_s0, 64  ;;  %s8294_s3 = smov [#allocation23]  }
 0x242   : > { %p8004_p7 = scmp.ne.s32.totalorder %s948_s0, %s8003_s5  ;;  %s8007_s14 = sshll.u32 %s8294_s3, 4  ;;  %s8008_s14 = int_to_ptr.vmem [resolvable:$false] %s8007_s14 }
 0x243   : > { %s8009_s1 = scalar_lea.vmem %s8008_s14, 128  ;;  %p8010_p12 = scmp.lt.s32.totalorder %s948_s0, %s8008_s14 }
 0x244   : > { %p8005_p6 = pnand %p8004_p7, %p10502_p10  ;;  %p8011_p3 = scmp.lt.s32.totalorder %s8009_s1, %s8003_s5 }
 0x246   : > { %p8006_p1 = pneg %p8005_p6  ;;  %p8012_p13 = por %p8011_p3, %p8010_p12 }
 0x248   : > { %p8013_p4 = pnand %p8012_p13, %p8006_p1 }
 0x24a   : > { %8016 = shalt.err (!%p8013_p4)
}
 0x24b   : > { %s10527_s11 = scalar_lea.sflag [#allocation22], %s8642_s16  ;;  %s10528_s12 = sld [smem:[#allocation82_spill]] }
 0x24c   : > { %7127 = dma.hbm_to_vmem [thread:$0]  (%p10502_p10), %s9143_s28, 64, %s948_s0, %s10527_s11  }
 0x24d   : > { %s978_s7 = scalar_lea.vmem [#allocation26], %s8761_s19 }
 0x24e   : > { %s985_s9 = sshll.u32 %s978_s7, 4  ;;  %s986_s9 = int_to_ptr.vmem [resolvable:$true] %s985_s9 }
 0x251   : > { %s9191_s6 = scalar_lea.hbm %s10528_s12, %s6271_s29  ;;  %s8021_s0 = scalar_lea.hbm %s10528_s12, 32 }
 0x252   : > { %s8017_s21 = scalar_lea.hbm %s9191_s6, 16  ;;  %p8022_p5 = scmp.lt.u32.totalorder %s9191_s6, %s10528_s12 }
 0x253   : > { %p8018_p2 = scmp.ne.s32.totalorder %s9191_s6, %s8017_s21  ;;  %p8023_p0 = scmp.lt.u32.totalorder %s8021_s0, %s8017_s21 }
 0x254   : > { %p8025_p7 = scmp.lt.u32.totalorder %s8017_s21, %s9191_s6 }
 0x255   : > { %p8019_p8 = pnand %p8018_p2, %p10502_p10  ;;  %p8024_p9 = por %p8023_p0, %p8022_p5 }
 0x257   : > { %p8020_p11 = pneg %p8019_p8  ;;  %p8026_p6 = por %p8025_p7, %p8024_p9 }
 0x259   : > { %p8027_p1 = pnand %p8026_p6, %p8020_p11 }
 0x25b   : > { %8030 = shalt.err (!%p8027_p1)
}
 0x25c   : > { %s8031_s5 = scalar_lea.vmem %s986_s9, 16  ;;  %s8295_s3 = smov [#allocation26]  }
 0x25d   : > { %p8032_p12 = scmp.ne.s32.totalorder %s986_s9, %s8031_s5  ;;  %s8035_s14 = sshll.u32 %s8295_s3, 4  ;;  %s8036_s14 = int_to_ptr.vmem [resolvable:$false] %s8035_s14 }
 0x25e   : > { %s8037_s1 = scalar_lea.vmem %s8036_s14, 32  ;;  %p8038_p4 = scmp.lt.s32.totalorder %s986_s9, %s8036_s14 }
 0x25f   : > { %p8033_p3 = pnand %p8032_p12, %p10502_p10  ;;  %p8039_p2 = scmp.lt.s32.totalorder %s8037_s1, %s8031_s5 }
 0x261   : > { %p8034_p13 = pneg %p8033_p3  ;;  %p8040_p8 = por %p8039_p2, %p8038_p4 }
 0x263   : > { %p8041_p0 = pnand %p8040_p8, %p8034_p13 }
 0x265   : > { %8044 = shalt.err (!%p8041_p0)
}
 0x266   : > { %s10529_s11 = scalar_lea.sflag [#allocation25], %s8642_s16  ;;  %s10530_s7 = sld [smem:[#allocation83_spill]] }
 0x267   : > { %7129 = dma.hbm_to_vmem [thread:$0]  (%p10502_p10), %s9191_s6, 16, %s986_s9, %s10529_s11  }
 0x268   : > { %s1016_s26 = scalar_lea.vmem [#allocation29], %s8761_s19 }
 0x269   : > { %s1023_s28 = sshll.u32 %s1016_s26, 4  ;;  %s1024_s28 = int_to_ptr.vmem [resolvable:$true] %s1023_s28 }
 0x26c   : > { %s9218_s21 = scalar_lea.hbm %s10530_s7, %s6271_s29  ;;  %s8049_s9 = scalar_lea.hbm %s10530_s7, 32 }
 0x26d   : > { %s8045_s0 = scalar_lea.hbm %s9218_s21, 16  ;;  %p8050_p7 = scmp.lt.u32.totalorder %s9218_s21, %s10530_s7 }
 0x26e   : > { %p8046_p11 = scmp.ne.s32.totalorder %s9218_s21, %s8045_s0  ;;  %p8051_p6 = scmp.lt.u32.totalorder %s8049_s9, %s8045_s0 }
 0x26f   : > { %p8053_p12 = scmp.lt.u32.totalorder %s8045_s0, %s9218_s21 }
 0x270   : > { %p8047_p5 = pnand %p8046_p11, %p10502_p10  ;;  %p8052_p1 = por %p8051_p6, %p8050_p7 }
 0x272   : > { %p8048_p9 = pneg %p8047_p5  ;;  %p8054_p3 = por %p8053_p12, %p8052_p1 }
 0x274   : > { %p8055_p13 = pnand %p8054_p3, %p8048_p9 }
 0x276   : > { %8058 = shalt.err (!%p8055_p13)
}
 0x277   : > { %s8059_s19 = scalar_lea.vmem %s1024_s28, 16  ;;  %s8296_s29 = smov [#allocation29]  }
 0x278   : > { %p8060_p4 = scmp.ne.s32.totalorder %s1024_s28, %s8059_s19  ;;  %s8063_s3 = sshll.u32 %s8296_s29, 4  ;;  %s8064_s3 = int_to_ptr.vmem [resolvable:$false] %s8063_s3 }
 0x279   : > { %s8065_s14 = scalar_lea.vmem %s8064_s3, 32  ;;  %p8066_p0 = scmp.lt.s32.totalorder %s1024_s28, %s8064_s3 }
 0x27a   : > { %p8061_p2 = pnand %p8060_p4, %p10502_p10  ;;  %p8067_p11 = scmp.lt.s32.totalorder %s8065_s14, %s8059_s19 }
 0x27c   : > { %p8062_p8 = pneg %p8061_p2  ;;  %p8068_p5 = por %p8067_p11, %p8066_p0 }
 0x27e   : > { %p8069_p6 = pnand %p8068_p5, %p8062_p8 }
 0x280   : > { %8072 = shalt.err (!%p8069_p6)
}
 0x281   : > { %s10531_s1 = scalar_lea.sflag [#allocation28], %s8642_s16 }
 0x282   : > { %7131 = dma.hbm_to_vmem [thread:$0]  (%p10502_p10), %s9218_s21, 16, %s1024_s28, %s10531_s1  }
 0x283 PF: > { %s10532_s11 = sld [smem:[#allocation68_spill]] }
 0x289   : > { %p10533_p9 = scmp.ne.s32.totalorder %s10532_s11, 0 }
 0x28a   : > { %s10534_s25 = sld [smem:[#allocation54_spill]] (!%p10533_p9)  ;;  %s10535_s27 = sld [smem:[#allocation62_spill]] (!%p10533_p9) }
 0x28b   : > { %1032 = sbr.rel (%p10533_p9) target bundleno = 11552 (0x2d20), region = 100 }
 0x290   : > { %s9243_s26 = sand.u32 (!%p10533_p9), 1, %s10534_s25   ;;  %p10536_p7 = scmp.ne.s32.totalorder (!%p10533_p9), %s10535_s27, 0 }
 0x291   : > { %s9246_s0 = sshll.u32 (!%p10533_p9), %s9243_s26, 4  ;;  %s1035_s2 = scalar_lea.sflag (!%p10533_p9), [#allocation4], %s9243_s26 }
 0x292   : > { %8174 = dma.done.wait (%p10536_p7), %s1035_s2, 256  }
 0x293   : > { %8176 = vsyncadd (%p10536_p7), %s1035_s2, 4294967040  ;;  %s10537_s10 = sld [smem:[#allocation59_spill]] }
 0x299   : > { %s9255_s16 = sand.u32 1, %s10537_s10  }
 0x29a   : > { %s1044_s21 = scalar_lea.sflag [#allocation7], %s9255_s16 }
 0x29b   : > { %8178 = dma.done.wait (%p10536_p7), %s1044_s21, 384  }
 0x29c   : > { %8180 = vsyncadd (%p10536_p7), %s1044_s21, 4294966912  ;;  %s6279_s9 = sshll.u32 %s9243_s26, 3  ;;  %s9265_s22 = sshll.u32 %s9243_s26, 1 }
 0x29d   : > { %s9267_s5 = scalar_lea.vmem [#allocation8], %s6279_s9  ;;  %s1062_s19 = scalar_lea.sflag [#allocation10], %s9255_s16 }
 0x29e   : > { %8182 = dma.done.wait (%p10536_p7), %s1062_s19, 64  }
 0x29f   : > { %8184 = vsyncadd (%p10536_p7), %s1062_s19, 4294967232  ;;  %s1080_s14 = scalar_lea.sflag [#allocation13], %s9255_s16 }
 0x2a0   : > { %8186 = dma.done.wait (%p10536_p7), %s1080_s14, 64  }
 0x2a1   : > { %8188 = vsyncadd (%p10536_p7), %s1080_s14, 4294967232  ;;  %s10538_s11 = sld [smem:[#allocation51_spill]]  ;;  %s10539_s25 = sld [smem:[#allocation65_spill]] }
 0x2a2   : > { %s1098_s19 = scalar_lea.sflag [#allocation16], %s9255_s16 }
 0x2a7   : > { %s9283_s2 = sand.u32 1, %s10538_s11   ;;  %p10540_p10 = scmp.ne.s32.totalorder %s10539_s25, 0 }
 0x2a8   : > { %s7107_s21 = smul.u32 144, %s9283_s2 }
 0x2aa   : > { %s9288_s29 = scalar_lea.vmem [#allocation15], %s7107_s21 }
 0x2ab   : > { %8190 = dma.done.wait (%p10540_p10), %s1098_s19, 2560  }
 0x2ac   : > { %8192 = vsyncadd (%p10540_p10), %s1098_s19, 4294964736  ;;  %s6284_s27 = sshll.u32 %s9283_s2, 4  ;;  %s7108_s14 = smul.u32 48, %s9283_s2 }
 0x2ad   : > { %s9296_s1 = scalar_lea.vmem [#allocation17], %s6284_s27  ;;  %s1116_s11 = scalar_lea.sflag [#allocation19], %s9255_s16 }
 0x2ae   : > { %s9299_s28 = scalar_lea.vmem [#allocation18], %s7108_s14 }
 0x2af   : > { %8194 = dma.done.wait (%p10540_p10), %s1116_s11, 832  }
 0x2b0   : > { %8196 = vsyncadd (%p10540_p10), %s1116_s11, 4294966464  ;;  %s6285_s21 = sshll.u32 %s9283_s2, 2  ;;  %s6286_s19 = sshll.u32 %s9283_s2, 3 }
 0x2b1   : > { %s9307_s9 = scalar_lea.vmem [#allocation20], %s6285_s21  ;;  %s1134_s3 = scalar_lea.sflag [#allocation22], %s9255_s16 }
 0x2b2   : > { %s9310_s6 = scalar_lea.vmem [#allocation21], %s6286_s19 }
 0x2b3   : > { %8198 = dma.done.wait (%p10540_p10), %s1134_s3, 192  }
 0x2b4   : > { %8200 = vsyncadd (%p10540_p10), %s1134_s3, 4294967104  ;;  %s9316_s14 = scalar_lea.vmem [#allocation23], %s6285_s21  ;;  %s1152_s11 = scalar_lea.sflag [#allocation25], %s9255_s16 }
 0x2b5   : > { %s9319_s7 = scalar_lea.vmem [#allocation24], %s6284_s27 }
 0x2b6   : > { %8202 = dma.done.wait (%p10540_p10), %s1152_s11, 272  }
 0x2b7   : > { %8204 = vsyncadd (%p10540_p10), %s1152_s11, 4294967024  ;;  %s6289_s19 = sshll.u32 %s9283_s2, 5  ;;  %s1169_s12 = scalar_lea.sflag [#allocation28], %s9255_s16 }
 0x2b8   : > { %s9328_s3 = scalar_lea.vmem [#allocation27], %s6289_s19 }
 0x2b9   : > { %8206 = dma.done.wait (%p10540_p10), %s1169_s12, 528  }
 0x2ba   : > { %8208 = vsyncadd (%p10540_p10), %s1169_s12, 4294966768  ;;  %p10541_p1 = scmp.eq.s32.totalorder %s10537_s10, 0 }
 0x2bc   : > { %8210 = dma.done.wait (%p10541_p1), [#allocation31], 544   ;;  %p10542_p12 = pmov %p10541_p1 }
 0x2bd   : > { %p10543_p3 = pmov %p10541_p1 }
 0x2be   : > { %8212 = vsyncadd (%p10542_p12), [#allocation31], 4294966752 }
 0x2bf   : > { %8214 = dma.done.wait (%p10543_p3), [#allocation34], 32   ;;  %p10544_p13 = pmov %p10541_p1 }
 0x2c0   : > { %s9344_s16 = scalar_lea.vmem [#allocation35], %s9246_s0  ;;  %s9347_s25 = scalar_lea.vmem [#allocation36], %s9246_s0 }
 0x2c1   : > { %8216 = vsyncadd (%p10544_p13), [#allocation34], 4294967264  ;;  %s10545_s12 = sld [smem:[#allocation56_spill]] }
 0x2c7   : > { %p6295_p4 = scmp.ne.s32.totalorder %s10545_s12, 0 }
 0x2c8   : > { %s10546_s21 = scalar_lea.vmem (!%p6295_p4), [#allocation3], %s9246_s0  ;;  %vm1350_vm0 = vcmask (!%p6295_p4), 261120  }
 0x2c9   : > { %1347 = sbr.rel (%p6295_p4) target bundleno = 720 (0x2d0), region = 184  ;;  %v1348_v0 = vld [vmem:[%s10546_s21] sm:$0xff] (!%p6295_p4)  ;;  %s10547_s11 = smov (!%p6295_p4), %s10546_s21 }
 0x2ca   : > { %v1349_v1 = vld [vmem:[%s10547_s11 + $0x8] sm:$0xff] (!%p6295_p4)  ;;  %1351 = vst.msk [vmem:[#allocation2] sm:$0xff] (!%p6295_p4), %vm1350_vm0, %v1348_v0 }
 0x2cb   : > { %1352 = vst.msk [vmem:[#allocation2 + $0x8] sm:$0xff] (!%p6295_p4), %vm1350_vm0, %v1349_v1 }
 0x2d0 PF: > { %vm1397_vm1 = vcmask 261120   ;;  %v7341_v10 = vld [vmem:[%s9288_s29] sm:$0xff]   ;;  %v7342_v11 = vld [vmem:[%s9288_s29 + $0x10] sm:$0xff]   ;;  %v8297_v12 = vmov 0.0   ;;  %v7343_v13 = vld [vmem:[%s9288_s29 + $0x8] sm:$0xff]   ;;  %vm8298_vm2 = vmmov 0   ;;  %v1367_v27 = vlaneseq }
 0x2d1   : > { %v1353_v2 = vld [vmem:[#allocation2] sm:$0xff]  ;;  %6671 = vmatprep.subr.bf16.mxu0 %v8297_v12  ;;  %6679 = vmatprep.subr.bf16.mxu1 %v8297_v12  ;;  %v7344_v14 = vld [vmem:[%s9288_s29 + $0x18] sm:$0xff]   ;;  %v7346_v48 = vld [vmem:[%s9288_s29 + $0x28] sm:$0xff]   ;;  %v8299_v49 = vmov 0   ;;  %vm1651_vm3 = vcmask 64512   ;;  %vm1773_vm4 = vcmask 1043456  }
 0x2d2   : > { %v1354_v3 = vld [vmem:[#allocation2 + $0x8] sm:$0xff]  ;;  %v1398_v4 = vsel %vm1397_vm1, %v1353_v2, 0.0  ;;  %v1407_v5 = vmul.f32 %v1353_v2, %v1353_v2  ;;  %6672 = vmatpush3.bf16.msra.mxu0 %v7341_v10  ;;  %6680 = vmatpush3.bf16.msra.mxu1 %v7342_v11  ;;  %v9373_v30 = vshrl.u32 %v1367_v27, 7  ;;  %v9379_v32 = vld [vmem:[%s9310_s6] sm:$0x3f]  ;;  %s10548_s10 = scalar_lea.vmem [#allocation11], %s9265_s22 }
 0x2d3   : > { %v1401_v6 = vsel %vm1397_vm1, %v1354_v3, 0.0  ;;  %v1408_v7 = vmul.f32 %v1354_v3, %v1354_v3  ;;  %1399 = vadd.xlane.f32.xlu0 %v1398_v4  ;;  %6673 = vmatprep.subr.bf16.mxu0 %v8297_v12  ;;  %v7345_v46 = vld [vmem:[%s9288_s29 + $0x20] sm:$0xff]   ;;  %s10549_s19 = smov %s10548_s10  ;;  %s8300_s12 = smov 120   ;;  %vm2555_vm12 = vcmask 130048   ;;  %vm2558_vm13 = vcmask 195584  }
 0x2d4   : > { %v1409_v8 = vsel %vm1397_vm1, %v1407_v5, 0.0  ;;  %6681 = vmatprep.subr.bf16.mxu1 %v8297_v12  ;;  %6675 = vmatprep.mubr.msk.bf16.mxu0 %vm8298_vm2, %v8297_v12  ;;  %v9376_v31 = vsub.s32 0, %v9373_v30  ;;  %v1437_v37 = vsub.s32 1, %v9373_v30  ;;  %v6306_v50 = vld [vmem:[%s9296_s1 + $0x1] ss:$0 sm:$0xff]  ;;  %s8301_s21 = smov 112  }
 0x2d5   : > { %v1412_v9 = vsel %vm1397_vm1, %v1408_v7, 0.0  ;;  %1410 = vadd.xlane.f32.xlu1 %v1409_v8  ;;  %6683 = vmatprep.mubr.msk.bf16.mxu1 %vm8298_vm2, %v8297_v12  ;;  %v6296_v62 = vld [vmem:[%s9296_s1] ss:$0 sm:$0xff]  ;;  %v6316_v1 = vld [vmem:[%s9296_s1 + $0x2] ss:$0 sm:$0xff]  ;;  %s8302_s11 = smov 104  }
 0x2d6   : > { %6674 = vmatpush3.bf16.msra.mxu0 %v7343_v13  ;;  %6682 = vmatpush3.bf16.msra.mxu1 %v7344_v14  ;;  %v1432_v36 = vrot.slane %v9379_v32, %v9376_v31  ;;  %v1438_v42 = vrot.slane %v9379_v32, %v1437_v37  ;;  %s10441_s27 = smov 24   ;;  %s10554_s8 = scalar_lea.vmem [#allocation6], %s9246_s0 }
 0x2d7   : > { %1402 = vadd.xlane.f32.xlu0 %v1401_v6  ;;  %6687 = vmatprep.subr.bf16.mxu0 %v8297_v12 }
 0x2d8   : > { %6695 = vmatprep.subr.bf16.mxu1 %v8297_v12  ;;  %7339 = vset.pattern.permute.xlu1 %v8299_v49 }
 0x2d9   : > { %1413 = vadd.xlane.f32.xlu1 %v1412_v9  ;;  %7340 = vset.pattern.permute.xlu0 %v8299_v49 }
 0x360   : > { %v1400_v15 = vpop.xlane.xlu0 %1399 }
 0x361   : > { %v1405_v16 = vmul.f32 0.03125, %v1400_v15 }
 0x362   : > { %v1411_v17 = vpop.xlane.xlu1 %1410 }
 0x363   : > { %v1417_v18 = vmul.f32 %v1405_v16, %v1405_v16  ;;  %v1415_v19 = vmul.f32 0.03125, %v1411_v17  ;;  %v1421_v33 = vsub.f32 %v1353_v2, %v1405_v16 }
 0x364   : > { %v1403_v20 = vpop.xlane.xlu0 %1402 }
 0x365   : > { %v1419_v21 = vsub.f32 %v1415_v19, %v1417_v18  ;;  %v1406_v22 = vmul.f32 0.03125, %v1403_v20  ;;  %v1363_v18 = vld [vmem:[%s10548_s10] sm:$0x1]  ;;  %v1364_v19 = vld [vmem:[%s10549_s19 + $0x1] sm:$0x1]  ;;  %s8303_s10 = smov 8  }
 0x366   : > { %v1414_v23 = vpop.xlane.xlu1 %1413  ;;  %vm1365_vm5 = vcmp.gt.f32.partialorder %v1363_v18, 0.0  ;;  %vm1366_vm6 = vcmp.gt.f32.partialorder %v1364_v19, 0.0  ;;  %s8304_s19 = smov 16  }
 0x367   : > { %v1423_v24 = vadd.f32 1e-06, %v1419_v21  ;;  %v1418_v25 = vmul.f32 %v1406_v22, %v1406_v22  ;;  %v1416_v26 = vmul.f32 0.03125, %v1414_v23  ;;  %v1422_v38 = vsub.f32 %v1354_v3, %v1406_v22 }
 0x368   : > { %v1374_v20 = vsel %vm1365_vm5, 1, %v8299_v49  ;;  %v1375_v21 = vsel %vm1366_vm6, 1, %v8299_v49  ;;  %v1370_v22 = vand.u32 127, %v1367_v27 }
 0x369   : > { %7374 = vrsqrt.f32 %v1423_v24  ;;  %v1420_v28 = vsub.f32 %v1416_v26, %v1418_v25  ;;  %v1379_v23 = vrot.slane %v1374_v20, %v9376_v31  ;;  %v1383_v24 = vrot.slane %v1375_v21, %v9376_v31 }
 0x36a   : > { %vm1371_vm7 = vcmp.gt.s32.totalorder %v1370_v22, %v9373_v30 }
 0x36b   : > { %v1424_v29 = vadd.f32 1e-06, %v1420_v28  ;;  %vm1384_vm8 = vcmp.eq.s32.totalorder %v1379_v23, 1  ;;  %vm1385_vm9 = vcmp.eq.s32.totalorder %v1383_v24, 1 }
 0x36c   : > { %vm9447_vm10 = vmor %vm1371_vm7, %vm1384_vm8 }
 0x36d   : > { %7376 = vrsqrt.f32 %v1424_v29  ;;  %vm9451_vm11 = vmor %vm1371_vm7, %vm1385_vm9 }
 0x373   : > { %v7375_v34 = vpop.eup %7374 }
 0x374   : > { %v1427_v35 = vmul.f32 %v7375_v34, %v1421_v33 }
 0x376   : > { %v1433_v41 = vmul.f32 %v1432_v36, %v1427_v35 }
 0x377   : > { %v7377_v39 = vpop.eup %7376 }
 0x378   : > { %v1428_v40 = vmul.f32 %v7377_v39, %v1422_v38  ;;  %v1439_v44 = vadd.f32 %v1438_v42, %v1433_v41 }
 0x37a   : > { %v1434_v43 = vmul.f32 %v1432_v36, %v1428_v40 }
 0x37c   : > { %v1440_v45 = vadd.f32 %v1438_v42, %v1434_v43 }
 0x37e   : > { %v1446_v47 = vpack.c.bf16 %v1440_v45, %v1439_v44 }
 0x380   : > { %6676 = vmatmul.mubr.msk.bf16.vlgmr.msra.gmra.mrb[0].mxu0 %vm1397_vm1, %v1446_v47  ;;  %6684 = vmatmul.mubr.msk.bf16.vlgmr.msra.gmra.mrb[0].mxu1 %vm1397_vm1, %v1446_v47 }
 0x381   : > { %6688 = vmatpush3.bf16.msra.mxu0 %v7345_v46  ;;  %6691 = vmatprep.mubr.msk.bf16.mxu0 %vm8298_vm2, %v8297_v12 }
 0x382   : > { %6689 = vmatprep.subr.bf16.mxu0 %v8297_v12  ;;  %6697 = vmatprep.mubr.msk.bf16.mxu1 %vm8298_vm2, %v8297_v12 }
 0x385   : > { %6690 = vmatpush3.bf16.msra.mxu0 %v7346_v48 }
 0x386   : > { %6701 = vmatprep.subr.bf16.mxu0 %v8297_v12 }
 0x388   : > { %6692 = vmatmul.mubr.msk.bf16.vlgmr.msra.gmra.mrb[4].mxu0 %vm1397_vm1, %v1446_v47 }
 0x389   : > { %6703 = vmatprep.mubr.msk.bf16.mxu0 %vm8298_vm2, %v8297_v12 }
 0x453   : > { %v1500_v51 = vpop.f32.mrb[0].mxu0  ;;  %v1569_v52 = vpop.f32.mrb[0].mxu1 }
 0x454   : > { %v1570_v53 = vadd.f32 %v6306_v50, %v1569_v52  ;;  %v6677_v54 = vpop.f32.mrb[1].mxu0  ;;  %v6685_v55 = vpop.f32.mrb[1].mxu1  ;;  %v1501_v2 = vadd.f32 %v6296_v62, %v1500_v51 }
 0x455   : > { %v1503_v56 = vpop.f32.mrb[2].mxu0  ;;  %v1572_v57 = vpop.f32.mrb[2].mxu1 }
 0x456   : > { %v9403_v58 = vpack.c.bf16 %v1570_v53, %v1570_v53  ;;  %v1573_v59 = vadd.f32 %v6306_v50, %v1572_v57  ;;  %v6678_v60 = vpop.f32.mrb[3].mxu0  ;;  %v6686_v61 = vpop.f32.mrb[3].mxu1  ;;  %v1504_v5 = vadd.f32 %v6296_v62, %v1503_v56  ;;  %v9415_v9 = vpack.c.bf16 %v1501_v2, %v1501_v2 }
 0x458   : > { %v9406_v63 = vpack.c.bf16 %v1573_v59, %v1573_v59  ;;  %v1656_v0 = vsel %vm1651_vm3, %v9403_v58, 0  ;;  %v9419_v14 = vpack.c.bf16 %v1504_v5, %v1504_v5 }
 0x459   : > { %6696 = vmatpush3.bf16.xpose.msra.mxu1 %v1656_v0 }
 0x45a   : > { %v1702_v3 = vsel %vm1651_vm3, %v9406_v63, 0  ;;  %6707 = vmatprep.subr.bf16.mxu1 %v8297_v12 }
 0x45b   : > { %v1638_v4 = vpop.f32.mrb[4].mxu0  ;;  %6702 = vmatpush3.bf16.xpose.msra.mxu0 %v1702_v3 }
 0x45c   : > { %v1639_v6 = vadd.f32 %v6316_v1, %v1638_v4  ;;  %v6693_v7 = vpop.f32.mrb[5].mxu0  ;;  %6713 = vmatprep.subr.bf16.mxu0 %v8297_v12 }
 0x45d   : > { %v1641_v8 = vpop.f32.mrb[6].mxu0 }
 0x45e   : > { %v9417_v10 = vpack.c.bf16 %v1639_v6, %v1639_v6  ;;  %v1642_v11 = vadd.f32 %v6316_v1, %v1641_v8  ;;  %v6694_v13 = vpop.f32.mrb[7].mxu0 }
 0x460   : > { %v9421_v15 = vpack.c.bf16 %v1642_v11, %v1642_v11  ;;  %6698 = vmatmul.mubr.msk.bf16.vlgmr.msra.gmra.mrb[4].mxu1 %vm1651_vm3, %v9415_v9  ;;  %v1775_v16 = vsel %vm1773_vm4, %v9417_v10, 0 }
 0x461   : > { %6708 = vmatpush3.bf16.msra.mxu1 %v1775_v16  ;;  %6709 = vmatprep.mubr.msk.bf16.mxu1 %vm8298_vm2, %v8297_v12 }
 0x462   : > { %6704 = vmatmul.mubr.msk.bf16.vlgmr.msra.gmra.mrb[8].mxu0 %vm1651_vm3, %v9419_v14  ;;  %v1821_v17 = vsel %vm1773_vm4, %v9421_v15, 0  ;;  %6719 = vmatprep.subr.bf16.mxu1 %v8297_v12 }
 0x463   : > { %6714 = vmatpush3.bf16.msra.mxu0 %v1821_v17  ;;  %6715 = vmatprep.mubr.msk.bf16.mxu0 %vm8298_vm2, %v8297_v12 }
 0x464   : > { %6725 = vmatprep.subr.bf16.mxu0 %v8297_v12 }
 0x533   : > { %v1692_v26 = vpop.f32.mrb[4].mxu1 }
 0x534   : > { %v1744_v27 = vsel %vm9447_vm10, -1e+18, %v1692_v26  ;;  %v6699_v29 = vpop.f32.mrb[5].mxu1 }
 0x535   : > { %v1695_v33 = vpop.f32.mrb[6].mxu1  ;;  %v1738_v34 = vpop.f32.mrb[8].mxu0  ;;  %v1746_v35 = vsel %vm1651_vm3, %v1744_v27, -inf }
 0x536   : > { %v1745_v36 = vsel %vm9451_vm11, -1e+18, %v1738_v34  ;;  %1747 = vmax.xlane.f32.xlu0 %v1746_v35  ;;  %v6700_v38 = vpop.f32.mrb[7].mxu1  ;;  %v6705_v39 = vpop.f32.mrb[9].mxu0 }
 0x537   : > { %v1741_v40 = vpop.f32.mrb[10].mxu0  ;;  %v1749_v41 = vsel %vm1651_vm3, %v1745_v36, -inf }
 0x538   : > { %1750 = vmax.xlane.f32.xlu1 %v1749_v41  ;;  %v6706_v42 = vpop.f32.mrb[11].mxu0 }
 0x549   : > { %1915 = vrot.lane.b32.xlu1 %v9406_v63, %s8300_s12 }
 0x5c3   : > { %v1748_v43 = vpop.xlane.xlu0 %1747 }
 0x5c4   : > { %v1752_v44 = vsub.f32 %v1744_v27, %v1748_v43 }
 0x5c5   : > { %v1751_v45 = vpop.xlane.xlu1 %1750 }
 0x5c6   : > { %v1754_v46 = vmul.f32 1.442695, %v1752_v44  ;;  %v1753_v47 = vsub.f32 %v1745_v36, %v1751_v45 }
 0x5c8   : > { %7378 = vpow2.f32 %v1754_v46  ;;  %v1756_v48 = vmul.f32 1.442695, %v1753_v47 }
 0x5c9   : > { %v1916_v54 = vpop.permute.xlu1 %1915 }
 0x5ca   : > { %7380 = vpow2.f32 %v1756_v48  ;;  %v1921_v3 = vsel %vm1651_vm3, %v1916_v54, 0 }
 0x5d2   : > { %v7379_v50 = vpop.eup %7378 }
 0x5d3   : > { %v1758_v51 = vsel %vm1651_vm3, %v7379_v50, 0.0 }
 0x5d4   : > { %v7381_v52 = vpop.eup %7380  ;;  %1759 = vadd.xlane.f32.xlu0 %v1758_v51 }
 0x5d5   : > { %v1761_v53 = vsel %vm1651_vm3, %v7381_v52, 0.0 }
 0x5d6   : > { %1762 = vadd.xlane.f32.xlu1 %v1761_v53 }
 0x5e7   : > { %1863 = vrot.lane.b32.xlu1 %v9415_v9, %s8300_s12 }
 0x5ea   : > { %1865 = vrot.lane.b32.xlu0 %v9403_v58, %s8300_s12 }
 0x5eb   : > { %1913 = vrot.lane.b32.xlu1 %v9419_v14, %s8300_s12 }
 0x661   : > { %v1760_v55 = vpop.xlane.xlu0 %1759 }
 0x662   : > { %7382 = vrcp.f32 %v1760_v55 }
 0x663   : > { %v1763_v56 = vpop.xlane.xlu1 %1762 }
 0x664   : > { %7384 = vrcp.f32 %v1763_v56 }
 0x665   : > { %v1866_v61 = vpop.permute.xlu0 %1865 }
 0x666   : > { %v1871_v1 = vsel %vm1651_vm3, %v1866_v61, 0 }
 0x667   : > { %v1864_v4 = vpop.permute.xlu1 %1863 }
 0x66b   : > { %v1914_v5 = vpop.permute.xlu1 %1913 }
 0x66c   : > { %v7383_v57 = vpop.eup %7382 }
 0x66d   : > { %v1766_v59 = vmul.f32 %v7383_v57, %v7379_v50 }
 0x66e   : > { %v7385_v60 = vpop.eup %7384 }
 0x66f   : > { %v1768_v62 = vpack.c.bf16 %v1766_v59, %v1766_v59  ;;  %v1767_v0 = vmul.f32 %v7385_v60, %v7381_v52 }
 0x671   : > { %6710 = vmatmul.mubr.msk.bf16.vlgmr.msra.gmra.mrb[8].mxu1 %vm1651_vm3, %v1768_v62  ;;  %v1769_v2 = vpack.c.bf16 %v1767_v0, %v1767_v0 }
 0x672   : > { %6720 = vmatpush3.bf16.xpose.msra.mxu1 %v1871_v1  ;;  %6721 = vmatprep.mubr.msk.bf16.mxu1 %vm8298_vm2, %v8297_v12 }
 0x673   : > { %6716 = vmatmul.mubr.msk.bf16.vlgmr.msra.gmra.mrb[12].mxu0 %vm1651_vm3, %v1769_v2  ;;  %6731 = vmatprep.subr.bf16.mxu1 %v8297_v12 }
 0x674   : > { %6726 = vmatpush3.bf16.xpose.msra.mxu0 %v1921_v3  ;;  %6727 = vmatprep.mubr.msk.bf16.mxu0 %vm8298_vm2, %v8297_v12 }
 0x675   : > { %6737 = vmatprep.subr.bf16.mxu0 %v8297_v12 }
 0x679   : > { %6722 = vmatmul.mubr.msk.bf16.vlgmr.msra.gmra.mrb[12].mxu1 %vm1651_vm3, %v1864_v4 }
 0x67a   : > { %6733 = vmatprep.mubr.msk.bf16.mxu1 %vm8298_vm2, %v8297_v12 }
 0x67b   : > { %6728 = vmatmul.mubr.msk.bf16.vlgmr.msra.gmra.mrb[16].mxu0 %vm1651_vm3, %v1914_v5 }
 0x67c   : > { %6739 = vmatprep.mubr.msk.bf16.mxu0 %vm8298_vm2, %v8297_v12 }
 0x744   : > { %v9487_v6 = vpop.f32.mrb[8].mxu1 }
 0x745   : > { %v6711_v7 = vpop.f32.mrb[9].mxu1 }
 0x746   : > { %v1814_v8 = vpop.f32.mrb[10].mxu1  ;;  %v9489_v11 = vpop.f32.mrb[12].mxu0 }
 0x747   : > { %v6712_v13 = vpop.f32.mrb[11].mxu1  ;;  %v6717_v16 = vpop.f32.mrb[13].mxu0 }
 0x748   : > { %v1860_v17 = vpop.f32.mrb[14].mxu0 }
 0x749   : > { %v6718_v18 = vpop.f32.mrb[15].mxu0 }
 0x74c   : > { %v1907_v19 = vpop.f32.mrb[12].mxu1 }
 0x74d   : > { %v1963_v20 = vsel %vm9447_vm10, -1e+18, %v1907_v19  ;;  %v6723_v21 = vpop.f32.mrb[13].mxu1 }
 0x74e   : > { %v1910_v22 = vpop.f32.mrb[14].mxu1  ;;  %v1957_v23 = vpop.f32.mrb[16].mxu0  ;;  %v1965_v24 = vsel %vm1651_vm3, %v1963_v20, -inf }
 0x74f   : > { %v1964_v26 = vsel %vm9451_vm11, -1e+18, %v1957_v23  ;;  %1966 = vmax.xlane.f32.xlu0 %v1965_v24  ;;  %v6724_v27 = vpop.f32.mrb[15].mxu1  ;;  %v6729_v29 = vpop.f32.mrb[17].mxu0 }
 0x750   : > { %v1960_v33 = vpop.f32.mrb[18].mxu0  ;;  %v1968_v34 = vsel %vm1651_vm3, %v1964_v26, -inf }
 0x751   : > { %1969 = vmax.xlane.f32.xlu1 %v1968_v34  ;;  %v6730_v35 = vpop.f32.mrb[19].mxu0 }
 0x762   : > { %2037 = vrot.lane.b32.xlu1 %v9421_v15, %s8300_s12 }
 0x766   : > { %2087 = vrot.lane.b32.xlu1 %v9403_v58, %s8301_s21 }
 0x76a   : > { %2137 = vrot.lane.b32.xlu1 %v9406_v63, %s8301_s21 }
 0x76e   : > { %2135 = vrot.lane.b32.xlu1 %v9419_v14, %s8301_s21 }
 0x7dc   : > { %v1967_v36 = vpop.xlane.xlu0 %1966 }
 0x7dd   : > { %v1971_v38 = vsub.f32 %v1963_v20, %v1967_v36 }
 0x7de   : > { %v1970_v39 = vpop.xlane.xlu1 %1969 }
 0x7df   : > { %v1973_v40 = vmul.f32 1.442695, %v1971_v38  ;;  %v1972_v41 = vsub.f32 %v1964_v26, %v1970_v39 }
 0x7e1   : > { %7386 = vpow2.f32 %v1973_v40  ;;  %v1975_v42 = vmul.f32 1.442695, %v1972_v41 }
 0x7e2   : > { %v2038_v43 = vpop.permute.xlu1 %2037 }
 0x7e3   : > { %7388 = vpow2.f32 %v1975_v42  ;;  %v2043_v44 = vsel %vm1773_vm4, %v2038_v43, 0 }
 0x7e4   : > { %6738 = vmatpush3.bf16.msra.mxu0 %v2043_v44 }
 0x7e5   : > { %6749 = vmatprep.subr.bf16.mxu0 %v8297_v12 }
 0x7e6   : > { %v2088_v55 = vpop.permute.xlu1 %2087 }
 0x7e7   : > { %v2093_v62 = vsel %vm1651_vm3, %v2088_v55, 0 }
 0x7ea   : > { %v2138_v61 = vpop.permute.xlu1 %2137 }
 0x7eb   : > { %v7387_v45 = vpop.eup %7386  ;;  %v2143_v1 = vsel %vm1651_vm3, %v2138_v61, 0 }
 0x7ec   : > { %v1977_v46 = vsel %vm1651_vm3, %v7387_v45, 0.0 }
 0x7ed   : > { %v7389_v47 = vpop.eup %7388  ;;  %1978 = vadd.xlane.f32.xlu0 %v1977_v46 }
 0x7ee   : > { %v1980_v48 = vsel %vm1651_vm3, %v7389_v47, 0.0  ;;  %v2136_v3 = vpop.permute.xlu1 %2135 }
 0x7f1   : > { %1981 = vadd.xlane.f32.xlu0 %v1980_v48 }
 0x807   : > { %1989 = vrot.lane.b32.xlu0 %v9417_v10, %s8300_s12 }
 0x80b   : > { %2085 = vrot.lane.b32.xlu0 %v9415_v9, %s8301_s21 }
 0x87a   : > { %v1979_v50 = vpop.xlane.xlu0 %1978 }
 0x87b   : > { %7390 = vrcp.f32 %v1979_v50 }
 0x87e   : > { %v1982_v51 = vpop.xlane.xlu0 %1981 }
 0x87f   : > { %7392 = vrcp.f32 %v1982_v51 }
 0x882   : > { %v1990_v52 = vpop.permute.xlu0 %1989 }
 0x883   : > { %v1995_v53 = vsel %vm1773_vm4, %v1990_v52, 0 }
 0x884   : > { %6732 = vmatpush3.bf16.msra.mxu1 %v1995_v53 }
 0x885   : > { %v7391_v54 = vpop.eup %7390  ;;  %6743 = vmatprep.subr.bf16.mxu1 %v8297_v12 }
 0x886   : > { %v1985_v56 = vmul.f32 %v7391_v54, %v7387_v45  ;;  %v2086_v2 = vpop.permute.xlu0 %2085 }
 0x888   : > { %v1987_v57 = vpack.c.bf16 %v1985_v56, %v1985_v56 }
 0x889   : > { %v7393_v59 = vpop.eup %7392 }
 0x88a   : > { %6734 = vmatmul.mubr.msk.bf16.vlgmr.msra.gmra.mrb[16].mxu1 %vm1651_vm3, %v1987_v57  ;;  %v1986_v60 = vmul.f32 %v7393_v59, %v7389_v47 }
 0x88b   : > { %6745 = vmatprep.mubr.msk.bf16.mxu1 %vm8298_vm2, %v8297_v12 }
 0x88c   : > { %v1988_v0 = vpack.c.bf16 %v1986_v60, %v1986_v60 }
 0x88d   : > { %6744 = vmatpush3.bf16.xpose.msra.mxu1 %v2093_v62 }
 0x88e   : > { %6740 = vmatmul.mubr.msk.bf16.vlgmr.msra.gmra.mrb[20].mxu0 %vm1651_vm3, %v1988_v0  ;;  %6755 = vmatprep.subr.bf16.mxu1 %v8297_v12 }
 0x88f   : > { %6750 = vmatpush3.bf16.xpose.msra.mxu0 %v2143_v1  ;;  %6751 = vmatprep.mubr.msk.bf16.mxu0 %vm8298_vm2, %v8297_v12 }
 0x890   : > { %6761 = vmatprep.subr.bf16.mxu0 %v8297_v12 }
 0x894   : > { %6746 = vmatmul.mubr.msk.bf16.vlgmr.msra.gmra.mrb[20].mxu1 %vm1651_vm3, %v2086_v2 }
 0x895   : > { %6757 = vmatprep.mubr.msk.bf16.mxu1 %vm8298_vm2, %v8297_v12 }
 0x896   : > { %6752 = vmatmul.mubr.msk.bf16.vlgmr.msra.gmra.mrb[24].mxu0 %vm1651_vm3, %v2136_v3 }
 0x897   : > { %6763 = vmatprep.mubr.msk.bf16.mxu0 %vm8298_vm2, %v8297_v12 }
 0x95d   : > { %v9531_v4 = vpop.f32.mrb[16].mxu1 }
 0x95e   : > { %v6735_v5 = vpop.f32.mrb[17].mxu1 }
 0x95f   : > { %v2034_v7 = vpop.f32.mrb[18].mxu1 }
 0x960   : > { %v6736_v8 = vpop.f32.mrb[19].mxu1 }
 0x961   : > { %v9533_v13 = vpop.f32.mrb[20].mxu0 }
 0x962   : > { %v7294_v16 = vpack.i.bf16 %v9533_v13, %v9531_v4  ;;  %v6741_v17 = vpop.f32.mrb[21].mxu0 }
 0x963   : > { %v2082_v18 = vpop.f32.mrb[22].mxu0 }
 0x964   : > { %v6742_v19 = vpop.f32.mrb[23].mxu0 }
 0x967   : > { %v2129_v20 = vpop.f32.mrb[20].mxu1 }
 0x968   : > { %v2185_v21 = vsel %vm9447_vm10, -1e+18, %v2129_v20  ;;  %v6747_v22 = vpop.f32.mrb[21].mxu1 }
 0x969   : > { %v2132_v23 = vpop.f32.mrb[22].mxu1  ;;  %v2179_v24 = vpop.f32.mrb[24].mxu0  ;;  %v2187_v26 = vsel %vm1651_vm3, %v2185_v21, -inf }
 0x96a   : > { %v2186_v27 = vsel %vm9451_vm11, -1e+18, %v2179_v24  ;;  %2188 = vmax.xlane.f32.xlu0 %v2187_v26  ;;  %v6748_v29 = vpop.f32.mrb[23].mxu1  ;;  %v6753_v33 = vpop.f32.mrb[25].mxu0 }
 0x96b   : > { %v2182_v34 = vpop.f32.mrb[26].mxu0  ;;  %v2190_v35 = vsel %vm1651_vm3, %v2186_v27, -inf }
 0x96c   : > { %2191 = vmax.xlane.f32.xlu1 %v2190_v35  ;;  %v6754_v36 = vpop.f32.mrb[27].mxu0 }
 0x97d   : > { %2259 = vrot.lane.b32.xlu1 %v9421_v15, %s8301_s21 }
 0x981   : > { %2309 = vrot.lane.b32.xlu1 %v9403_v58, %s8302_s11 }
 0x985   : > { %2359 = vrot.lane.b32.xlu1 %v9406_v63, %s8302_s11 }
 0x989   : > { %2357 = vrot.lane.b32.xlu1 %v9419_v14, %s8302_s11 }
 0x9f7   : > { %v2189_v38 = vpop.xlane.xlu0 %2188 }
 0x9f8   : > { %v2193_v39 = vsub.f32 %v2185_v21, %v2189_v38 }
 0x9f9   : > { %v2192_v40 = vpop.xlane.xlu1 %2191 }
 0x9fa   : > { %v2195_v41 = vmul.f32 1.442695, %v2193_v39  ;;  %v2194_v42 = vsub.f32 %v2186_v27, %v2192_v40 }
 0x9fc   : > { %7394 = vpow2.f32 %v2195_v41  ;;  %v2197_v43 = vmul.f32 1.442695, %v2194_v42 }
 0x9fd   : > { %v2260_v44 = vpop.permute.xlu1 %2259 }
 0x9fe   : > { %7396 = vpow2.f32 %v2197_v43  ;;  %v2265_v45 = vsel %vm1773_vm4, %v2260_v44, 0 }
 0x9ff   : > { %6762 = vmatpush3.bf16.msra.mxu0 %v2265_v45 }
 0xa00   : > { %6773 = vmatprep.subr.bf16.mxu0 %v8297_v12 }
 0xa01   : > { %v2310_v53 = vpop.permute.xlu1 %2309 }
 0xa05   : > { %v2360_v59 = vpop.permute.xlu1 %2359 }
 0xa06   : > { %v7395_v58 = vpop.eup %7394  ;;  %v2365_v61 = vsel %vm1651_vm3, %v2360_v59, 0 }
 0xa07   : > { %v2199_v63 = vsel %vm1651_vm3, %v7395_v58, 0.0 }
 0xa08   : > { %v7397_v46 = vpop.eup %7396  ;;  %2200 = vadd.xlane.f32.xlu0 %v2199_v63 }
 0xa09   : > { %v2202_v14 = vsel %vm1651_vm3, %v7397_v46, 0.0  ;;  %v2358_v0 = vpop.permute.xlu1 %2357 }
 0xa0c   : > { %2203 = vadd.xlane.f32.xlu0 %v2202_v14 }
 0xa22   : > { %2211 = vrot.lane.b32.xlu0 %v9417_v10, %s8301_s21 }
 0xa26   : > { %2307 = vrot.lane.b32.xlu0 %v9415_v9, %s8302_s11  ;;  %v2315_v9 = vsel %vm1651_vm3, %v2310_v53, 0 }
 0xa95   : > { %v2201_v47 = vpop.xlane.xlu0 %2200 }
 0xa96   : > { %7398 = vrcp.f32 %v2201_v47 }
 0xa99   : > { %v2204_v48 = vpop.xlane.xlu0 %2203 }
 0xa9a   : > { %7400 = vrcp.f32 %v2204_v48 }
 0xa9d   : > { %v2212_v50 = vpop.permute.xlu0 %2211 }
 0xa9e   : > { %v2217_v51 = vsel %vm1773_vm4, %v2212_v50, 0 }
 0xa9f   : > { %6756 = vmatpush3.bf16.msra.mxu1 %v2217_v51  ;;  %v7347_v51 = vld [vmem:[%s9299_s28] sm:$0xff]  }
 0xaa0   : > { %v7399_v52 = vpop.eup %7398  ;;  %6767 = vmatprep.subr.bf16.mxu1 %v8297_v12 }
 0xaa1   : > { %v2207_v54 = vmul.f32 %v7399_v52, %v7395_v58  ;;  %v2308_v62 = vpop.permute.xlu0 %2307  ;;  %v7348_v52 = vld [vmem:[%s9299_s28 + $0x8] sm:$0xff]  }
 0xaa3   : > { %v2209_v55 = vpack.c.bf16 %v2207_v54, %v2207_v54 }
 0xaa4   : > { %v7401_v56 = vpop.eup %7400 }
 0xaa5   : > { %6758 = vmatmul.mubr.msk.bf16.vlgmr.msra.gmra.mrb[24].mxu1 %vm1651_vm3, %v2209_v55  ;;  %v2208_v57 = vmul.f32 %v7401_v56, %v7397_v46 }
 0xaa6   : > { %6769 = vmatprep.mubr.msk.bf16.mxu1 %vm8298_vm2, %v8297_v12 }
 0xaa7   : > { %v2210_v60 = vpack.c.bf16 %v2208_v57, %v2208_v57 }
 0xaa8   : > { %6768 = vmatpush3.bf16.xpose.msra.mxu1 %v2315_v9 }
 0xaa9   : > { %6764 = vmatmul.mubr.msk.bf16.vlgmr.msra.gmra.mrb[28].mxu0 %vm1651_vm3, %v2210_v60  ;;  %6779 = vmatprep.subr.bf16.mxu1 %v8297_v12 }
 0xaaa   : > { %6774 = vmatpush3.bf16.xpose.msra.mxu0 %v2365_v61  ;;  %6775 = vmatprep.mubr.msk.bf16.mxu0 %vm8298_vm2, %v8297_v12 }
 0xaab   : > { %6785 = vmatprep.subr.bf16.mxu0 %v8297_v12 }
 0xaaf   : > { %6770 = vmatmul.mubr.msk.bf16.vlgmr.msra.gmra.mrb[28].mxu1 %vm1651_vm3, %v2308_v62 }
 0xab0   : > { %6781 = vmatprep.mubr.msk.bf16.mxu1 %vm8298_vm2, %v8297_v12 }
 0xab1   : > { %6776 = vmatmul.mubr.msk.bf16.vlgmr.msra.gmra.mrb[32].mxu0 %vm1651_vm3, %v2358_v0 }
 0xab2   : > { %6787 = vmatprep.mubr.msk.bf16.mxu0 %vm8298_vm2, %v8297_v12 }
 0xb78   : > { %v2253_v1 = vpop.f32.mrb[24].mxu1 }
 0xb79   : > { %v6759_v2 = vpop.f32.mrb[25].mxu1 }
 0xb7a   : > { %v2256_v3 = vpop.f32.mrb[26].mxu1 }
 0xb7b   : > { %v6760_v5 = vpop.f32.mrb[27].mxu1 }
 0xb7c   : > { %v2301_v7 = vpop.f32.mrb[28].mxu0 }
 0xb7d   : > { %v7299_v8 = vpack.i.bf16 %v2301_v7, %v2253_v1  ;;  %v6765_v17 = vpop.f32.mrb[29].mxu0 }
 0xb7e   : > { %v2304_v18 = vpop.f32.mrb[30].mxu0 }
 0xb7f   : > { %v6766_v19 = vpop.f32.mrb[31].mxu0 }
 0xb82   : > { %v2351_v20 = vpop.f32.mrb[28].mxu1 }
 0xb83   : > { %v2407_v21 = vsel %vm9447_vm10, -1e+18, %v2351_v20  ;;  %v6771_v22 = vpop.f32.mrb[29].mxu1 }
 0xb84   : > { %v2354_v23 = vpop.f32.mrb[30].mxu1  ;;  %v2401_v24 = vpop.f32.mrb[32].mxu0  ;;  %v2409_v26 = vsel %vm1651_vm3, %v2407_v21, -inf }
 0xb85   : > { %v2408_v27 = vsel %vm9451_vm11, -1e+18, %v2401_v24  ;;  %2410 = vmax.xlane.f32.xlu0 %v2409_v26  ;;  %v6772_v29 = vpop.f32.mrb[31].mxu1  ;;  %v6777_v33 = vpop.f32.mrb[33].mxu0  ;;  %v6338_v26 = vld [vmem:[%s9307_s9] ss:$0 sm:$0xff] }
 0xb86   : > { %v2404_v34 = vpop.f32.mrb[34].mxu0  ;;  %v2412_v35 = vsel %vm1651_vm3, %v2408_v27, -inf }
 0xb87   : > { %2413 = vmax.xlane.f32.xlu1 %v2412_v35  ;;  %v6778_v36 = vpop.f32.mrb[35].mxu0  ;;  %v7494_v34 = vld [vmem:[#allocation2] sm:$0xff] }
 0xb98   : > { %2481 = vrot.lane.b32.xlu1 %v9421_v15, %s8302_s11 }
 0xb9c   : > { %7295 = vrot.lane.b32.xlu1 %v7294_v16, %s8303_s10 }
 0xba0   : > { %7300 = vrot.lane.b32.xlu1 %v7299_v8, %s8304_s19 }
 0xc12   : > { %v2411_v25 = vpop.xlane.xlu0 %2410 }
 0xc13   : > { %v2415_v28 = vsub.f32 %v2407_v21, %v2411_v25  ;;  %v7495_v25 = vld [vmem:[#allocation2 + $0x8] sm:$0xff] }
 0xc14   : > { %v2414_v38 = vpop.xlane.xlu1 %2413 }
 0xc15   : > { %v2417_v39 = vmul.f32 1.442695, %v2415_v28  ;;  %v2416_v40 = vsub.f32 %v2408_v27, %v2414_v38 }
 0xc17   : > { %7402 = vpow2.f32 %v2417_v39  ;;  %v2419_v41 = vmul.f32 1.442695, %v2416_v40 }
 0xc18   : > { %v2482_v42 = vpop.permute.xlu1 %2481 }
 0xc19   : > { %7404 = vpow2.f32 %v2419_v41  ;;  %v2487_v15 = vsel %vm1773_vm4, %v2482_v42, 0 }
 0xc1a   : > { %6786 = vmatpush3.bf16.msra.mxu0 %v2487_v15 }
 0xc1b   : > { %6799 = vmatprep.subr.bf16.mxu0 %v8297_v12 }
 0xc1c   : > { %v7296_v62 = vpop.permute.xlu1 %7295 }
 0xc1d   : > { %v7298_v1 = vunpack.i.h.bf16 %v7296_v62  ;;  %v7297_v2 = vunpack.i.l.bf16 %v7296_v62 }
 0xc1f   : > { %v2554_v8 = vsel %vm1651_vm3, %v9489_v11, %v7298_v1  ;;  %v2553_v17 = vsel %vm1651_vm3, %v9487_v6, %v7297_v2 }
 0xc20   : > { %v7301_v0 = vpop.permute.xlu1 %7300 }
 0xc21   : > { %v7403_v43 = vpop.eup %7402  ;;  %v7303_v3 = vunpack.i.h.bf16 %v7301_v0  ;;  %v7302_v5 = vunpack.i.l.bf16 %v7301_v0  ;;  %v2667_v0 = vsub.s32 3, %v9373_v30 }
 0xc22   : > { %v2421_v4 = vsel %vm1651_vm3, %v7403_v43, 0.0 }
 0xc23   : > { %v7405_v13 = vpop.eup %7404  ;;  %2422 = vadd.xlane.f32.xlu0 %v2421_v4  ;;  %v2556_v20 = vsel %vm2555_vm12, %v2553_v17, %v7302_v5  ;;  %v2557_v21 = vsel %vm2555_vm12, %v2554_v8, %v7303_v3  ;;  %v7350_v4 = vld [vmem:[%s9288_s29 + $0x48] sm:$0xff]  }
 0xc24   : > { %v2424_v16 = vsel %vm1651_vm3, %v7405_v13, 0.0 }
 0xc27   : > { %2425 = vadd.xlane.f32.xlu0 %v2424_v16 }
 0xc3d   : > { %2433 = vrot.lane.b32.xlu0 %v9417_v10, %s8302_s11 }
 0xcb0   : > { %v2423_v44 = vpop.xlane.xlu0 %2422 }
 0xcb1   : > { %7406 = vrcp.f32 %v2423_v44  ;;  %v7353_v44 = vld [vmem:[%s9288_s29 + $0x30] sm:$0xff]  }
 0xcb4   : > { %v2426_v45 = vpop.xlane.xlu0 %2425 }
 0xcb5   : > { %7408 = vrcp.f32 %v2426_v45  ;;  %v7354_v45 = vld [vmem:[%s9288_s29 + $0x38] sm:$0xff]  }
 0xcb8   : > { %v2434_v58 = vpop.permute.xlu0 %2433 }
 0xcb9   : > { %v2439_v63 = vsel %vm1773_vm4, %v2434_v58, 0  ;;  %v7355_v58 = vld [vmem:[%s9288_s29 + $0x50] sm:$0xff]  }
 0xcba   : > { %6780 = vmatpush3.bf16.msra.mxu1 %v2439_v63 }
 0xcbb   : > { %v7407_v46 = vpop.eup %7406  ;;  %6791 = vmatprep.subr.bf16.mxu1 %v8297_v12 }
 0xcbc   : > { %v2429_v14 = vmul.f32 %v7407_v46, %v7403_v43  ;;  %v7349_v43 = vld [vmem:[%s9288_s29 + $0x40] sm:$0xff]  }
 0xcbe   : > { %v2431_v47 = vpack.c.bf16 %v2429_v14, %v2429_v14 }
 0xcbf   : > { %v7409_v48 = vpop.eup %7408 }
 0xcc0   : > { %v2430_v50 = vmul.f32 %v7409_v48, %v7405_v13  ;;  %6782 = vmatmul.mubr.msk.bf16.vlgmr.msra.gmra.mrb[32].mxu1 %vm1651_vm3, %v2431_v47  ;;  %v9636_v13 = vld [vmem:[%s10554_s8] sm:$0xff]  }
 0xcc1   : > { %6795 = vmatprep.mubr.msk.bf16.mxu1 %vm8298_vm2, %v8297_v12  ;;  %6792 = vmatpush3.bf16.msra.mxu1 %v7347_v51 }
 0xcc2   : > { %v2432_v10 = vpack.c.bf16 %v2430_v50, %v2430_v50  ;;  %6793 = vmatprep.subr.bf16.mxu1 %v8297_v12 }
 0xcc4   : > { %6788 = vmatmul.mubr.msk.bf16.vlgmr.msra.gmra.mrb[36].mxu0 %vm1651_vm3, %v2432_v10 }
 0xcc5   : > { %6803 = vmatprep.mubr.msk.bf16.mxu0 %vm8298_vm2, %v8297_v12  ;;  %6794 = vmatpush3.bf16.msra.mxu1 %v7348_v52 }
 0xcc6   : > { %6807 = vmatprep.subr.bf16.mxu1 %v7349_v43  ;;  %6800 = vmatpush3.bf16.msra.mxu0 %v7353_v44  ;;  %v6367_v44 = vld [vmem:[%s9296_s1 + $0x5] ss:$0 sm:$0xff] }
 0xcc7   : > { %6801 = vmatprep.subr.bf16.mxu0 %v8297_v12 }
 0xcca   : > { %6802 = vmatpush3.bf16.msra.mxu0 %v7354_v45 }
 0xccb   : > { %6815 = vmatprep.subr.bf16.mxu0 %v7355_v58 }
 0xd93   : > { %v2475_v53 = vpop.f32.mrb[32].mxu1 }
 0xd94   : > { %v6783_v54 = vpop.f32.mrb[33].mxu1 }
 0xd95   : > { %v2478_v55 = vpop.f32.mrb[34].mxu1 }
 0xd96   : > { %v6784_v56 = vpop.f32.mrb[35].mxu1 }
 0xd97   : > { %v2523_v57 = vpop.f32.mrb[36].mxu0 }
 0xd98   : > { %v7304_v59 = vpack.i.bf16 %v2523_v57, %v2475_v53  ;;  %v6789_v9 = vpop.f32.mrb[37].mxu0 }
 0xd99   : > { %v2526_v60 = vpop.f32.mrb[38].mxu0 }
 0xd9a   : > { %7305 = vrot.lane.b32.xlu0 %v7304_v59, %s10441_s27  ;;  %v6790_v61 = vpop.f32.mrb[39].mxu0  ;;  %s10555_s27 = smov %s10554_s8  ;;  %v2661_v59 = vsub.s32 2, %v9373_v30  ;;  %s10556_s8 = scalar_lea.vmem [#allocation12], %s9265_s22 }
 0xd9b   : > { %v9640_v16 = vld [vmem:[%s10555_s27 + $0x8] sm:$0xff]   ;;  %s10557_s0 = smov %s10556_s8  ;;  %s10562_s27 = smov 24  }
 0xd9c   : > { %v2662_v62 = vrot.slane %v9379_v32, %v2661_v59 }
 0xe0c   : > { %v7306_v7 = vpop.permute.xlu0 %7305 }
 0xe0d   : > { %v7308_v18 = vunpack.i.h.bf16 %v7306_v7  ;;  %v7307_v19 = vunpack.i.l.bf16 %v7306_v7  ;;  %v2668_v7 = vrot.slane %v9379_v32, %v2667_v0  ;;  %v6356_v32 = vld [vmem:[%s9296_s1 + $0x4] ss:$0 sm:$0xff] }
 0xe0f   : > { %v2560_v22 = vsel %vm2558_vm13, %v2557_v21, %v7308_v18  ;;  %v2559_v23 = vsel %vm2558_vm13, %v2556_v20, %v7307_v19  ;;  %v7356_v20 = vld [vmem:[%s9288_s29 + $0x58] sm:$0xff]  }
 0xe10   : > { %v2566_v24 = vpack.c.bf16 %v2560_v22, %v2559_v23 }
 0xe12   : > { %6796 = vmatmul.mubr.msk.bf16.vlgmr.msra.gmra.mrb[36].mxu1 %vm1397_vm1, %v2566_v24 }
 0xe13   : > { %6808 = vmatpush3.bf16.msra.mxu1 %v7349_v43  ;;  %6811 = vmatprep.mubr.msk.bf16.mxu1 %vm1397_vm1, %v9636_v13 }
 0xe14   : > { %6809 = vmatprep.subr.bf16.mxu1 %v7350_v4 }
 0xe17   : > { %6810 = vmatpush3.bf16.msra.mxu1 %v7350_v4 }
 0xe18   : > { %6823 = vmatprep.subr.bf16.mxu1 %v8297_v12 }
 0xe1a   : > { %6812 = vmatmul.mubr.msk.bf16.vlgmr.msra.gmra.mrb[40].mxu1 %vm1397_vm1, %v9640_v16 }
 0xe1b   : > { %6825 = vmatprep.mubr.msk.bf16.mxu1 %vm8298_vm2, %v8297_v12 }
 0xee5   : > { %v2620_v27 = vpop.f32.mrb[36].mxu1 }
 0xee6   : > { %v2621_v29 = vadd.f32 %v6338_v26, %v2620_v27  ;;  %v6797_v11 = vpop.f32.mrb[37].mxu1 }
 0xee7   : > { %v2623_v33 = vpop.f32.mrb[38].mxu1 }
 0xee8   : > { %v9618_v6 = vadd.f32 %v7494_v34, %v2621_v29  ;;  %v2624_v35 = vadd.f32 %v6338_v26, %v2623_v33  ;;  %v6798_v36 = vpop.f32.mrb[39].mxu1 }
 0xeea   : > { %v9620_v28 = vadd.f32 %v7495_v25, %v2624_v35  ;;  %v2629_v38 = vsel %vm1397_vm1, %v9618_v6, 0.0  ;;  %v2637_v40 = vmul.f32 %v9618_v6, %v9618_v6  ;;  %v6346_v25 = vld [vmem:[%s9296_s1 + $0x3] ss:$0 sm:$0xff] }
 0xeeb   : > { %2630 = vadd.xlane.f32.xlu1 %v2629_v38 }
 0xeec   : > { %v2632_v39 = vsel %vm1397_vm1, %v9620_v28, 0.0  ;;  %v2639_v41 = vsel %vm1397_vm1, %v2637_v40, 0.0  ;;  %v2638_v42 = vmul.f32 %v9620_v28, %v9620_v28 }
 0xeed   : > { %2633 = vadd.xlane.f32.xlu0 %v2632_v39  ;;  %v6813_v21 = vpop.f32.mrb[40].mxu1 }
 0xeee   : > { %v2642_v15 = vsel %vm1397_vm1, %v2638_v42, 0.0  ;;  %v2825_v22 = vadd.f32 %v6813_v21, %v6356_v32  ;;  %v2816_v23 = vpop.f32.mrb[41].mxu1 }
 0xeef   : > { %v2817_v24 = vadd.f32 %v6356_v32, %v2816_v23  ;;  %v6814_v26 = vpop.f32.mrb[42].mxu1 }
 0xef0   : > { %v2828_v27 = vadd.f32 %v6814_v26, %v6356_v32  ;;  %v2819_v29 = vpop.f32.mrb[43].mxu1 }
 0xef1   : > { %2640 = vadd.xlane.f32.xlu0 %v2639_v41  ;;  %v2820_v11 = vadd.f32 %v6356_v32, %v2819_v29 }
 0xef2   : > { %v9674_v33 = vpack.c.bf16 %v2828_v27, %v2825_v22 }
 0xef3   : > { %v9676_v34 = vpack.c.bf16 %v2820_v11, %v2817_v24 }
 0xef4   : > { %v2956_v35 = vsel %vm1651_vm3, %v9674_v33, 0 }
 0xef5   : > { %2643 = vadd.xlane.f32.xlu0 %v2642_v15  ;;  %v2910_v36 = vsel %vm1651_vm3, %v9676_v34, 0 }
 0xef6   : > { %6824 = vmatpush3.bf16.xpose.msra.mxu1 %v2910_v36 }
 0xef7   : > { %6835 = vmatprep.subr.bf16.mxu1 %v8297_v12 }
 0xf78   : > { %v2631_v63 = vpop.xlane.xlu1 %2630 }
 0xf79   : > { %v2635_v14 = vmul.f32 0.03125, %v2631_v63 }
 0xf7a   : > { %v2634_v46 = vpop.xlane.xlu0 %2633 }
 0xf7b   : > { %v2647_v48 = vmul.f32 %v2635_v14, %v2635_v14  ;;  %v2636_v50 = vmul.f32 0.03125, %v2634_v46  ;;  %v2651_v9 = vsub.f32 %v9618_v6, %v2635_v14 }
 0xf7d   : > { %v2648_v53 = vmul.f32 %v2636_v50, %v2636_v50  ;;  %v2652_v1 = vsub.f32 %v9620_v28, %v2636_v50 }
 0xf7e   : > { %v2641_v47 = vpop.xlane.xlu0 %2640 }
 0xf7f   : > { %v2645_v10 = vmul.f32 0.03125, %v2641_v47 }
 0xf81   : > { %v2649_v51 = vsub.f32 %v2645_v10, %v2647_v48 }
 0xf82   : > { %v2644_v52 = vpop.xlane.xlu0 %2643 }
 0xf83   : > { %v2653_v54 = vadd.f32 1e-06, %v2649_v51  ;;  %v2646_v55 = vmul.f32 0.03125, %v2644_v52  ;;  %v1388_v52 = vld [vmem:[%s10556_s8] sm:$0x1] }
 0xf84   : > { %vm1390_vm14 = vcmp.gt.f32.partialorder %v1388_v52, 0.0 }
 0xf85   : > { %7410 = vrsqrt.f32 %v2653_v54  ;;  %v2650_v56 = vsub.f32 %v2646_v55, %v2648_v53  ;;  %v1389_v53 = vld [vmem:[%s10557_s0 + $0x1] sm:$0x1]  ;;  %v2998_v54 = vsel %vm1390_vm14, 1, %v8299_v49 }
 0xf86   : > { %vm1391_vm15 = vcmp.gt.f32.partialorder %v1389_v53, 0.0 }
 0xf87   : > { %v2654_v57 = vadd.f32 1e-06, %v2650_v56  ;;  %v2999_v55 = vsel %vm1391_vm15, 1, %v8299_v49  ;;  %v3003_v56 = vrot.slane %v2998_v54, %v9376_v31 }
 0xf89   : > { %7412 = vrsqrt.f32 %v2654_v57  ;;  %v3007_v57 = vrot.slane %v2999_v55, %v9376_v31  ;;  %vm9714_vm0 = vcmp.eq.s32.totalorder %v3003_v56, 1 }
 0xf8b   : > { %vm9718_vm5 = vcmp.eq.s32.totalorder %v3007_v57, 1 }
 0xf8f   : > { %v7411_v60 = vpop.eup %7410 }
 0xf90   : > { %v2657_v61 = vmul.f32 %v7411_v60, %v2651_v9 }
 0xf92   : > { %v2663_v5 = vmul.f32 %v2662_v62, %v2657_v61 }
 0xf93   : > { %v7413_v2 = vpop.eup %7412 }
 0xf94   : > { %v2658_v3 = vmul.f32 %v7413_v2, %v2652_v1  ;;  %v2669_v17 = vadd.f32 %v2668_v7, %v2663_v5 }
 0xf96   : > { %v2664_v8 = vmul.f32 %v2662_v62, %v2658_v3 }
 0xf98   : > { %v2670_v18 = vadd.f32 %v2668_v7, %v2664_v8 }
 0xf9a   : > { %v9661_v19 = vpack.c.bf16 %v2670_v18, %v2669_v17 }
 0xf9c   : > { %6804 = vmatmul.mubr.msk.bf16.vlgmr.msra.gmra.mrb[40].mxu0 %vm1397_vm1, %v9661_v19 }
 0xf9d   : > { %6816 = vmatpush3.bf16.msra.mxu0 %v7355_v58  ;;  %6819 = vmatprep.mubr.msk.bf16.mxu0 %vm1397_vm1, %v9636_v13 }
 0xf9e   : > { %6817 = vmatprep.subr.bf16.mxu0 %v7356_v20 }
 0xfa1   : > { %6818 = vmatpush3.bf16.msra.mxu0 %v7356_v20 }
 0xfa2   : > { %6829 = vmatprep.subr.bf16.mxu0 %v8297_v12 }
 0xfa4   : > { %6820 = vmatmul.mubr.msk.bf16.vlgmr.msra.gmra.mrb[44].mxu0 %vm1397_vm1, %v9640_v16 }
 0xfa5   : > { %6831 = vmatprep.mubr.msk.bf16.mxu0 %vm8298_vm2, %v8297_v12 }
 0xfaa   : > { %6830 = vmatpush3.bf16.xpose.msra.mxu0 %v2956_v35 }
 0xfab   : > { %6841 = vmatprep.subr.bf16.mxu0 %v8297_v12 }
0x106f   : > { %v2731_v38 = vpop.f32.mrb[40].mxu0 }
0x1070   : > { %v2732_v39 = vadd.f32 %v6346_v25, %v2731_v38  ;;  %v6805_v40 = vpop.f32.mrb[41].mxu0 }
0x1071   : > { %v2734_v41 = vpop.f32.mrb[42].mxu0 }
0x1072   : > { %v9685_v42 = vpack.c.bf16 %v2732_v39, %v2732_v39  ;;  %v2735_v15 = vadd.f32 %v6346_v25, %v2734_v41  ;;  %v6806_v43 = vpop.f32.mrb[43].mxu0 }
0x1074   : > { %v9687_v4 = vpack.c.bf16 %v2735_v15, %v2735_v15  ;;  %6826 = vmatmul.mubr.msk.bf16.vlgmr.msra.gmra.mrb[44].mxu1 %vm1651_vm3, %v9685_v42 }
0x1075   : > { %6837 = vmatprep.mubr.msk.bf16.mxu1 %vm8298_vm2, %v8297_v12 }
0x1076   : > { %6832 = vmatmul.mubr.msk.bf16.vlgmr.msra.gmra.mrb[48].mxu0 %vm1651_vm3, %v9687_v4 }
0x1077   : > { %v6821_v45 = vpop.f32.mrb[44].mxu0  ;;  %6843 = vmatprep.mubr.msk.bf16.mxu0 %vm8298_vm2, %v8297_v12 }
0x1078   : > { %v2898_v58 = vadd.f32 %v6821_v45, %v6367_v44  ;;  %v2889_v63 = vpop.f32.mrb[45].mxu0 }
0x1079   : > { %v2890_v46 = vadd.f32 %v6367_v44, %v2889_v63  ;;  %v6822_v14 = vpop.f32.mrb[46].mxu0 }
0x107a   : > { %v2901_v47 = vadd.f32 %v6822_v14, %v6367_v44  ;;  %v2892_v48 = vpop.f32.mrb[47].mxu0 }
0x107b   : > { %v2893_v50 = vadd.f32 %v6367_v44, %v2892_v48 }
0x107c   : > { %v9698_v10 = vpack.c.bf16 %v2901_v47, %v2898_v58 }
0x107d   : > { %v9700_v51 = vpack.c.bf16 %v2893_v50, %v2890_v46 }
0x107e   : > { %6842 = vmatpush3.bf16.msra.mxu0 %v9698_v10 }
0x107f   : > { %6836 = vmatpush3.bf16.msra.mxu1 %v9700_v51  ;;  %6853 = vmatprep.subr.bf16.mxu0 %v8297_v12 }
0x1080   : > { %6847 = vmatprep.subr.bf16.mxu1 %v8297_v12 }
0x1147   : > { %v2946_v60 = vpop.f32.mrb[44].mxu1 }
0x1148   : > { %v3010_v62 = vsel %vm9714_vm0, -1e+18, %v2946_v60  ;;  %v6827_v0 = vpop.f32.mrb[45].mxu1 }
0x1149   : > { %v2949_v1 = vpop.f32.mrb[46].mxu1  ;;  %v2992_v2 = vpop.f32.mrb[48].mxu0  ;;  %v3012_v3 = vsel %vm2555_vm12, %v3010_v62, -inf }
0x114a   : > { %v3011_v5 = vsel %vm9718_vm5, -1e+18, %v2992_v2  ;;  %3013 = vmax.xlane.f32.xlu1 %v3012_v3  ;;  %v6828_v7 = vpop.f32.mrb[47].mxu1  ;;  %v6833_v8 = vpop.f32.mrb[49].mxu0 }
0x114b   : > { %v2995_v17 = vpop.f32.mrb[50].mxu0  ;;  %v3015_v18 = vsel %vm2555_vm12, %v3011_v5, -inf }
0x114c   : > { %3016 = vmax.xlane.f32.xlu0 %v3015_v18  ;;  %v6834_v20 = vpop.f32.mrb[51].mxu0 }
0x115b   : > { %3125 = vrot.lane.b32.xlu1 %v9676_v34, %s8300_s12 }
0x11d7   : > { %v3014_v32 = vpop.xlane.xlu1 %3013 }
0x11d8   : > { %v3018_v21 = vsub.f32 %v3010_v62, %v3014_v32 }
0x11d9   : > { %v3017_v22 = vpop.xlane.xlu0 %3016 }
0x11da   : > { %v3020_v23 = vmul.f32 1.442695, %v3018_v21  ;;  %v3019_v24 = vsub.f32 %v3011_v5, %v3017_v22 }
0x11db   : > { %v3126_v36 = vpop.permute.xlu1 %3125 }
0x11dc   : > { %7414 = vpow2.f32 %v3020_v23  ;;  %v3022_v26 = vmul.f32 1.442695, %v3019_v24  ;;  %v3131_v45 = vsel %vm1651_vm3, %v3126_v36, 0 }
0x11de   : > { %7416 = vpow2.f32 %v3022_v26 }
0x11e6   : > { %v7415_v27 = vpop.eup %7414 }
0x11e7   : > { %v3024_v29 = vsel %vm2555_vm12, %v7415_v27, 0.0 }
0x11e8   : > { %v7417_v11 = vpop.eup %7416  ;;  %3025 = vadd.xlane.f32.xlu1 %v3024_v29 }
0x11e9   : > { %v3027_v35 = vsel %vm2555_vm12, %v7417_v11, 0.0 }
0x11ea   : > { %3028 = vadd.xlane.f32.xlu0 %v3027_v35 }
0x11f9   : > { %3122 = vrot.lane.b32.xlu1 %v9685_v42, %s8300_s12 }
0x11fd   : > { %3173 = vrot.lane.b32.xlu1 %v9687_v4, %s8300_s12 }
0x1200   : > { %3176 = vrot.lane.b32.xlu0 %v9674_v33, %s8300_s12 }
0x1275   : > { %v3026_v25 = vpop.xlane.xlu1 %3025 }
0x1276   : > { %7418 = vrcp.f32 %v3026_v25 }
0x1277   : > { %v3029_v38 = vpop.xlane.xlu0 %3028 }
0x1278   : > { %7420 = vrcp.f32 %v3029_v38 }
0x1279   : > { %v3123_v46 = vpop.permute.xlu1 %3122 }
0x127b   : > { %v3177_v44 = vpop.permute.xlu0 %3176 }
0x127c   : > { %v3182_v63 = vsel %vm1651_vm3, %v3177_v44, 0 }
0x127d   : > { %v3174_v14 = vpop.permute.xlu1 %3173 }
0x1280   : > { %v7419_v39 = vpop.eup %7418 }
0x1281   : > { %v3032_v40 = vmul.f32 %v7419_v39, %v7415_v27 }
0x1282   : > { %v7421_v41 = vpop.eup %7420 }
0x1283   : > { %v3033_v15 = vmul.f32 %v7421_v41, %v7417_v11  ;;  %v3034_v43 = vpack.c.bf16 %v3032_v40, %v3032_v40 }
0x1285   : > { %6838 = vmatmul.mubr.msk.bf16.vlgmr.msra.gmra.mrb[48].mxu1 %vm2555_vm12, %v3034_v43  ;;  %v3035_v58 = vpack.c.bf16 %v3033_v15, %v3033_v15 }
0x1286   : > { %6848 = vmatpush3.bf16.xpose.msra.mxu1 %v3131_v45  ;;  %6849 = vmatprep.mubr.msk.bf16.mxu1 %vm8298_vm2, %v8297_v12 }
0x1287   : > { %6844 = vmatmul.mubr.msk.bf16.vlgmr.msra.gmra.mrb[52].mxu0 %vm2555_vm12, %v3035_v58  ;;  %6859 = vmatprep.subr.bf16.mxu1 %v8297_v12 }
0x1288   : > { %6854 = vmatpush3.bf16.xpose.msra.mxu0 %v3182_v63  ;;  %6855 = vmatprep.mubr.msk.bf16.mxu0 %vm8298_vm2, %v8297_v12 }
0x1289   : > { %6865 = vmatprep.subr.bf16.mxu0 %v8297_v12 }
0x128d   : > { %6850 = vmatmul.mubr.msk.bf16.vlgmr.msra.gmra.mrb[52].mxu1 %vm1651_vm3, %v3123_v46 }
0x128e   : > { %6861 = vmatprep.mubr.msk.bf16.mxu1 %vm8298_vm2, %v8297_v12 }
0x128f   : > { %6856 = vmatmul.mubr.msk.bf16.vlgmr.msra.gmra.mrb[56].mxu0 %vm1651_vm3, %v3174_v14 }
0x1290   : > { %6867 = vmatprep.mubr.msk.bf16.mxu0 %vm8298_vm2, %v8297_v12 }
0x1358   : > { %v9754_v47 = vpop.f32.mrb[48].mxu1 }
0x1359   : > { %v6839_v48 = vpop.f32.mrb[49].mxu1 }
0x135a   : > { %v3076_v50 = vpop.f32.mrb[50].mxu1  ;;  %v9756_v52 = vpop.f32.mrb[52].mxu0 }
0x135b   : > { %v6840_v53 = vpop.f32.mrb[51].mxu1  ;;  %v6845_v54 = vpop.f32.mrb[53].mxu0 }
0x135c   : > { %v3119_v55 = vpop.f32.mrb[54].mxu0 }
0x135d   : > { %v6846_v56 = vpop.f32.mrb[55].mxu0 }
0x1360   : > { %v3167_v57 = vpop.f32.mrb[52].mxu1 }
0x1361   : > { %v3224_v60 = vsel %vm9714_vm0, -1e+18, %v3167_v57  ;;  %v6851_v62 = vpop.f32.mrb[53].mxu1 }
0x1362   : > { %v3170_v0 = vpop.f32.mrb[54].mxu1  ;;  %v3218_v1 = vpop.f32.mrb[56].mxu0  ;;  %v3226_v2 = vsel %vm2555_vm12, %v3224_v60, -inf }
0x1363   : > { %v3225_v3 = vsel %vm9718_vm5, -1e+18, %v3218_v1  ;;  %v6857_v5 = vpop.f32.mrb[57].mxu0  ;;  %3227 = vmax.xlane.f32.xlu1 %v3226_v2  ;;  %v6852_v7 = vpop.f32.mrb[55].mxu1 }
0x1364   : > { %v3221_v8 = vpop.f32.mrb[58].mxu0  ;;  %v3229_v17 = vsel %vm2555_vm12, %v3225_v3, -inf }
0x1365   : > { %3230 = vmax.xlane.f32.xlu0 %v3229_v17  ;;  %v6858_v18 = vpop.f32.mrb[59].mxu0 }
0x1374   : > { %3251 = vrot.lane.b32.xlu1 %v9700_v51, %s8300_s12 }
0x1378   : > { %3346 = vrot.lane.b32.xlu1 %v9676_v34, %s8301_s21 }
0x137c   : > { %3396 = vrot.lane.b32.xlu1 %v9674_v33, %s8301_s21 }
0x1380   : > { %3344 = vrot.lane.b32.xlu1 %v9685_v42, %s8301_s21 }
0x13f0   : > { %v3228_v20 = vpop.xlane.xlu1 %3227 }
0x13f1   : > { %v3232_v32 = vsub.f32 %v3224_v60, %v3228_v20 }
0x13f2   : > { %v3231_v21 = vpop.xlane.xlu0 %3230 }
0x13f3   : > { %v3234_v22 = vmul.f32 1.442695, %v3232_v32  ;;  %v3233_v23 = vsub.f32 %v3225_v3, %v3231_v21 }
0x13f4   : > { %v3252_v24 = vpop.permute.xlu1 %3251 }
0x13f5   : > { %7422 = vpow2.f32 %v3234_v22  ;;  %v3236_v26 = vmul.f32 1.442695, %v3233_v23  ;;  %6860 = vmatpush3.bf16.msra.mxu1 %v3252_v24 }
0x13f6   : > { %6871 = vmatprep.subr.bf16.mxu1 %v8297_v12 }
0x13f7   : > { %7424 = vpow2.f32 %v3236_v26 }
0x13f8   : > { %v3347_v40 = vpop.permute.xlu1 %3346 }
0x13f9   : > { %v3352_v44 = vsel %vm1651_vm3, %v3347_v40, 0 }
0x13fc   : > { %v3397_v58 = vpop.permute.xlu1 %3396 }
0x13fd   : > { %v3402_v46 = vsel %vm1651_vm3, %v3397_v58, 0 }
0x13ff   : > { %v7423_v27 = vpop.eup %7422 }
0x1400   : > { %v3238_v29 = vsel %vm2555_vm12, %v7423_v27, 0.0  ;;  %v3345_v14 = vpop.permute.xlu1 %3344 }
0x1401   : > { %v7425_v11 = vpop.eup %7424  ;;  %3239 = vadd.xlane.f32.xlu0 %v3238_v29 }
0x1402   : > { %v3241_v35 = vsel %vm2555_vm12, %v7425_v11, 0.0 }
0x1405   : > { %3242 = vadd.xlane.f32.xlu0 %v3241_v35 }
0x141b   : > { %3298 = vrot.lane.b32.xlu0 %v9698_v10, %s8300_s12 }
0x141f   : > { %3394 = vrot.lane.b32.xlu0 %v9687_v4, %s8301_s21 }
0x148e   : > { %v3240_v36 = vpop.xlane.xlu0 %3239 }
0x148f   : > { %7426 = vrcp.f32 %v3240_v36 }
0x1492   : > { %v3243_v25 = vpop.xlane.xlu0 %3242 }
0x1493   : > { %7428 = vrcp.f32 %v3243_v25 }
0x1496   : > { %v3299_v38 = vpop.permute.xlu0 %3298 }
0x1497   : > { %6866 = vmatpush3.bf16.msra.mxu0 %v3299_v38 }
0x1498   : > { %6877 = vmatprep.subr.bf16.mxu0 %v8297_v12 }
0x1499   : > { %v7427_v39 = vpop.eup %7426 }
0x149a   : > { %v3246_v41 = vmul.f32 %v7427_v39, %v7423_v27  ;;  %v3395_v48 = vpop.permute.xlu0 %3394 }
0x149c   : > { %v3248_v15 = vpack.c.bf16 %v3246_v41, %v3246_v41 }
0x149d   : > { %v7429_v43 = vpop.eup %7428 }
0x149e   : > { %v3247_v45 = vmul.f32 %v7429_v43, %v7425_v11  ;;  %6862 = vmatmul.mubr.msk.bf16.vlgmr.msra.gmra.mrb[56].mxu1 %vm2555_vm12, %v3248_v15 }
0x149f   : > { %6872 = vmatpush3.bf16.xpose.msra.mxu1 %v3352_v44  ;;  %6873 = vmatprep.mubr.msk.bf16.mxu1 %vm8298_vm2, %v8297_v12 }
0x14a0   : > { %v3249_v63 = vpack.c.bf16 %v3247_v45, %v3247_v45  ;;  %6883 = vmatprep.subr.bf16.mxu1 %v8297_v12 }
0x14a2   : > { %6868 = vmatmul.mubr.msk.bf16.vlgmr.msra.gmra.mrb[60].mxu0 %vm2555_vm12, %v3249_v63 }
0x14a3   : > { %6878 = vmatpush3.bf16.xpose.msra.mxu0 %v3402_v46  ;;  %6879 = vmatprep.mubr.msk.bf16.mxu0 %vm8298_vm2, %v8297_v12 }
0x14a4   : > { %6889 = vmatprep.subr.bf16.mxu0 %v8297_v12 }
0x14a6   : > { %6874 = vmatmul.mubr.msk.bf16.vlgmr.msra.gmra.mrb[60].mxu1 %vm1651_vm3, %v3345_v14 }
0x14a7   : > { %6885 = vmatprep.mubr.msk.bf16.mxu1 %vm8298_vm2, %v8297_v12 }
0x14aa   : > { %6880 = vmatmul.mubr.msk.bf16.vlgmr.msra.gmra.mrb[64].mxu0 %vm1651_vm3, %v3395_v48 }
0x14ab   : > { %6891 = vmatprep.mubr.msk.bf16.mxu0 %vm8298_vm2, %v8297_v12 }
0x1571   : > { %v9796_v50 = vpop.f32.mrb[56].mxu1 }
0x1572   : > { %v6863_v53 = vpop.f32.mrb[57].mxu1 }
0x1573   : > { %v3294_v54 = vpop.f32.mrb[58].mxu1 }
0x1574   : > { %v6864_v55 = vpop.f32.mrb[59].mxu1 }
0x1575   : > { %v9798_v56 = vpop.f32.mrb[60].mxu0 }
0x1576   : > { %v7309_v57 = vpack.i.bf16 %v9798_v56, %v9796_v50  ;;  %v6869_v60 = vpop.f32.mrb[61].mxu0 }
0x1577   : > { %v3341_v62 = vpop.f32.mrb[62].mxu0 }
0x1578   : > { %v6870_v0 = vpop.f32.mrb[63].mxu0 }
0x1579   : > { %v3388_v1 = vpop.f32.mrb[60].mxu1 }
0x157a   : > { %v3444_v2 = vsel %vm9714_vm0, -1e+18, %v3388_v1  ;;  %v6875_v3 = vpop.f32.mrb[61].mxu1 }
0x157b   : > { %v3391_v5 = vpop.f32.mrb[62].mxu1  ;;  %v3446_v7 = vsel %vm2555_vm12, %v3444_v2, -inf }
0x157c   : > { %3447 = vmax.xlane.f32.xlu1 %v3446_v7  ;;  %v6876_v8 = vpop.f32.mrb[63].mxu1 }
0x157d   : > { %v3438_v17 = vpop.f32.mrb[64].mxu0 }
0x157e   : > { %v3445_v18 = vsel %vm9718_vm5, -1e+18, %v3438_v17  ;;  %v6881_v20 = vpop.f32.mrb[65].mxu0 }
0x157f   : > { %v3441_v32 = vpop.f32.mrb[66].mxu0  ;;  %v3449_v21 = vsel %vm2555_vm12, %v3445_v18, -inf }
0x1580   : > { %3450 = vmax.xlane.f32.xlu0 %v3449_v21  ;;  %v6882_v22 = vpop.f32.mrb[67].mxu0 }
0x158d   : > { %3470 = vrot.lane.b32.xlu1 %v9700_v51, %s8301_s21 }
0x1591   : > { %3564 = vrot.lane.b32.xlu1 %v9676_v34, %s8302_s11 }
0x1595   : > { %3614 = vrot.lane.b32.xlu1 %v9674_v33, %s8302_s11 }
0x1599   : > { %3562 = vrot.lane.b32.xlu1 %v9685_v42, %s8302_s11 }
0x1609   : > { %v3448_v23 = vpop.xlane.xlu1 %3447 }
0x160a   : > { %v3452_v24 = vsub.f32 %v3444_v2, %v3448_v23 }
0x160c   : > { %v3454_v26 = vmul.f32 1.442695, %v3452_v24 }
0x160d   : > { %v3451_v27 = vpop.xlane.xlu0 %3450  ;;  %v3471_v29 = vpop.permute.xlu1 %3470 }
0x160e   : > { %7430 = vpow2.f32 %v3454_v26  ;;  %v3453_v11 = vsub.f32 %v3445_v18, %v3451_v27  ;;  %6884 = vmatpush3.bf16.msra.mxu1 %v3471_v29 }
0x160f   : > { %6895 = vmatprep.subr.bf16.mxu1 %v8297_v12 }
0x1610   : > { %v3456_v35 = vmul.f32 1.442695, %v3453_v11 }
0x1611   : > { %v3565_v41 = vpop.permute.xlu1 %3564 }
0x1612   : > { %7432 = vpow2.f32 %v3456_v35  ;;  %v3570_v45 = vsel %vm1651_vm3, %v3565_v41, 0 }
0x1615   : > { %v3615_v63 = vpop.permute.xlu1 %3614 }
0x1616   : > { %v3620_v46 = vsel %vm1651_vm3, %v3615_v63, 0  ;;  %v7360_v63 = vld [vmem:[%s9299_s28 + $0x18] sm:$0xff]  }
0x1618   : > { %v7431_v36 = vpop.eup %7430 }
0x1619   : > { %v3458_v34 = vsel %vm2555_vm12, %v7431_v36, 0.0  ;;  %v3563_v14 = vpop.permute.xlu1 %3562 }
0x161a   : > { %3459 = vadd.xlane.f32.xlu0 %v3458_v34 }
0x161c   : > { %v7433_v33 = vpop.eup %7432 }
0x161d   : > { %v3461_v25 = vsel %vm2555_vm12, %v7433_v33, 0.0 }
0x161e   : > { %3462 = vadd.xlane.f32.xlu0 %v3461_v25 }
0x1634   : > { %3516 = vrot.lane.b32.xlu0 %v9698_v10, %s8301_s21 }
0x1638   : > { %3612 = vrot.lane.b32.xlu0 %v9687_v4, %s8302_s11 }
0x16a7   : > { %v3460_v42 = vpop.xlane.xlu0 %3459 }
0x16a8   : > { %7434 = vrcp.f32 %v3460_v42 }
0x16ab   : > { %v3463_v38 = vpop.xlane.xlu0 %3462 }
0x16ac   : > { %7436 = vrcp.f32 %v3463_v38 }
0x16af   : > { %v3517_v39 = vpop.permute.xlu0 %3516 }
0x16b0   : > { %6890 = vmatpush3.bf16.msra.mxu0 %v3517_v39 }
0x16b1   : > { %6901 = vmatprep.subr.bf16.mxu0 %v8297_v12 }
0x16b2   : > { %v7435_v40 = vpop.eup %7434 }
0x16b3   : > { %v3466_v15 = vmul.f32 %v7435_v40, %v7431_v36  ;;  %v3613_v48 = vpop.permute.xlu0 %3612 }
0x16b5   : > { %v3468_v43 = vpack.c.bf16 %v3466_v15, %v3466_v15 }
0x16b6   : > { %v7437_v44 = vpop.eup %7436 }
0x16b7   : > { %v3467_v58 = vmul.f32 %v7437_v44, %v7433_v33  ;;  %6886 = vmatmul.mubr.msk.bf16.vlgmr.msra.gmra.mrb[64].mxu1 %vm2555_vm12, %v3468_v43  ;;  %v7357_v44 = vld [vmem:[%s9288_s29 + $0x60] sm:$0xff]  }
0x16b8   : > { %6896 = vmatpush3.bf16.xpose.msra.mxu1 %v3570_v45  ;;  %6897 = vmatprep.mubr.msk.bf16.mxu1 %vm8298_vm2, %v8297_v12  ;;  %v7358_v45 = vld [vmem:[%s9288_s29 + $0x68] sm:$0xff]  }
0x16b9   : > { %v3469_v4 = vpack.c.bf16 %v3467_v58, %v3467_v58  ;;  %6907 = vmatprep.subr.bf16.mxu1 %v8297_v12  ;;  %v7359_v58 = vld [vmem:[%s9299_s28 + $0x10] sm:$0xff]  }
0x16bb   : > { %6892 = vmatmul.mubr.msk.bf16.vlgmr.msra.gmra.mrb[68].mxu0 %vm2555_vm12, %v3469_v4 }
0x16bc   : > { %6902 = vmatpush3.bf16.xpose.msra.mxu0 %v3620_v46  ;;  %6903 = vmatprep.mubr.msk.bf16.mxu0 %vm8298_vm2, %v8297_v12 }
0x16bd   : > { %6913 = vmatprep.subr.bf16.mxu0 %v8297_v12 }
0x16bf   : > { %6898 = vmatmul.mubr.msk.bf16.vlgmr.msra.gmra.mrb[68].mxu1 %vm1651_vm3, %v3563_v14 }
0x16c0   : > { %6909 = vmatprep.mubr.msk.bf16.mxu1 %vm8298_vm2, %v8297_v12 }
0x16c3   : > { %6904 = vmatmul.mubr.msk.bf16.vlgmr.msra.gmra.mrb[72].mxu0 %vm1651_vm3, %v3613_v48 }
0x16c4   : > { %6915 = vmatprep.mubr.msk.bf16.mxu0 %vm8298_vm2, %v8297_v12 }
0x178a   : > { %v3510_v53 = vpop.f32.mrb[64].mxu1 }
0x178b   : > { %v6887_v54 = vpop.f32.mrb[65].mxu1 }
0x178c   : > { %v3513_v55 = vpop.f32.mrb[66].mxu1 }
0x178d   : > { %v6888_v60 = vpop.f32.mrb[67].mxu1 }
0x178e   : > { %v3556_v62 = vpop.f32.mrb[68].mxu0 }
0x178f   : > { %v7314_v0 = vpack.i.bf16 %v3556_v62, %v3510_v53  ;;  %v6893_v1 = vpop.f32.mrb[69].mxu0 }
0x1790   : > { %v3559_v2 = vpop.f32.mrb[70].mxu0 }
0x1791   : > { %v6894_v3 = vpop.f32.mrb[71].mxu0 }
0x1792   : > { %v3606_v5 = vpop.f32.mrb[68].mxu1 }
0x1793   : > { %v3662_v7 = vsel %vm9714_vm0, -1e+18, %v3606_v5  ;;  %v6899_v8 = vpop.f32.mrb[69].mxu1 }
0x1794   : > { %v3609_v17 = vpop.f32.mrb[70].mxu1  ;;  %v3664_v18 = vsel %vm2555_vm12, %v3662_v7, -inf }
0x1795   : > { %3665 = vmax.xlane.f32.xlu1 %v3664_v18  ;;  %v6900_v20 = vpop.f32.mrb[71].mxu1 }
0x1796   : > { %v3656_v32 = vpop.f32.mrb[72].mxu0 }
0x1797   : > { %v3663_v21 = vsel %vm9718_vm5, -1e+18, %v3656_v32  ;;  %v6905_v22 = vpop.f32.mrb[73].mxu0 }
0x1798   : > { %v3659_v23 = vpop.f32.mrb[74].mxu0  ;;  %v3667_v24 = vsel %vm2555_vm12, %v3663_v21, -inf }
0x1799   : > { %3668 = vmax.xlane.f32.xlu0 %v3667_v24  ;;  %v6906_v26 = vpop.f32.mrb[75].mxu0 }
0x17a6   : > { %3688 = vrot.lane.b32.xlu1 %v9700_v51, %s8302_s11 }
0x17aa   : > { %7310 = vrot.lane.b32.xlu1 %v7309_v57, %s8303_s10 }
0x17ae   : > { %7315 = vrot.lane.b32.xlu1 %v7314_v0, %s8304_s19 }
0x1822   : > { %v3666_v27 = vpop.xlane.xlu1 %3665 }
0x1823   : > { %v3670_v29 = vsub.f32 %v3662_v7, %v3666_v27 }
0x1825   : > { %v3672_v11 = vmul.f32 1.442695, %v3670_v29 }
0x1826   : > { %v3669_v35 = vpop.xlane.xlu0 %3668  ;;  %v3689_v36 = vpop.permute.xlu1 %3688 }
0x1827   : > { %7438 = vpow2.f32 %v3672_v11  ;;  %v3671_v34 = vsub.f32 %v3663_v21, %v3669_v35  ;;  %6908 = vmatpush3.bf16.msra.mxu1 %v3689_v36  ;;  %v7361_v11 = vld [vmem:[%s9288_s29 + $0x70] sm:$0xff]   ;;  %v7364_v36 = vld [vmem:[%s9288_s29 + $0x80] sm:$0xff]  }
0x1828   : > { %6919 = vmatprep.subr.bf16.mxu1 %v8297_v12 }
0x1829   : > { %v3674_v33 = vmul.f32 1.442695, %v3671_v34  ;;  %v7365_v34 = vld [vmem:[%s9288_s29 + $0x88] sm:$0xff]  }
0x182a   : > { %v7311_v3 = vpop.permute.xlu1 %7310 }
0x182b   : > { %7440 = vpow2.f32 %v3674_v33  ;;  %v7313_v7 = vunpack.i.h.bf16 %v7311_v3  ;;  %v7312_v8 = vunpack.i.l.bf16 %v7311_v3 }
0x182d   : > { %v3805_v32 = vsel %vm1651_vm3, %v9756_v52, %v7313_v7  ;;  %v3804_v21 = vsel %vm1651_vm3, %v9754_v47, %v7312_v8  ;;  %v7362_v52 = vld [vmem:[%s9288_s29 + $0x78] sm:$0xff]  }
0x182e   : > { %v7316_v5 = vpop.permute.xlu1 %7315  ;;  %v7363_v47 = vld [vmem:[%s9267_s5] sm:$0xff]   ;;  %s10563_s5 = scalar_lea.vmem [#allocation14], %s9265_s22 }
0x182f   : > { %v7318_v17 = vunpack.i.h.bf16 %v7316_v5  ;;  %v7317_v18 = vunpack.i.l.bf16 %v7316_v5  ;;  %v1392_v7 = vld [vmem:[%s10563_s5] sm:$0x1]  ;;  %s10564_s29 = smov %s10563_s5 }
0x1830   : > { %v1393_v8 = vld [vmem:[%s10564_s29 + $0x1] sm:$0x1]  ;;  %vm1394_vm6 = vcmp.gt.f32.partialorder %v1392_v7, 0.0 }
0x1831   : > { %v7439_v51 = vpop.eup %7438  ;;  %v3806_v24 = vsel %vm2555_vm12, %v3804_v21, %v7317_v18  ;;  %v3807_v26 = vsel %vm2555_vm12, %v3805_v32, %v7318_v17  ;;  %vm1395_vm7 = vcmp.gt.f32.partialorder %v1393_v8, 0.0  ;;  %v4184_v17 = vsel %vm1394_vm6, 1, %v8299_v49  ;;  %v10113_v21 = vld [vmem:[%s9316_s14] sm:$0x7] }
0x1832   : > { %v3676_v25 = vsel %vm2555_vm12, %v7439_v51, 0.0  ;;  %v4185_v18 = vsel %vm1395_vm7, 1, %v8299_v49 }
0x1833   : > { %3677 = vadd.xlane.f32.xlu0 %v3676_v25  ;;  %v9907_v25 = vld [vmem:[%s9307_s9 + $0x1] ss:$0 sm:$0xff]  ;;  %v4193_v32 = vrot.slane %v4185_v18, %v9376_v31 }
0x1835   : > { %v7441_v50 = vpop.eup %7440  ;;  %vm9959_vm9 = vcmp.eq.s32.totalorder %v4193_v32, 1 }
0x1836   : > { %v3679_v56 = vsel %vm2555_vm12, %v7441_v50, 0.0 }
0x1837   : > { %3680 = vadd.xlane.f32.xlu0 %v3679_v56 }
0x184d   : > { %3734 = vrot.lane.b32.xlu0 %v9698_v10, %s8302_s11 }
0x18c0   : > { %v3678_v57 = vpop.xlane.xlu0 %3677 }
0x18c1   : > { %7442 = vrcp.f32 %v3678_v57 }
0x18c4   : > { %v3681_v42 = vpop.xlane.xlu0 %3680 }
0x18c5   : > { %7444 = vrcp.f32 %v3681_v42  ;;  %v6410_v42 = vld [vmem:[%s9296_s1 + $0x7] ss:$0 sm:$0xff] }
0x18c8   : > { %v3735_v38 = vpop.permute.xlu0 %3734 }
0x18c9   : > { %6914 = vmatpush3.bf16.msra.mxu0 %v3735_v38 }
0x18ca   : > { %6927 = vmatprep.subr.bf16.mxu0 %v8297_v12 }
0x18cb   : > { %v7443_v39 = vpop.eup %7442 }
0x18cc   : > { %v3684_v40 = vmul.f32 %v7443_v39, %v7439_v51 }
0x18ce   : > { %v3686_v41 = vpack.c.bf16 %v3684_v40, %v3684_v40 }
0x18cf   : > { %v7445_v15 = vpop.eup %7444 }
0x18d0   : > { %v3685_v43 = vmul.f32 %v7445_v15, %v7441_v50  ;;  %6910 = vmatmul.mubr.msk.bf16.vlgmr.msra.gmra.mrb[72].mxu1 %vm2555_vm12, %v3686_v41 }
0x18d1   : > { %6923 = vmatprep.mubr.msk.bf16.mxu1 %vm8298_vm2, %v8297_v12  ;;  %6920 = vmatpush3.bf16.msra.mxu1 %v7359_v58 }
0x18d2   : > { %v3687_v10 = vpack.c.bf16 %v3685_v43, %v3685_v43  ;;  %6921 = vmatprep.subr.bf16.mxu1 %v8297_v12 }
0x18d4   : > { %6916 = vmatmul.mubr.msk.bf16.vlgmr.msra.gmra.mrb[76].mxu0 %vm2555_vm12, %v3687_v10  ;;  %v6400_v10 = vld [vmem:[%s9296_s1 + $0x6] ss:$0 sm:$0xff] }
0x18d5   : > { %6928 = vmatpush3.bf16.msra.mxu0 %v7357_v44  ;;  %6931 = vmatprep.mubr.msk.bf16.mxu0 %vm8298_vm2, %v8297_v12 }
0x18d6   : > { %6929 = vmatprep.subr.bf16.mxu0 %v8297_v12  ;;  %6922 = vmatpush3.bf16.msra.mxu1 %v7360_v63 }
0x18d7   : > { %6935 = vmatprep.subr.bf16.mxu1 %v8297_v12 }
0x18d9   : > { %6930 = vmatpush3.bf16.msra.mxu0 %v7358_v45 }
0x18da   : > { %6943 = vmatprep.subr.bf16.mxu0 %v8297_v12 }
0x18dc   : > { %6932 = vmatmul.mubr.msk.bf16.vlgmr.msra.gmra.mrb[80].mxu0 %vm1397_vm1, %v9661_v19 }
0x18dd   : > { %6947 = vmatprep.mubr.msk.bf16.mxu0 %vm8298_vm2, %v8297_v12  ;;  %6944 = vmatpush3.bf16.msra.mxu0 %v7364_v36 }
0x18de   : > { %6945 = vmatprep.subr.bf16.mxu0 %v8297_v12 }
0x18e1   : > { %6946 = vmatpush3.bf16.msra.mxu0 %v7365_v34 }
0x18e2   : > { %6957 = vmatprep.subr.bf16.mxu0 %v8297_v12 }
0x18e4   : > { %6948 = vmatmul.mubr.msk.bf16.vlgmr.msra.gmra.mrb[84].mxu0 %vm1397_vm1, %v7363_v47 }
0x18e5   : > { %6959 = vmatprep.mubr.msk.bf16.mxu0 %vm8298_vm2, %v8297_v12 }
0x19a3   : > { %v3728_v4 = vpop.f32.mrb[72].mxu1 }
0x19a4   : > { %v6911_v46 = vpop.f32.mrb[73].mxu1 }
0x19a5   : > { %v3731_v14 = vpop.f32.mrb[74].mxu1 }
0x19a6   : > { %v6912_v48 = vpop.f32.mrb[75].mxu1 }
0x19a7   : > { %v3774_v53 = vpop.f32.mrb[76].mxu0 }
0x19a8   : > { %v7319_v54 = vpack.i.bf16 %v3774_v53, %v3728_v4  ;;  %v6917_v55 = vpop.f32.mrb[77].mxu0 }
0x19a9   : > { %v3777_v60 = vpop.f32.mrb[78].mxu0 }
0x19aa   : > { %v6918_v19 = vpop.f32.mrb[79].mxu0  ;;  %7320 = vrot.lane.b32.xlu1 %v7319_v54, %s10562_s27  ;;  %v6421_v54 = vld [vmem:[%s9296_s1 + $0x8] ss:$0 sm:$0xff]  ;;  %s10569_s1 = scalar_lea.vmem [#allocation9], %s9265_s22 }
0x19ab   : > { %s10570_s8 = smov %s10569_s1 }
0x19af   : > { %v3933_v62 = vpop.f32.mrb[80].mxu0 }
0x19b0   : > { %v6933_v0 = vpop.f32.mrb[81].mxu0  ;;  %v3934_v63 = vadd.f32 %v6400_v10, %v3933_v62 }
0x19b1   : > { %v3936_v1 = vpop.f32.mrb[82].mxu0 }
0x19b2   : > { %v6934_v2 = vpop.f32.mrb[83].mxu0  ;;  %v3937_v46 = vadd.f32 %v6400_v10, %v3936_v1  ;;  %v9924_v14 = vpack.c.bf16 %v3934_v63, %v3934_v63 }
0x19b4   : > { %v9926_v48 = vpack.c.bf16 %v3937_v46, %v3937_v46 }
0x19b7   : > { %v4079_v53 = vpop.f32.mrb[84].mxu0 }
0x19b8   : > { %v6949_v55 = vpop.f32.mrb[85].mxu0  ;;  %v4080_v62 = vadd.f32 %v6421_v54, %v4079_v53 }
0x19b9   : > { %v4082_v60 = vpop.f32.mrb[86].mxu0 }
0x19ba   : > { %v6950_v19 = vpop.f32.mrb[87].mxu0  ;;  %v4083_v0 = vadd.f32 %v6421_v54, %v4082_v60  ;;  %v9937_v1 = vpack.c.bf16 %v4080_v62, %v4080_v62 }
0x19bc   : > { %v9939_v2 = vpack.c.bf16 %v4083_v0, %v4083_v0  ;;  %v4242_v3 = vsel %vm1773_vm4, %v9937_v1, 0 }
0x19be   : > { %v4288_v5 = vsel %vm1773_vm4, %v9939_v2, 0 }
0x1a1c   : > { %v7321_v20 = vpop.permute.xlu1 %7320 }
0x1a1d   : > { %v7323_v22 = vunpack.i.h.bf16 %v7321_v20  ;;  %v7322_v23 = vunpack.i.l.bf16 %v7321_v20  ;;  %v4189_v20 = vrot.slane %v4184_v17, %v9376_v31 }
0x1a1f   : > { %v3809_v27 = vsel %vm2558_vm13, %v3807_v26, %v7323_v22  ;;  %v3808_v29 = vsel %vm2558_vm13, %v3806_v24, %v7322_v23  ;;  %vm9955_vm8 = vcmp.eq.s32.totalorder %v4189_v20, 1 }
0x1a20   : > { %v3816_v35 = vpack.c.bf16 %v3809_v27, %v3808_v29 }
0x1a22   : > { %6924 = vmatmul.mubr.msk.bf16.vlgmr.msra.gmra.mrb[76].mxu1 %vm1397_vm1, %v3816_v35 }
0x1a23   : > { %6936 = vmatpush3.bf16.msra.mxu1 %v7361_v11  ;;  %6939 = vmatprep.mubr.msk.bf16.mxu1 %vm8298_vm2, %v8297_v12 }
0x1a24   : > { %6937 = vmatprep.subr.bf16.mxu1 %v8297_v12 }
0x1a27   : > { %6938 = vmatpush3.bf16.msra.mxu1 %v7362_v52 }
0x1a28   : > { %6951 = vmatprep.subr.bf16.mxu1 %v8297_v12 }
0x1a2a   : > { %6940 = vmatmul.mubr.msk.bf16.vlgmr.msra.gmra.mrb[80].mxu1 %vm1397_vm1, %v7363_v47 }
0x1a2b   : > { %6953 = vmatprep.mubr.msk.bf16.mxu1 %vm8298_vm2, %v8297_v12 }
0x1af5   : > { %v9904_v33 = vpop.f32.mrb[76].mxu1 }
0x1af6   : > { %v6925_v51 = vpop.f32.mrb[77].mxu1  ;;  %v10117_v23 = vadd.f32 %v9907_v25, %v9904_v33 }
0x1af7   : > { %v3873_v50 = vpop.f32.mrb[78].mxu1 }
0x1af8   : > { %v9910_v56 = vadd.f32 %v9907_v25, %v3873_v50  ;;  %v6926_v57 = vpop.f32.mrb[79].mxu1 }
0x1afd   : > { %v4010_v38 = vpop.f32.mrb[80].mxu1 }
0x1afe   : > { %v4011_v39 = vadd.f32 %v6410_v42, %v4010_v38  ;;  %v6941_v40 = vpop.f32.mrb[81].mxu1 }
0x1aff   : > { %v4013_v41 = vpop.f32.mrb[82].mxu1  ;;  %v9977_v40 = vld [vmem:[%s10569_s1] ss:$0 sm:$0xff] }
0x1b00   : > { %v9913_v15 = vpack.c.bf16 %v4011_v39, %v4011_v39  ;;  %v4014_v43 = vadd.f32 %v6410_v42, %v4013_v41  ;;  %v6942_v44 = vpop.f32.mrb[83].mxu1 }
0x1b02   : > { %v9916_v45 = vpack.c.bf16 %v4014_v43, %v4014_v43  ;;  %v4096_v58 = vsel %vm1651_vm3, %v9913_v15, 0  ;;  %v9981_v43 = vld [vmem:[%s10570_s8 + $0x1] ss:$0 sm:$0xff] }
0x1b03   : > { %6952 = vmatpush3.bf16.xpose.msra.mxu1 %v4096_v58 }
0x1b04   : > { %v4142_v4 = vsel %vm1651_vm3, %v9916_v45, 0  ;;  %6963 = vmatprep.subr.bf16.mxu1 %v8297_v12 }
0x1b05   : > { %6958 = vmatpush3.bf16.xpose.msra.mxu0 %v4142_v4 }
0x1b06   : > { %6969 = vmatprep.subr.bf16.mxu0 %v8297_v12 }
0x1b0a   : > { %6954 = vmatmul.mubr.msk.bf16.vlgmr.msra.gmra.mrb[84].mxu1 %vm1651_vm3, %v9924_v14 }
0x1b0b   : > { %6965 = vmatprep.mubr.msk.bf16.mxu1 %vm8298_vm2, %v8297_v12  ;;  %6964 = vmatpush3.bf16.msra.mxu1 %v4242_v3 }
0x1b0c   : > { %6960 = vmatmul.mubr.msk.bf16.vlgmr.msra.gmra.mrb[88].mxu0 %vm1651_vm3, %v9926_v48  ;;  %6975 = vmatprep.subr.bf16.mxu1 %v8297_v12 }
0x1b0d   : > { %6971 = vmatprep.mubr.msk.bf16.mxu0 %vm8298_vm2, %v8297_v12  ;;  %6970 = vmatpush3.bf16.msra.mxu0 %v4288_v5 }
0x1b0e   : > { %6981 = vmatprep.subr.bf16.mxu0 %v8297_v12 }
0x1bdd   : > { %v4132_v22 = vpop.f32.mrb[84].mxu1 }
0x1bde   : > { %v4196_v24 = vsel %vm9955_vm8, -1e+18, %v4132_v22  ;;  %v6955_v26 = vpop.f32.mrb[85].mxu1 }
0x1bdf   : > { %v4135_v27 = vpop.f32.mrb[86].mxu1  ;;  %v4178_v29 = vpop.f32.mrb[88].mxu0  ;;  %v4198_v49 = vsel %vm1651_vm3, %v4196_v24, -inf }
0x1be0   : > { %v4197_v11 = vsel %vm9959_vm9, -1e+18, %v4178_v29  ;;  %v6961_v35 = vpop.f32.mrb[89].mxu0  ;;  %4199 = vmax.xlane.f32.xlu0 %v4198_v49  ;;  %v6956_v52 = vpop.f32.mrb[87].mxu1 }
0x1be1   : > { %v4181_v47 = vpop.f32.mrb[90].mxu0  ;;  %v4201_v36 = vsel %vm1651_vm3, %v4197_v11, -inf }
0x1be2   : > { %4202 = vmax.xlane.f32.xlu1 %v4201_v36  ;;  %v6962_v34 = vpop.f32.mrb[91].mxu0 }
0x1bf3   : > { %4382 = vrot.lane.b32.xlu1 %v9916_v45, %s8300_s12 }
0x1bf7   : > { %4330 = vrot.lane.b32.xlu1 %v9924_v14, %s8300_s12 }
0x1bfb   : > { %4380 = vrot.lane.b32.xlu1 %v9926_v48, %s8300_s12 }
0x1c6d   : > { %v4200_v51 = vpop.xlane.xlu0 %4199 }
0x1c6e   : > { %v4204_v50 = vsub.f32 %v4196_v24, %v4200_v51 }
0x1c6f   : > { %v4203_v57 = vpop.xlane.xlu1 %4202 }
0x1c70   : > { %v4206_v42 = vmul.f32 1.442695, %v4204_v50  ;;  %v4205_v38 = vsub.f32 %v4197_v11, %v4203_v57 }
0x1c72   : > { %7446 = vpow2.f32 %v4206_v42  ;;  %v4208_v39 = vmul.f32 1.442695, %v4205_v38 }
0x1c73   : > { %v4383_v5 = vpop.permute.xlu1 %4382 }
0x1c74   : > { %7448 = vpow2.f32 %v4208_v39  ;;  %v4388_v18 = vsel %vm1651_vm3, %v4383_v5, 0 }
0x1c77   : > { %v4331_v20 = vpop.permute.xlu1 %4330 }
0x1c7b   : > { %v4381_v32 = vpop.permute.xlu1 %4380 }
0x1c7c   : > { %v7447_v41 = vpop.eup %7446 }
0x1c7d   : > { %v4222_v44 = vmul.f32 %v7447_v41, %v9977_v40 }
0x1c7e   : > { %v7449_v10 = vpop.eup %7448 }
0x1c7f   : > { %v4224_v58 = vsel %vm1651_vm3, %v4222_v44, 0.0  ;;  %v4223_v63 = vmul.f32 %v7449_v10, %v9981_v43 }
0x1c80   : > { %4225 = vadd.xlane.f32.xlu0 %v4224_v58 }
0x1c81   : > { %v4227_v4 = vsel %vm1651_vm3, %v4223_v63, 0.0 }
0x1c84   : > { %4228 = vadd.xlane.f32.xlu0 %v4227_v4 }
0x1c9a   : > { %4332 = vrot.lane.b32.xlu0 %v9913_v15, %s8300_s12 }
0x1d0d   : > { %v4226_v46 = vpop.xlane.xlu0 %4225 }
0x1d0e   : > { %v4230_v53 = vadd.f32 1e-13, %v4226_v46 }
0x1d10   : > { %7450 = vrcp.f32 %v4230_v53 }
0x1d11   : > { %v4229_v54 = vpop.xlane.xlu0 %4228 }
0x1d12   : > { %v4231_v55 = vadd.f32 1e-13, %v4229_v54 }
0x1d14   : > { %7452 = vrcp.f32 %v4231_v55 }
0x1d15   : > { %v4333_v62 = vpop.permute.xlu0 %4332 }
0x1d16   : > { %v4338_v8 = vsel %vm1651_vm3, %v4333_v62, 0 }
0x1d1a   : > { %v7451_v60 = vpop.eup %7450 }
0x1d1b   : > { %v4234_v19 = vmul.f32 %v7451_v60, %v4222_v44 }
0x1d1d   : > { %v4236_v0 = vpack.c.bf16 %v4234_v19, %v4234_v19 }
0x1d1e   : > { %v7453_v3 = vpop.eup %7452 }
0x1d1f   : > { %v4235_v7 = vmul.f32 %v7453_v3, %v4223_v63  ;;  %6966 = vmatmul.mubr.msk.bf16.vlgmr.msra.gmra.mrb[88].mxu1 %vm1651_vm3, %v4236_v0 }
0x1d20   : > { %6976 = vmatpush3.bf16.xpose.msra.mxu1 %v4338_v8  ;;  %6977 = vmatprep.mubr.msk.bf16.mxu1 %vm8298_vm2, %v8297_v12 }
0x1d21   : > { %v4237_v17 = vpack.c.bf16 %v4235_v7, %v4235_v7  ;;  %6987 = vmatprep.subr.bf16.mxu1 %v8297_v12 }
0x1d23   : > { %6972 = vmatmul.mubr.msk.bf16.vlgmr.msra.gmra.mrb[92].mxu0 %vm1651_vm3, %v4237_v17 }
0x1d24   : > { %6982 = vmatpush3.bf16.xpose.msra.mxu0 %v4388_v18  ;;  %6983 = vmatprep.mubr.msk.bf16.mxu0 %vm8298_vm2, %v8297_v12 }
0x1d25   : > { %6993 = vmatprep.subr.bf16.mxu0 %v8297_v12 }
0x1d27   : > { %6978 = vmatmul.mubr.msk.bf16.vlgmr.msra.gmra.mrb[92].mxu1 %vm1651_vm3, %v4331_v20 }
0x1d28   : > { %6989 = vmatprep.mubr.msk.bf16.mxu1 %vm8298_vm2, %v8297_v12 }
0x1d2b   : > { %6984 = vmatmul.mubr.msk.bf16.vlgmr.msra.gmra.mrb[96].mxu0 %vm1651_vm3, %v4381_v32 }
0x1d2c   : > { %6995 = vmatprep.mubr.msk.bf16.mxu0 %vm8298_vm2, %v8297_v12 }
0x1df2   : > { %v10005_v22 = vpop.f32.mrb[88].mxu1 }
0x1df3   : > { %v6967_v24 = vpop.f32.mrb[89].mxu1 }
0x1df4   : > { %v4281_v26 = vpop.f32.mrb[90].mxu1 }
0x1df5   : > { %v6968_v27 = vpop.f32.mrb[91].mxu1 }
0x1df6   : > { %v10007_v29 = vpop.f32.mrb[92].mxu0 }
0x1df7   : > { %v6973_v49 = vpop.f32.mrb[93].mxu0 }
0x1df8   : > { %v4327_v11 = vpop.f32.mrb[94].mxu0 }
0x1df9   : > { %v6974_v35 = vpop.f32.mrb[95].mxu0 }
0x1dfa   : > { %v4374_v52 = vpop.f32.mrb[92].mxu1 }
0x1dfb   : > { %v4430_v47 = vsel %vm9955_vm8, -1e+18, %v4374_v52  ;;  %v6979_v36 = vpop.f32.mrb[93].mxu1 }
0x1dfc   : > { %v4377_v34 = vpop.f32.mrb[94].mxu1  ;;  %v4432_v51 = vsel %vm1651_vm3, %v4430_v47, -inf }
0x1dfd   : > { %4433 = vmax.xlane.f32.xlu0 %v4432_v51  ;;  %v6980_v50 = vpop.f32.mrb[95].mxu1 }
0x1dfe   : > { %v4424_v57 = vpop.f32.mrb[96].mxu0 }
0x1dff   : > { %v4431_v42 = vsel %vm9959_vm9, -1e+18, %v4424_v57  ;;  %v6985_v38 = vpop.f32.mrb[97].mxu0 }
0x1e00   : > { %v4427_v39 = vpop.f32.mrb[98].mxu0  ;;  %v4435_v41 = vsel %vm1651_vm3, %v4431_v42, -inf }
0x1e01   : > { %4436 = vmax.xlane.f32.xlu1 %v4435_v41  ;;  %v6986_v44 = vpop.f32.mrb[99].mxu0 }
0x1e12   : > { %4508 = vrot.lane.b32.xlu1 %v9939_v2, %s8300_s12 }
0x1e16   : > { %4558 = vrot.lane.b32.xlu1 %v9913_v15, %s8301_s21 }
0x1e1a   : > { %4608 = vrot.lane.b32.xlu1 %v9916_v45, %s8301_s21 }
0x1e1e   : > { %4606 = vrot.lane.b32.xlu1 %v9926_v48, %s8301_s21 }
0x1e8a   : > { %v4434_v10 = vpop.xlane.xlu0 %4433 }
0x1e8b   : > { %v4438_v58 = vsub.f32 %v4430_v47, %v4434_v10 }
0x1e8d   : > { %v4440_v63 = vmul.f32 1.442695, %v4438_v58 }
0x1e8e   : > { %v4437_v4 = vpop.xlane.xlu1 %4436 }
0x1e8f   : > { %7454 = vpow2.f32 %v4440_v63  ;;  %v4439_v46 = vsub.f32 %v4431_v42, %v4437_v4 }
0x1e91   : > { %v4442_v53 = vmul.f32 1.442695, %v4439_v46 }
0x1e92   : > { %v4509_v54 = vpop.permute.xlu1 %4508 }
0x1e93   : > { %7456 = vpow2.f32 %v4442_v53  ;;  %v4514_v55 = vsel %vm1773_vm4, %v4509_v54, 0 }
0x1e94   : > { %6994 = vmatpush3.bf16.msra.mxu0 %v4514_v55 }
0x1e95   : > { %7005 = vmatprep.subr.bf16.mxu0 %v8297_v12 }
0x1e96   : > { %v4559_v26 = vpop.permute.xlu1 %4558 }
0x1e97   : > { %v4564_v35 = vsel %vm1651_vm3, %v4559_v26, 0 }
0x1e99   : > { %v7455_v60 = vpop.eup %7454 }
0x1e9a   : > { %v4444_v19 = vmul.f32 %v7455_v60, %v9977_v40  ;;  %v4609_v47 = vpop.permute.xlu1 %4608 }
0x1e9b   : > { %v4614_v34 = vsel %vm1651_vm3, %v4609_v47, 0 }
0x1e9c   : > { %v4446_v62 = vsel %vm1651_vm3, %v4444_v19, 0.0 }
0x1e9d   : > { %v7457_v0 = vpop.eup %7456  ;;  %4447 = vadd.xlane.f32.xlu0 %v4446_v62 }
0x1e9e   : > { %v4445_v3 = vmul.f32 %v7457_v0, %v9981_v43  ;;  %v4607_v50 = vpop.permute.xlu1 %4606 }
0x1ea0   : > { %v4449_v5 = vsel %vm1651_vm3, %v4445_v3, 0.0 }
0x1ea1   : > { %4450 = vadd.xlane.f32.xlu0 %v4449_v5 }
0x1eb7   : > { %4460 = vrot.lane.b32.xlu0 %v9937_v1, %s8300_s12 }
0x1ebb   : > { %4556 = vrot.lane.b32.xlu0 %v9924_v14, %s8301_s21 }
0x1f2a   : > { %v4448_v7 = vpop.xlane.xlu0 %4447 }
0x1f2b   : > { %v4452_v8 = vadd.f32 1e-13, %v4448_v7 }
0x1f2d   : > { %7458 = vrcp.f32 %v4452_v8 }
0x1f2e   : > { %v4451_v17 = vpop.xlane.xlu0 %4450 }
0x1f2f   : > { %v4453_v18 = vadd.f32 1e-13, %v4451_v17 }
0x1f31   : > { %7460 = vrcp.f32 %v4453_v18 }
0x1f32   : > { %v4461_v20 = vpop.permute.xlu0 %4460 }
0x1f33   : > { %v4466_v32 = vsel %vm1773_vm4, %v4461_v20, 0 }
0x1f34   : > { %6988 = vmatpush3.bf16.msra.mxu1 %v4466_v32 }
0x1f35   : > { %6999 = vmatprep.subr.bf16.mxu1 %v8297_v12 }
0x1f36   : > { %v4557_v51 = vpop.permute.xlu0 %4556 }
0x1f37   : > { %v7459_v24 = vpop.eup %7458 }
0x1f38   : > { %v4456_v27 = vmul.f32 %v7459_v24, %v4444_v19 }
0x1f3a   : > { %v4458_v49 = vpack.c.bf16 %v4456_v27, %v4456_v27 }
0x1f3b   : > { %v7461_v11 = vpop.eup %7460 }
0x1f3c   : > { %v4457_v52 = vmul.f32 %v7461_v11, %v4445_v3  ;;  %6990 = vmatmul.mubr.msk.bf16.vlgmr.msra.gmra.mrb[96].mxu1 %vm1651_vm3, %v4458_v49 }
0x1f3d   : > { %7000 = vmatpush3.bf16.xpose.msra.mxu1 %v4564_v35  ;;  %7001 = vmatprep.mubr.msk.bf16.mxu1 %vm8298_vm2, %v8297_v12 }
0x1f3e   : > { %v4459_v36 = vpack.c.bf16 %v4457_v52, %v4457_v52  ;;  %7011 = vmatprep.subr.bf16.mxu1 %v8297_v12 }
0x1f40   : > { %6996 = vmatmul.mubr.msk.bf16.vlgmr.msra.gmra.mrb[100].mxu0 %vm1651_vm3, %v4459_v36 }
0x1f41   : > { %7006 = vmatpush3.bf16.xpose.msra.mxu0 %v4614_v34  ;;  %7007 = vmatprep.mubr.msk.bf16.mxu0 %vm8298_vm2, %v8297_v12 }
0x1f42   : > { %7017 = vmatprep.subr.bf16.mxu0 %v8297_v12 }
0x1f44   : > { %7002 = vmatmul.mubr.msk.bf16.vlgmr.msra.gmra.mrb[100].mxu1 %vm1651_vm3, %v4557_v51 }
0x1f45   : > { %7013 = vmatprep.mubr.msk.bf16.mxu1 %vm8298_vm2, %v8297_v12 }
0x1f48   : > { %7008 = vmatmul.mubr.msk.bf16.vlgmr.msra.gmra.mrb[104].mxu0 %vm1651_vm3, %v4607_v50 }
0x1f49   : > { %7019 = vmatprep.mubr.msk.bf16.mxu0 %vm8298_vm2, %v8297_v12 }
0x200f   : > { %v10051_v57 = vpop.f32.mrb[96].mxu1 }
0x2010   : > { %v6991_v42 = vpop.f32.mrb[97].mxu1 }
0x2011   : > { %v4505_v38 = vpop.f32.mrb[98].mxu1 }
0x2012   : > { %v6992_v39 = vpop.f32.mrb[99].mxu1 }
0x2013   : > { %v10053_v41 = vpop.f32.mrb[100].mxu0 }
0x2014   : > { %v7324_v44 = vpack.i.bf16 %v10053_v41, %v10051_v57  ;;  %v6997_v10 = vpop.f32.mrb[101].mxu0 }
0x2015   : > { %v4553_v58 = vpop.f32.mrb[102].mxu0 }
0x2016   : > { %v6998_v63 = vpop.f32.mrb[103].mxu0 }
0x2017   : > { %v4600_v4 = vpop.f32.mrb[100].mxu1 }
0x2018   : > { %v4656_v46 = vsel %vm9955_vm8, -1e+18, %v4600_v4  ;;  %v7003_v53 = vpop.f32.mrb[101].mxu1 }
0x2019   : > { %v4658_v54 = vsel %vm1651_vm3, %v4656_v46, -inf  ;;  %v4603_v55 = vpop.f32.mrb[102].mxu1 }
0x201a   : > { %4659 = vmax.xlane.f32.xlu0 %v4658_v54  ;;  %v7004_v60 = vpop.f32.mrb[103].mxu1 }
0x201b   : > { %v4650_v19 = vpop.f32.mrb[104].mxu0 }
0x201c   : > { %v4657_v62 = vsel %vm9959_vm9, -1e+18, %v4650_v19  ;;  %v7009_v0 = vpop.f32.mrb[105].mxu0 }
0x201d   : > { %v4661_v3 = vsel %vm1651_vm3, %v4657_v62, -inf  ;;  %v4653_v5 = vpop.f32.mrb[106].mxu0 }
0x201e   : > { %4662 = vmax.xlane.f32.xlu1 %v4661_v3  ;;  %v7010_v7 = vpop.f32.mrb[107].mxu0 }
0x202f   : > { %4734 = vrot.lane.b32.xlu1 %v9939_v2, %s8301_s21 }
0x2033   : > { %4784 = vrot.lane.b32.xlu1 %v9913_v15, %s8302_s11 }
0x2037   : > { %4834 = vrot.lane.b32.xlu1 %v9916_v45, %s8302_s11 }
0x203b   : > { %4832 = vrot.lane.b32.xlu1 %v9926_v48, %s8302_s11 }
0x20a7   : > { %v4660_v8 = vpop.xlane.xlu0 %4659 }
0x20a8   : > { %v4664_v17 = vsub.f32 %v4656_v46, %v4660_v8 }
0x20aa   : > { %v4666_v18 = vmul.f32 1.442695, %v4664_v17 }
0x20ab   : > { %v4663_v20 = vpop.xlane.xlu1 %4662 }
0x20ac   : > { %7462 = vpow2.f32 %v4666_v18  ;;  %v4665_v32 = vsub.f32 %v4657_v62, %v4663_v20 }
0x20ae   : > { %v4668_v24 = vmul.f32 1.442695, %v4665_v32 }
0x20af   : > { %v4735_v26 = vpop.permute.xlu1 %4734 }
0x20b0   : > { %7464 = vpow2.f32 %v4668_v24  ;;  %v4740_v27 = vsel %vm1773_vm4, %v4735_v26, 0 }
0x20b1   : > { %7018 = vmatpush3.bf16.msra.mxu0 %v4740_v27 }
0x20b2   : > { %7029 = vmatprep.subr.bf16.mxu0 %v8297_v12 }
0x20b3   : > { %v4785_v38 = vpop.permute.xlu1 %4784 }
0x20b4   : > { %v4790_v63 = vsel %vm1651_vm3, %v4785_v38, 0 }
0x20b6   : > { %v7463_v15 = vpop.eup %7462 }
0x20b7   : > { %v4670_v45 = vmul.f32 %v7463_v15, %v9977_v40  ;;  %v4835_v4 = vpop.permute.xlu1 %4834 }
0x20b8   : > { %v4840_v53 = vsel %vm1651_vm3, %v4835_v4, 0 }
0x20b9   : > { %v4672_v49 = vsel %vm1651_vm3, %v4670_v45, 0.0 }
0x20ba   : > { %v7465_v48 = vpop.eup %7464  ;;  %4673 = vadd.xlane.f32.xlu0 %v4672_v49 }
0x20bb   : > { %v4671_v11 = vmul.f32 %v7465_v48, %v9981_v43  ;;  %v4833_v55 = vpop.permute.xlu1 %4832 }
0x20bd   : > { %v4675_v35 = vsel %vm1651_vm3, %v4671_v11, 0.0 }
0x20be   : > { %4676 = vadd.xlane.f32.xlu0 %v4675_v35 }
0x20d4   : > { %4686 = vrot.lane.b32.xlu0 %v9937_v1, %s8301_s21 }
0x20d8   : > { %4782 = vrot.lane.b32.xlu0 %v9924_v14, %s8302_s11 }
0x2147   : > { %v4674_v52 = vpop.xlane.xlu0 %4673 }
0x2148   : > { %v4678_v47 = vadd.f32 1e-13, %v4674_v52  ;;  %v5109_v52 = vrot.slane %v10113_v21, %v9376_v31 }
0x214a   : > { %7466 = vrcp.f32 %v4678_v47  ;;  %v5110_v47 = vmul.f32 %v5109_v52, %v10117_v23 }
0x214b   : > { %v4677_v36 = vpop.xlane.xlu0 %4676 }
0x214c   : > { %v4679_v34 = vadd.f32 1e-13, %v4677_v36 }
0x214e   : > { %7468 = vrcp.f32 %v4679_v34 }
0x214f   : > { %v4687_v51 = vpop.permute.xlu0 %4686 }
0x2150   : > { %v4692_v50 = vsel %vm1773_vm4, %v4687_v51, 0 }
0x2151   : > { %7012 = vmatpush3.bf16.msra.mxu1 %v4692_v50 }
0x2152   : > { %7023 = vmatprep.subr.bf16.mxu1 %v8297_v12 }
0x2153   : > { %v4783_v54 = vpop.permute.xlu0 %4782 }
0x2154   : > { %v7467_v42 = vpop.eup %7466 }
0x2155   : > { %v4682_v39 = vmul.f32 %v7467_v42, %v4670_v45 }
0x2157   : > { %v4684_v10 = vpack.c.bf16 %v4682_v39, %v4682_v39 }
0x2158   : > { %v7469_v58 = vpop.eup %7468 }
0x2159   : > { %v4683_v14 = vmul.f32 %v7469_v58, %v4671_v11  ;;  %7014 = vmatmul.mubr.msk.bf16.vlgmr.msra.gmra.mrb[104].mxu1 %vm1651_vm3, %v4684_v10 }
0x215a   : > { %7024 = vmatpush3.bf16.xpose.msra.mxu1 %v4790_v63  ;;  %7025 = vmatprep.mubr.msk.bf16.mxu1 %vm8298_vm2, %v8297_v12 }
0x215b   : > { %v4685_v46 = vpack.c.bf16 %v4683_v14, %v4683_v14  ;;  %7035 = vmatprep.subr.bf16.mxu1 %v8297_v12 }
0x215d   : > { %7020 = vmatmul.mubr.msk.bf16.vlgmr.msra.gmra.mrb[108].mxu0 %vm1651_vm3, %v4685_v46 }
0x215e   : > { %7030 = vmatpush3.bf16.xpose.msra.mxu0 %v4840_v53  ;;  %7031 = vmatprep.mubr.msk.bf16.mxu0 %vm8298_vm2, %v8297_v12 }
0x215f   : > { %7041 = vmatprep.subr.bf16.mxu0 %v8297_v12 }
0x2161   : > { %7026 = vmatmul.mubr.msk.bf16.vlgmr.msra.gmra.mrb[108].mxu1 %vm1651_vm3, %v4783_v54 }
0x2162   : > { %7037 = vmatprep.mubr.msk.bf16.mxu1 %vm8298_vm2, %v8297_v12 }
0x2165   : > { %7032 = vmatmul.mubr.msk.bf16.vlgmr.msra.gmra.mrb[112].mxu0 %vm1651_vm3, %v4833_v55 }
0x2166   : > { %7043 = vmatprep.mubr.msk.bf16.mxu0 %vm8298_vm2, %v8297_v12 }
0x222c   : > { %v4728_v60 = vpop.f32.mrb[104].mxu1 }
0x222d   : > { %v7015_v19 = vpop.f32.mrb[105].mxu1 }
0x222e   : > { %v4731_v62 = vpop.f32.mrb[106].mxu1  ;;  %v7366_v19 = vld [vmem:[%s9299_s28 + $0x20] sm:$0xff]  }
0x222f   : > { %v7016_v0 = vpop.f32.mrb[107].mxu1  ;;  %v7367_v62 = vld [vmem:[%s9299_s28 + $0x28] sm:$0xff]   ;;  %s10573_s28 = sld [smem:[#allocation56_spill]] }
0x2230   : > { %v4776_v3 = vpop.f32.mrb[108].mxu0 }
0x2231   : > { %v7329_v5 = vpack.i.bf16 %v4776_v3, %v4728_v60  ;;  %v7021_v7 = vpop.f32.mrb[109].mxu0 }
0x2232   : > { %v4779_v8 = vpop.f32.mrb[110].mxu0 }
0x2233   : > { %v7022_v17 = vpop.f32.mrb[111].mxu0 }
0x2234   : > { %v4826_v18 = vpop.f32.mrb[108].mxu1 }
0x2235   : > { %v4882_v20 = vsel %vm9955_vm8, -1e+18, %v4826_v18  ;;  %v7027_v32 = vpop.f32.mrb[109].mxu1  ;;  %p6465_p2 = scmp.ne.s32.totalorder %s10573_s28, 1 }
0x2236   : > { %v4884_v24 = vsel %vm1651_vm3, %v4882_v20, -inf  ;;  %v4829_v26 = vpop.f32.mrb[110].mxu1 }
0x2237   : > { %4885 = vmax.xlane.f32.xlu0 %v4884_v24  ;;  %v7028_v27 = vpop.f32.mrb[111].mxu1  ;;  %v5111_v24 = vmul.f32 %v5109_v52, %v9910_v56 }
0x2238   : > { %v4876_v15 = vpop.f32.mrb[112].mxu0 }
0x2239   : > { %v4883_v45 = vsel %vm9959_vm9, -1e+18, %v4876_v15  ;;  %v7033_v49 = vpop.f32.mrb[113].mxu0  ;;  %v5115_v26 = vsel %vm1397_vm1, %v5111_v24, 0.0 }
0x223a   : > { %v4887_v48 = vsel %vm1651_vm3, %v4883_v45, -inf  ;;  %v4879_v11 = vpop.f32.mrb[114].mxu0 }
0x223b   : > { %4888 = vmax.xlane.f32.xlu1 %v4887_v48  ;;  %v7034_v35 = vpop.f32.mrb[115].mxu0 }
0x224c   : > { %4960 = vrot.lane.b32.xlu1 %v9939_v2, %s8302_s11  ;;  %v5112_v2 = vsel %vm1397_vm1, %v5110_v47, 0.0 }
0x2250   : > { %7325 = vrot.lane.b32.xlu1 %v7324_v44, %s8303_s10 }
0x2254   : > { %7330 = vrot.lane.b32.xlu1 %v7329_v5, %s8304_s19 }
0x2278   : > { %5113 = vadd.xlane.f32.xlu1 %v5112_v2 }
0x22c4   : > { %v4886_v36 = vpop.xlane.xlu0 %4885 }
0x22c5   : > { %v4890_v34 = vsub.f32 %v4882_v20, %v4886_v36 }
0x22c7   : > { %v4892_v57 = vmul.f32 1.442695, %v4890_v34 }
0x22c8   : > { %v4889_v41 = vpop.xlane.xlu1 %4888 }
0x22c9   : > { %7470 = vpow2.f32 %v4892_v57  ;;  %v4891_v44 = vsub.f32 %v4883_v45, %v4889_v41 }
0x22cb   : > { %v4894_v51 = vmul.f32 1.442695, %v4891_v44 }
0x22cc   : > { %v4961_v50 = vpop.permute.xlu1 %4960 }
0x22cd   : > { %7472 = vpow2.f32 %v4894_v51  ;;  %v4966_v33 = vsel %vm1773_vm4, %v4961_v50, 0 }
0x22ce   : > { %7042 = vmatpush3.bf16.msra.mxu0 %v4966_v33 }
0x22cf   : > { %7055 = vmatprep.subr.bf16.mxu0 %v8297_v12 }
0x22d0   : > { %v7326_v27 = vpop.permute.xlu1 %7325 }
0x22d1   : > { %v7328_v45 = vunpack.i.h.bf16 %v7326_v27  ;;  %v7327_v49 = vunpack.i.l.bf16 %v7326_v27 }
0x22d3   : > { %v7471_v31 = vpop.eup %7470  ;;  %v5033_v47 = vsel %vm1651_vm3, %v10007_v29, %v7328_v45  ;;  %v5032_v2 = vsel %vm1651_vm3, %v10005_v22, %v7327_v49  ;;  %v6449_v29 = vld [vmem:[%s9307_s9 + $0x2] ss:$0 sm:$0xff]  ;;  %v5121_v22 = vrot.slane %v10113_v21, %v1437_v37 }
0x22d4   : > { %v4896_v25 = vmul.f32 %v7471_v31, %v9977_v40  ;;  %v7331_v15 = vpop.permute.xlu1 %7330 }
0x22d5   : > { %v7333_v48 = vunpack.i.h.bf16 %v7331_v15  ;;  %v7332_v11 = vunpack.i.l.bf16 %v7331_v15 }
0x22d6   : > { %v4898_v42 = vsel %vm1651_vm3, %v4896_v25, 0.0 }
0x22d7   : > { %v7473_v38 = vpop.eup %7472  ;;  %4899 = vadd.xlane.f32.xlu0 %v4898_v42  ;;  %v5035_v52 = vsel %vm2555_vm12, %v5033_v47, %v7333_v48  ;;  %v5034_v57 = vsel %vm2555_vm12, %v5032_v2, %v7332_v11  ;;  %v7368_v2 = vld [vmem:[%s9319_s7] sm:$0xff]  }
0x22d8   : > { %v4897_v39 = vmul.f32 %v7473_v38, %v9981_v43 }
0x22da   : > { %v4901_v10 = vsel %vm1651_vm3, %v4897_v39, 0.0 }
0x22db   : > { %4902 = vadd.xlane.f32.xlu0 %v4901_v10 }
0x22f1   : > { %4912 = vrot.lane.b32.xlu0 %v9937_v1, %s8302_s11 }
0x2305   : > { %v5114_v37 = vpop.xlane.xlu1 %5113 }
0x2364   : > { %v4900_v58 = vpop.xlane.xlu0 %4899 }
0x2365   : > { %v4904_v63 = vadd.f32 1e-13, %v4900_v58 }
0x2367   : > { %7474 = vrcp.f32 %v4904_v63 }
0x2368   : > { %v4903_v14 = vpop.xlane.xlu0 %4902 }
0x2369   : > { %v4905_v4 = vadd.f32 1e-13, %v4903_v14 }
0x236b   : > { %7476 = vrcp.f32 %v4905_v4  ;;  %v5135_v4 = vrot.slane %v10113_v21, %v2661_v59 }
0x236c   : > { %v4913_v40 = vpop.permute.xlu0 %4912 }
0x236d   : > { %v4918_v46 = vsel %vm1773_vm4, %v4913_v40, 0 }
0x236e   : > { %7036 = vmatpush3.bf16.msra.mxu1 %v4918_v46 }
0x236f   : > { %7047 = vmatprep.subr.bf16.mxu1 %v8297_v12 }
0x2371   : > { %v7475_v43 = vpop.eup %7474 }
0x2372   : > { %v4908_v53 = vmul.f32 %v7475_v43, %v4896_v25 }
0x2374   : > { %v4910_v54 = vpack.c.bf16 %v4908_v53, %v4908_v53 }
0x2375   : > { %v7477_v55 = vpop.eup %7476 }
0x2376   : > { %v4909_v60 = vmul.f32 %v7477_v55, %v4897_v39  ;;  %7038 = vmatmul.mubr.msk.bf16.vlgmr.msra.gmra.mrb[112].mxu1 %vm1651_vm3, %v4910_v54 }
0x2377   : > { %7051 = vmatprep.mubr.msk.bf16.mxu1 %vm8298_vm2, %v8297_v12  ;;  %7048 = vmatpush3.bf16.msra.mxu1 %v7366_v19 }
0x2378   : > { %v4911_v1 = vpack.c.bf16 %v4909_v60, %v4909_v60  ;;  %7049 = vmatprep.subr.bf16.mxu1 %v8297_v12 }
0x237a   : > { %7044 = vmatmul.mubr.msk.bf16.vlgmr.msra.gmra.mrb[116].mxu0 %vm1651_vm3, %v4911_v1  ;;  %vm8307_vm3 = vmmov (!%p6465_p2), 0  }
0x237b   : > { %7059 = vmatprep.mubr.msk.bf16.mxu0 %vm8298_vm2, %v8297_v12  ;;  %7050 = vmatpush3.bf16.msra.mxu1 %v7367_v62 }
0x237c   : > { %7063 = vmatprep.subr.bf16.mxu1 %v8297_v12  ;;  %7056 = vmatpush3.bf16.msra.mxu0 %v7368_v2 }
0x237d   : > { %7057 = vmatprep.subr.bf16.mxu0 %v8297_v12 }
0x2449   : > { %v4954_v0 = vpop.f32.mrb[112].mxu1 }
0x244a   : > { %v7039_v3 = vpop.f32.mrb[113].mxu1 }
0x244b   : > { %v4957_v5 = vpop.f32.mrb[114].mxu1 }
0x244c   : > { %v7040_v7 = vpop.f32.mrb[115].mxu1 }
0x244d   : > { %v5002_v8 = vpop.f32.mrb[116].mxu0 }
0x244e   : > { %v7334_v17 = vpack.i.bf16 %v5002_v8, %v4954_v0  ;;  %v7045_v18 = vpop.f32.mrb[117].mxu0 }
0x244f   : > { %v5005_v20 = vpop.f32.mrb[118].mxu0 }
0x2450   : > { %v7046_v32 = vpop.f32.mrb[119].mxu0  ;;  %7335 = vrot.lane.b32.xlu0 %v7334_v17, %s10562_s27 }
0x246f   : > { %5116 = vadd.xlane.f32.xlu0 %v5115_v26 }
0x24c2   : > { %v7336_v35 = vpop.permute.xlu0 %7335 }
0x24c3   : > { %v7338_v36 = vunpack.i.h.bf16 %v7336_v35  ;;  %v7337_v34 = vunpack.i.l.bf16 %v7336_v35 }
0x24c5   : > { %v5037_v41 = vsel %vm2558_vm13, %v5035_v52, %v7338_v36  ;;  %v5036_v44 = vsel %vm2558_vm13, %v5034_v57, %v7337_v34  ;;  %v7369_v36 = vld [vmem:[%s9319_s7 + $0x8] sm:$0xff]   ;;  %s10571_s7 = scalar_lea.vmem [#allocation26], %s9283_s2 }
0x24c6   : > { %v5044_v51 = vpack.c.bf16 %v5037_v41, %v5036_v44  ;;  %7058 = vmatpush3.bf16.msra.mxu0 %v7369_v36 }
0x24c8   : > { %7052 = vmatmul.mubr.msk.bf16.vlgmr.msra.gmra.mrb[116].mxu1 %vm1397_vm1, %v5044_v51 }
0x24c9   : > { %7071 = vmatprep.mubr.msk.bf16.mxu1 %vm8298_vm2, %v8297_v12  ;;  %vm5348_vm2 = vcmask 523264  }
0x24fc   : > { %v5117_v14 = vpop.xlane.xlu0 %5116 }
0x259b   : > { %v5098_v50 = vpop.f32.mrb[116].mxu1 }
0x259c   : > { %v5099_v33 = vadd.f32 %v6449_v29, %v5098_v50  ;;  %v7053_v31 = vpop.f32.mrb[117].mxu1 }
0x259d   : > { %v5101_v25 = vpop.f32.mrb[118].mxu1 }
0x259e   : > { %v5122_v42 = vmul.f32 %v5121_v22, %v5099_v33  ;;  %v5102_v38 = vadd.f32 %v6449_v29, %v5101_v25  ;;  %v7054_v39 = vpop.f32.mrb[119].mxu1 }
0x25a0   : > { %v5123_v10 = vmul.f32 %v5121_v22, %v5102_v38  ;;  %v5124_v58 = vsel %vm1397_vm1, %v5122_v42, 0.0 }
0x25a1   : > { %5125 = vadd.xlane.f32.xlu0 %v5124_v58 }
0x25a2   : > { %v5127_v63 = vsel %vm1397_vm1, %v5123_v10, 0.0 }
0x25a5   : > { %5128 = vadd.xlane.f32.xlu0 %v5127_v63  ;;  %v7496_v63 = vld [vmem:[%s9310_s6] sm:$0x3f]  ;;  %s10572_s6 = scalar_lea.vmem [#allocation29], %s9283_s2 }
0x262e   : > { %v5126_v40 = vpop.xlane.xlu0 %5125 }
0x262f   : > { %v5130_v46 = vadd.f32 %v5126_v40, %v5114_v37 }
0x2631   : > { %v5136_v43 = vadd.f32 %v5135_v4, %v5130_v46 }
0x2632   : > { %v5129_v53 = vpop.xlane.xlu0 %5128 }
0x2633   : > { %v6453_v54 = vmul.f32 -1.442695, %v5136_v43  ;;  %v5131_v55 = vadd.f32 %v5129_v53, %v5117_v14 }
0x2635   : > { %7478 = vpow2.f32 %v6453_v54  ;;  %v5137_v60 = vadd.f32 %v5135_v4, %v5131_v55  ;;  %v5218_v4 = vsub.s32 5, %v9373_v30 }
0x2637   : > { %v6454_v1 = vmul.f32 -1.442695, %v5137_v60  ;;  %v5219_v53 = vrot.slane %v7496_v63, %v5218_v4 }
0x2639   : > { %7480 = vpow2.f32 %v6454_v1 }
0x263f   : > { %v7479_v19 = vpop.eup %7478 }
0x2640   : > { %v5144_v62 = vadd.f32 1.0, %v7479_v19  ;;  %v7370_v19 = vld [vmem:[%s9328_s3] sm:$0xff]  }
0x2641   : > { %7064 = vmatpush3.bf16.msra.mxu1 %v7370_v19 }
0x2642   : > { %7482 = vrcp.f32 %v5144_v62  ;;  %7065 = vmatprep.subr.bf16.mxu1 %v8297_v12  ;;  %v7372_v62 = vld [vmem:[%s9328_s3 + $0x10] sm:$0xff]  }
0x2643   : > { %v7481_v0 = vpop.eup %7480 }
0x2644   : > { %v5145_v3 = vadd.f32 1.0, %v7481_v0  ;;  %v7373_v0 = vld [vmem:[%s9328_s3 + $0x18] sm:$0xff]  }
0x2646   : > { %7484 = vrcp.f32 %v5145_v3  ;;  %v6455_v3 = vld [vmem:[%s10571_s7] ss:$0 sm:$0xff] }
0x264c   : > { %v7483_v5 = vpop.eup %7482 }
0x264d   : > { %5152 = vperm.xlu1 %7339, %v7483_v5   ;;  %v5162_v59 = vsub.f32 1.0, %v7483_v5 }
0x2650   : > { %v7485_v21 = vpop.eup %7484 }
0x2651   : > { %5166 = vperm.xlu1 %7339, %v5162_v59   ;;  %5157 = vperm.xlu0 %7340, %v7485_v21   ;;  %v5163_v7 = vsub.f32 1.0, %v7485_v21 }
0x2655   : > { %5171 = vperm.xlu1 %7339, %v5163_v7  }
0x26cc   : > { %v5153_v8 = vpop.permute.xlu1 %5152 }
0x26cd   : > { %v5160_v18 = vmul.f32 %v5153_v8, %v10117_v23 }
0x26d0   : > { %v5167_v17 = vpop.permute.xlu1 %5166  ;;  %v5158_v32 = vpop.permute.xlu0 %5157 }
0x26d1   : > { %v5174_v20 = vmul.f32 %v5167_v17, %v5099_v33  ;;  %v5161_v15 = vmul.f32 %v5158_v32, %v9910_v56 }
0x26d3   : > { %v5176_v24 = vadd.f32 %v5174_v20, %v5160_v18 }
0x26d4   : > { %v5172_v26 = vpop.permute.xlu1 %5171 }
0x26d5   : > { %v10168_v27 = vadd.f32 %v5176_v24, %v9618_v6  ;;  %v5175_v45 = vmul.f32 %v5172_v26, %v5102_v38  ;;  %v5212_v38 = vsub.s32 4, %v9373_v30  ;;  %v7371_v30 = vld [vmem:[%s9328_s3 + $0x8] sm:$0xff]  }
0x26d6   : > { %7066 = vmatpush3.bf16.msra.mxu1 %v7371_v30 }
0x26d7   : > { %v5177_v49 = vadd.f32 %v5175_v45, %v5161_v15  ;;  %v5180_v48 = vsel %vm1397_vm1, %v10168_v27, 0.0  ;;  %v5188_v11 = vmul.f32 %v10168_v27, %v10168_v27  ;;  %v5213_v14 = vrot.slane %v7496_v63, %v5212_v38  ;;  %7067 = vmatprep.subr.bf16.mxu1 %v8297_v12 }
0x26d8   : > { %5181 = vadd.xlane.f32.xlu1 %v5180_v48  ;;  %v8306_v63 = vmov (!%p6465_p2), 0.0  }
0x26d9   : > { %v10176_v23 = vadd.f32 %v5177_v49, %v9620_v28  ;;  %v5190_v35 = vsel %vm1397_vm1, %v5188_v11, 0.0  ;;  %7075 = vmatprep.subr.bf16.mxu0 (!%p6465_p2), %v8306_v63 }
0x26da   : > { %7068 = vmatpush3.bf16.msra.mxu1 %v7372_v62 }
0x26db   : > { %v5183_v6 = vsel %vm1397_vm1, %v10176_v23, 0.0  ;;  %v5189_v56 = vmul.f32 %v10176_v23, %v10176_v23  ;;  %7069 = vmatprep.subr.bf16.mxu1 %v8297_v12 }
0x26dc   : > { %5191 = vadd.xlane.f32.xlu1 %v5190_v35  ;;  %5184 = vadd.xlane.f32.xlu0 %v5183_v6 }
0x26dd   : > { %v5193_v47 = vsel %vm1397_vm1, %v5189_v56, 0.0 }
0x26de   : > { %7070 = vmatpush3.bf16.msra.mxu1 %v7373_v0 }
0x26e0   : > { %5194 = vadd.xlane.f32.xlu1 %v5193_v47 }
0x2765   : > { %v5182_v28 = vpop.xlane.xlu1 %5181 }
0x2766   : > { %v5186_v34 = vmul.f32 0.03125, %v5182_v28 }
0x2768   : > { %v5198_v41 = vmul.f32 %v5186_v34, %v5186_v34  ;;  %v5202_v39 = vsub.f32 %v10168_v27, %v5186_v34 }
0x2769   : > { %v5185_v52 = vpop.xlane.xlu0 %5184  ;;  %v5192_v57 = vpop.xlane.xlu1 %5191 }
0x276a   : > { %v5187_v44 = vmul.f32 0.03125, %v5185_v52  ;;  %v5196_v51 = vmul.f32 0.03125, %v5192_v57  ;;  %v6459_v52 = vld [vmem:[%s10572_s6] ss:$0 sm:$0xff] }
0x276c   : > { %v5200_v29 = vsub.f32 %v5196_v51, %v5198_v41  ;;  %v5199_v50 = vmul.f32 %v5187_v44, %v5187_v44  ;;  %v5203_v37 = vsub.f32 %v10176_v23, %v5187_v44 }
0x276d   : > { %v5195_v22 = vpop.xlane.xlu1 %5194 }
0x276e   : > { %v5204_v33 = vadd.f32 1e-06, %v5200_v29  ;;  %v5197_v31 = vmul.f32 0.03125, %v5195_v22 }
0x2770   : > { %7486 = vrsqrt.f32 %v5204_v33  ;;  %v5201_v25 = vsub.f32 %v5197_v31, %v5199_v50 }
0x2772   : > { %v5205_v42 = vadd.f32 1e-06, %v5201_v25 }
0x2774   : > { %7488 = vrsqrt.f32 %v5205_v42 }
0x277a   : > { %v7487_v10 = vpop.eup %7486 }
0x277b   : > { %v5208_v58 = vmul.f32 %v7487_v10, %v5202_v39  ;;  %v7497_v39 = vld [vmem:[#allocation32 + $0x10] sm:$0xff] (!%p6465_p2)   ;;  %v7498_v10 = vld [vmem:[#allocation32 + $0x18] sm:$0xff] (!%p6465_p2)  }
0x277c   : > { %7083 = vmatprep.subr.bf16.mxu1 (!%p6465_p2), %v7497_v39 }
0x277d   : > { %v5214_v43 = vmul.f32 %v5213_v14, %v5208_v58  ;;  %v7499_v58 = vld [vmem:[#allocation32] sm:$0xff] (!%p6465_p2)  }
0x277e   : > { %v7489_v40 = vpop.eup %7488 }
0x277f   : > { %v5209_v46 = vmul.f32 %v7489_v40, %v5203_v37  ;;  %v5220_v55 = vadd.f32 %v5219_v53, %v5214_v43 }
0x2781   : > { %v5215_v54 = vmul.f32 %v5213_v14, %v5209_v46 }
0x2783   : > { %v5221_v60 = vadd.f32 %v5219_v53, %v5215_v54 }
0x2785   : > { %v5222_v1 = vpack.c.bf16 %v5221_v60, %v5220_v55 }
0x2787   : > { %7060 = vmatmul.mubr.msk.bf16.vlgmr.msra.gmra.mrb[120].mxu0 %vm1397_vm1, %v5222_v1 }
0x2788   : > { %7079 = vmatprep.mubr.msk.bf16.mxu0 (!%p6465_p2), %vm8307_vm3, %v8306_v63  ;;  %7076 = vmatpush3.bf16.msra.mxu0 (!%p6465_p2), %v7499_v58 }
0x2789   : > { %7077 = vmatprep.subr.bf16.mxu0 (!%p6465_p2), %v8306_v63 }
0x285a   : > { %v5283_v5 = vpop.f32.mrb[120].mxu0 }
0x285b   : > { %v5284_v59 = vadd.f32 %v6455_v3, %v5283_v5  ;;  %v7061_v21 = vpop.f32.mrb[121].mxu0 }
0x285c   : > { %v5286_v7 = vpop.f32.mrb[122].mxu0 }
0x285d   : > { %v5290_v8 = vmul.f32 %v5284_v59, %v5284_v59  ;;  %v5287_v17 = vadd.f32 %v6455_v3, %v5286_v7  ;;  %v7062_v18 = vpop.f32.mrb[123].mxu0  ;;  %v6466_v3 = vld [vmem:[#allocation30] ss:$0 sm:$0xff] (!%p6465_p2) }
0x285f   : > { %v5292_v20 = vmul.f32 %v5290_v8, %v5284_v59  ;;  %v5291_v32 = vmul.f32 %v5287_v17, %v5287_v17 }
0x2861   : > { %v5294_v24 = vmul.f32 0.044715, %v5292_v20  ;;  %v5293_v26 = vmul.f32 %v5291_v32, %v5287_v17 }
0x2863   : > { %v5296_v15 = vadd.f32 %v5294_v24, %v5284_v59  ;;  %v5295_v45 = vmul.f32 0.044715, %v5293_v26  ;;  %v6472_v26 = vld [vmem:[#allocation33 + $0x1] ss:$0 sm:$0xff] (!%p6465_p2) }
0x2865   : > { %v5298_v49 = vmul.f32 0.7978846, %v5296_v15  ;;  %v5297_v12 = vadd.f32 %v5295_v45, %v5287_v17 }
0x2867   : > { %7490 = vtanh.f32 %v5298_v49  ;;  %v5299_v48 = vmul.f32 0.7978846, %v5297_v12 }
0x2869   : > { %7492 = vtanh.f32 %v5299_v48 }
0x2871   : > { %v7491_v11 = vpop.eup %7490 }
0x2872   : > { %v5302_v35 = vadd.f32 1.0, %v7491_v11 }
0x2873   : > { %v7493_v6 = vpop.eup %7492 }
0x2874   : > { %v5304_v56 = vmul.f32 0.5, %v5302_v35  ;;  %v5303_v47 = vadd.f32 1.0, %v7493_v6 }
0x2876   : > { %v5305_v2 = vmul.f32 0.5, %v5303_v47  ;;  %v5306_v36 = vmul.f32 %v5304_v56, %v5284_v59  ;;  %v6467_v59 = vld [vmem:[#allocation30 + $0x1] ss:$0 sm:$0xff] (!%p6465_p2) }
0x2878   : > { %v5307_v28 = vmul.f32 %v5305_v2, %v5287_v17 }
0x287a   : > { %v5308_v34 = vpack.c.bf16 %v5307_v28, %v5306_v36  ;;  %v6468_v28 = vld [vmem:[#allocation33] ss:$0 sm:$0xff] (!%p6465_p2) }
0x287c   : > { %7072 = vmatmul.mubr.msk.bf16.vlgmr.msra.gmra.mrb[120].mxu1 %vm5348_vm2, %v5308_v34 }
0x287d   : > { %7087 = vmatprep.mubr.msk.bf16.mxu1 (!%p6465_p2), %vm1397_vm1, %v9636_v13  ;;  %7084 = vmatpush3.bf16.msra.mxu1 (!%p6465_p2), %v7497_v39  ;;  %v7500_v13 = vld [vmem:[#allocation32 + $0x8] sm:$0xff] (!%p6465_p2)  }
0x287e   : > { %7085 = vmatprep.subr.bf16.mxu1 (!%p6465_p2), %v7498_v10  ;;  %7078 = vmatpush3.bf16.msra.mxu0 (!%p6465_p2), %v7500_v13 }
0x287f   : > { %7091 = vmatprep.subr.bf16.mxu0 (!%p6465_p2), %v8306_v63 }
0x2881   : > { %7086 = vmatpush3.bf16.msra.mxu1 (!%p6465_p2), %v7498_v10 }
0x2882   : > { %7097 = vmatprep.subr.bf16.mxu1 (!%p6465_p2), %v8306_v63 }
0x2884   : > { %7088 = vmatmul.mubr.msk.bf16.vlgmr.msra.gmra.mrb[0].mxu1 (!%p6465_p2), %vm1397_vm1, %v9640_v16 }
0x2885   : > { %7099 = vmatprep.mubr.msk.bf16.mxu1 (!%p6465_p2), %vm8307_vm3, %v8306_v63 }
0x294f   : > { %v5386_v57 = vpop.f32.mrb[120].mxu1 }
0x2950   : > { %v5387_v41 = vadd.f32 %v6459_v52, %v5386_v57  ;;  %v7073_v44 = vpop.f32.mrb[121].mxu1  ;;  %5400 = sbr.rel (%p6465_p2) target bundleno = 11500 (0x2cec), region = 188 }
0x2951   : > { %v5389_v51 = vpop.f32.mrb[122].mxu1 }
0x2952   : > { %v5393_v29 = vadd.f32 %v5387_v41, %v10168_v27  ;;  %v5390_v22 = vadd.f32 %v6459_v52, %v5389_v51  ;;  %v7074_v50 = vpop.f32.mrb[123].mxu1 }
0x2954   : > { %5395 = vst.msk [vmem:[#allocation2] sm:$0xff] %vm1397_vm1, %v5393_v29  ;;  %v5394_v33 = vadd.f32 %v5390_v22, %v10176_v23  ;;  %v5403_v31 = vsel (!%p6465_p2), %vm1397_vm1, %v5393_v29, 0.0  ;;  %v5411_v25 = vmul.f32 (!%p6465_p2), %v5393_v29, %v5393_v29 }
0x2955   : > { %5404 = vadd.xlane.f32.xlu0 (!%p6465_p2), %v5403_v31 }
0x2956   : > { %5396 = vst.msk [vmem:[#allocation2 + $0x8] sm:$0xff] %vm1397_vm1, %v5394_v33  ;;  %v5412_v42 = vmul.f32 (!%p6465_p2), %v5394_v33, %v5394_v33  ;;  %v5413_v27 = vsel (!%p6465_p2), %vm1397_vm1, %v5411_v25, 0.0  ;;  %v5406_v38 = vsel (!%p6465_p2), %vm1397_vm1, %v5394_v33, 0.0 }
0x2957   : > { %5414 = vadd.xlane.f32.xlu1 %v5413_v27  ;;  %v7089_v15 = vpop.f32.mrb[0].mxu1 }
0x2958   : > { %v5416_v23 = vsel %vm1397_vm1, %v5412_v42, 0.0  ;;  %v5576_v45 = vadd.f32 %v7089_v15, %v6472_v26  ;;  %v5567_v49 = vpop.f32.mrb[1].mxu1 }
0x2959   : > { %5407 = vadd.xlane.f32.xlu0 %v5406_v38  ;;  %v5568_v12 = vadd.f32 %v6472_v26, %v5567_v49  ;;  %v7090_v48 = vpop.f32.mrb[2].mxu1 }
0x295a   : > { %v5579_v11 = vadd.f32 %v7090_v48, %v6472_v26  ;;  %v5570_v35 = vpop.f32.mrb[3].mxu1 }
0x295b   : > { %5417 = vadd.xlane.f32.xlu1 %v5416_v23  ;;  %v5571_v6 = vadd.f32 %v6472_v26, %v5570_v35 }
0x295c   : > { %v5589_v56 = vpack.c.bf16 %v5579_v11, %v5576_v45 }
0x295d   : > { %v5588_v47 = vpack.c.bf16 %v5571_v6, %v5568_v12 }
0x295e   : > { %v5640_v2 = vsel %vm1397_vm1, %v5589_v56, 0 }
0x295f   : > { %v5594_v36 = vsel %vm1397_vm1, %v5588_v47, 0  ;;  %7098 = vmatpush3.bf16.xpose.msra.mxu1 %v5640_v2 }
0x29e2   : > { %v5405_v14 = vpop.xlane.xlu0 %5404 }
0x29e3   : > { %v5409_v4 = vmul.f32 0.03125, %v5405_v14 }
0x29e4   : > { %v5415_v37 = vpop.xlane.xlu1 %5414 }
0x29e5   : > { %v5421_v40 = vmul.f32 %v5409_v4, %v5409_v4  ;;  %v5419_v46 = vmul.f32 0.03125, %v5415_v37  ;;  %v5425_v16 = vsub.f32 %v5393_v29, %v5409_v4 }
0x29e6   : > { %v5408_v43 = vpop.xlane.xlu0 %5407 }
0x29e7   : > { %v5423_v53 = vsub.f32 %v5419_v46, %v5421_v40  ;;  %v5410_v54 = vmul.f32 0.03125, %v5408_v43 }
0x29e8   : > { %v5418_v55 = vpop.xlane.xlu1 %5417 }
0x29e9   : > { %v5427_v60 = vadd.f32 1e-06, %v5423_v53  ;;  %v5422_v1 = vmul.f32 %v5410_v54, %v5410_v54  ;;  %v5420_v19 = vmul.f32 0.03125, %v5418_v55  ;;  %v5426_v21 = vsub.f32 %v5394_v33, %v5410_v54 }
0x29eb   : > { %7501 = vrsqrt.f32 %v5427_v60  ;;  %v5424_v30 = vsub.f32 %v5420_v19, %v5422_v1 }
0x29ed   : > { %v5428_v62 = vadd.f32 1e-06, %v5424_v30 }
0x29ef   : > { %7503 = vrsqrt.f32 %v5428_v62 }
0x29f5   : > { %v7502_v0 = vpop.eup %7501 }
0x29f6   : > { %v5431_v5 = vmul.f32 %v7502_v0, %v5425_v16 }
0x29f8   : > { %v5437_v7 = vmul.f32 %v6466_v3, %v5431_v5 }
0x29f9   : > { %v7504_v8 = vpop.eup %7503 }
0x29fa   : > { %v5432_v17 = vmul.f32 %v7504_v8, %v5426_v21  ;;  %v5443_v18 = vadd.f32 %v6467_v59, %v5437_v7 }
0x29fc   : > { %v5438_v20 = vmul.f32 %v6466_v3, %v5432_v17  ;;  %5684 = vst.msk [vmem:[%s9344_s16] sm:$0xff] %vm1397_vm1, %v5443_v18 }
0x29fe   : > { %v5444_v32 = vadd.f32 %v6467_v59, %v5438_v20 }
0x2a00   : > { %v5445_v24 = vpack.c.bf16 %v5444_v32, %v5443_v18  ;;  %5685 = vst.msk [vmem:[%s9344_s16 + $0x8] sm:$0xff] %vm1397_vm1, %v5444_v32 }
0x2a02   : > { %7080 = vmatmul.mubr.msk.bf16.vlgmr.msra.gmra.mrb[0].mxu0 %vm1397_vm1, %v5445_v24 }
0x2a03   : > { %7093 = vmatprep.mubr.msk.bf16.mxu0 %vm8307_vm3, %v8306_v63  ;;  %7092 = vmatpush3.bf16.xpose.msra.mxu0 %v5594_v36 }
0x2ad5   : > { %v5504_v34 = vpop.f32.mrb[0].mxu0 }
0x2ad6   : > { %v5505_v52 = vadd.f32 %v6468_v28, %v5504_v34  ;;  %v7081_v57 = vpop.f32.mrb[1].mxu0 }
0x2ad7   : > { %v5507_v41 = vpop.f32.mrb[2].mxu0 }
0x2ad8   : > { %v6514_v44 = vpack.c.bf16 %v5505_v52, %v5505_v52  ;;  %v5508_v51 = vadd.f32 %v6468_v28, %v5507_v41  ;;  %v7082_v29 = vpop.f32.mrb[3].mxu0 }
0x2ada   : > { %v6515_v22 = vpack.c.bf16 %v5508_v51, %v5508_v51  ;;  %7094 = vmatmul.mubr.msk.bf16.vlgmr.msra.gmra.mrb[4].mxu0 %vm1397_vm1, %v6514_v44 }
0x2adc   : > { %7100 = vmatmul.mubr.msk.bf16.vlgmr.msra.gmra.mrb[4].mxu1 %vm1397_vm1, %v6515_v22 }
0x2bad   : > { %v5630_v50 = vpop.f32.mrb[4].mxu0 }
0x2bae   : > { %v5682_v33 = vsel %vm9714_vm0, -1e+18, %v5630_v50  ;;  %v7095_v31 = vpop.f32.mrb[5].mxu0 }
0x2baf   : > { %v5633_v25 = vpop.f32.mrb[6].mxu0  ;;  %v5676_v42 = vpop.f32.mrb[4].mxu1  ;;  %v5686_v27 = vsel %vm2555_vm12, %v5682_v33, -inf }
0x2bb0   : > { %v5683_v38 = vsel %vm9718_vm5, -1e+18, %v5676_v42  ;;  %v7101_v23 = vpop.f32.mrb[5].mxu1  ;;  %5687 = vmax.xlane.f32.xlu0 %v5686_v27  ;;  %v7096_v39 = vpop.f32.mrb[7].mxu0 }
0x2bb1   : > { %v5679_v10 = vpop.f32.mrb[6].mxu1  ;;  %v5689_v58 = vsel %vm2555_vm12, %v5683_v38, -inf }
0x2bb2   : > { %5690 = vmax.xlane.f32.xlu1 %v5689_v58  ;;  %v7102_v63 = vpop.f32.mrb[7].mxu1 }
0x2c3d   : > { %v5688_v13 = vpop.xlane.xlu0 %5687 }
0x2c3e   : > { %v5692_v14 = vsub.f32 %v5682_v33, %v5688_v13 }
0x2c3f   : > { %v5691_v9 = vpop.xlane.xlu1 %5690 }
0x2c40   : > { %v5694_v4 = vmul.f32 1.442695, %v5692_v14  ;;  %v5693_v37 = vsub.f32 %v5683_v38, %v5691_v9 }
0x2c42   : > { %7505 = vpow2.f32 %v5694_v4  ;;  %v5696_v40 = vmul.f32 1.442695, %v5693_v37 }
0x2c44   : > { %7507 = vpow2.f32 %v5696_v40 }
0x2c4c   : > { %v7506_v61 = vpop.eup %7505 }
0x2c4d   : > { %v5698_v46 = vsel %vm2555_vm12, %v7506_v61, 0.0 }
0x2c4e   : > { %v7508_v43 = vpop.eup %7507  ;;  %5699 = vadd.xlane.f32.xlu0 %v5698_v46 }
0x2c4f   : > { %v5701_v53 = vsel %vm2555_vm12, %v7508_v43, 0.0 }
0x2c50   : > { %5702 = vadd.xlane.f32.xlu1 %v5701_v53 }
0x2cdb   : > { %v5700_v54 = vpop.xlane.xlu0 %5699 }
0x2cdc   : > { %7509 = vrcp.f32 %v5700_v54 }
0x2cdd   : > { %v5703_v55 = vpop.xlane.xlu1 %5702 }
0x2cde   : > { %7511 = vrcp.f32 %v5703_v55 }
0x2ce6   : > { %v7510_v60 = vpop.eup %7509 }
0x2ce7   : > { %v5706_v1 = vmul.f32 %v7510_v60, %v7506_v61 }
0x2ce8   : > { %v7512_v19 = vpop.eup %7511 }
0x2ce9   : > { %5708 = vst.msk [vmem:[%s9347_s25] sm:$0xff] %vm2555_vm12, %v5706_v1  ;;  %v5707_v30 = vmul.f32 %v7512_v19, %v7508_v43 }
0x2ceb   : > { %5709 = vst.msk [vmem:[%s9347_s25 + $0x8] sm:$0xff] %vm2555_vm12, %v5707_v30 }
0x2cec PF: > { %s10574_s22 = sld [smem:[#allocation57_spill]]  ;;  %s10575_s2 = sld [smem:[#allocation66_spill]] }
0x2ced   : > { %s10576_s12 = sld [smem:[#allocation87_spill]]  ;;  %s5729_s11 = sshll.u32 %s9344_s16, 4  ;;  %s10250_s11 = int_to_ptr.vmem [resolvable:$true] %s5729_s11 }
0x2cee   : > { %s5711_s19 = scalar_lea.sflag [#allocation5], %s9243_s26  ;;  %s8073_s0 = scalar_lea.vmem %s10250_s11, 256 }
0x2cef   : > { %p8074_p8 = scmp.ne.s32.totalorder %s10250_s11, %s8073_s0  ;;  %s8308_s27 = smov [#allocation35]  }
0x2cf0   : > { %s8077_s5 = sshll.u32 %s8308_s27, 4  ;;  %s8078_s5 = int_to_ptr.vmem [resolvable:$false] %s8077_s5 }
0x2cf1   : > { %s8079_s29 = scalar_lea.vmem %s8078_s5, 512  ;;  %p8080_p6 = scmp.lt.s32.totalorder %s10250_s11, %s8078_s5 }
0x2cf2   : > { %s6516_s9 = sshll.u32 %s10574_s22, 8  ;;  %p10577_p0 = scmp.ne.s32.totalorder %s10575_s2, 0 }
0x2cf3   : > { %s10247_s21 = scalar_lea.hbm %s10576_s12, %s6516_s9  ;;  %p8081_p9 = scmp.lt.s32.totalorder %s8079_s29, %s8073_s0 }
0x2cf4   : > { %p8075_p11 = pnand %p8074_p8, %p10577_p0 }
0x2cf5   : > { %p8082_p7 = por %p8081_p9, %p8080_p6 }
0x2cf6   : > { %p8076_p5 = pneg %p8075_p11 }
0x2cf8   : > { %p8083_p10 = pnand %p8082_p7, %p8076_p5 }
0x2cfa   : > { %8086 = shalt.err (!%p8083_p10)
}
0x2cfb   : > { %s8087_s16 = scalar_lea.hbm %s10247_s21, 256  ;;  %s8091_s7 = scalar_lea.hbm %s10576_s12, 512 }
0x2cfc   : > { %p8088_p1 = scmp.ne.s32.totalorder %s10247_s21, %s8087_s16  ;;  %p8092_p13 = scmp.lt.u32.totalorder %s10247_s21, %s10576_s12 }
0x2cfd   : > { %p8093_p4 = scmp.lt.u32.totalorder %s8091_s7, %s8087_s16  ;;  %p8095_p8 = scmp.lt.u32.totalorder %s8087_s16, %s10247_s21 }
0x2cfe   : > { %p8089_p12 = pnand %p8088_p1, %p10577_p0 }
0x2cff   : > { %p8094_p2 = por %p8093_p4, %p8092_p13 }
0x2d00   : > { %p8090_p3 = pneg %p8089_p12 }
0x2d01   : > { %p8096_p11 = por %p8095_p8, %p8094_p2 }
0x2d03   : > { %p8097_p5 = pnand %p8096_p11, %p8090_p3 }
0x2d05   : > { %8100 = shalt.err (!%p8097_p5)
}
0x2d06   : > { %s8309_s14 = smov 128   ;;  %s10578_s27 = sld [smem:[#allocation88_spill]] }
0x2d07   : > { %7155 = dma.vmem_to_hbm [thread:$0]  (%p10577_p0), %s10250_s11, 256, %s10247_s21, %s5711_s19, %s8309_s14, %s8309_s14, %s8303_s10  }
0x2d08   : > { %s5745_s29 = sshll.u32 %s9347_s25, 4  ;;  %s5716_s1 = scalar_lea.sflag [#allocation37], %s9243_s26  ;;  %s10287_s29 = int_to_ptr.vmem [resolvable:$true] %s5745_s29 }
0x2d09   : > { %s8101_s8 = scalar_lea.vmem %s10287_s29, 256  ;;  %s8310_s7 = smov [#allocation36]  }
0x2d0a   : > { %p8102_p6 = scmp.ne.s32.totalorder %s10287_s29, %s8101_s8  ;;  %s8105_s21 = sshll.u32 %s8310_s7, 4  ;;  %s8106_s21 = int_to_ptr.vmem [resolvable:$false] %s8105_s21 }
0x2d0b   : > { %s8107_s22 = scalar_lea.vmem %s8106_s21, 512  ;;  %p8108_p10 = scmp.lt.s32.totalorder %s10287_s29, %s8106_s21 }
0x2d0c   : > { %s10579_s16 = smov %s10578_s27  ;;  %s10284_s5 = scalar_lea.hbm %s10578_s27, %s6516_s9 }
0x2d0d   : > { %p8103_p9 = pnand %p8102_p6, %p10577_p0  ;;  %p8109_p1 = scmp.lt.s32.totalorder %s8107_s22, %s8101_s8 }
0x2d0f   : > { %p8104_p7 = pneg %p8103_p9  ;;  %p8110_p12 = por %p8109_p1, %p8108_p10 }
0x2d11   : > { %p8111_p3 = pnand %p8110_p12, %p8104_p7 }
0x2d13   : > { %8114 = shalt.err (!%p8111_p3)
}
0x2d14   : > { %s8115_s25 = scalar_lea.hbm %s10284_s5, 256  ;;  %s8119_s19 = scalar_lea.hbm %s10579_s16, 512 }
0x2d15   : > { %p8116_p13 = scmp.ne.s32.totalorder %s10284_s5, %s8115_s25  ;;  %p8120_p8 = scmp.lt.u32.totalorder %s10284_s5, %s10579_s16 }
0x2d16   : > { %p8121_p11 = scmp.lt.u32.totalorder %s8119_s19, %s8115_s25  ;;  %p8123_p6 = scmp.lt.u32.totalorder %s8115_s25, %s10284_s5 }
0x2d17   : > { %p8117_p4 = pnand %p8116_p13, %p10577_p0 }
0x2d18   : > { %p8122_p5 = por %p8121_p11, %p8120_p8 }
0x2d19   : > { %p8118_p2 = pneg %p8117_p4 }
0x2d1a   : > { %p8124_p9 = por %p8123_p6, %p8122_p5 }
0x2d1c   : > { %p8125_p7 = pnand %p8124_p9, %p8118_p2 }
0x2d1e   : > { %8128 = shalt.err (!%p8125_p7)
}
0x2d1f   : > { %7156 = dma.vmem_to_hbm [thread:$0]  (%p10577_p0), %s10287_s29, 256, %s10284_s5, %s5716_s1, %s8309_s14, %s8309_s14, %s8303_s10  }
0x2d20 PF: > { %s10580_s3 = sld [smem:[#allocation58_spill]]  ;;  %s10581_s0 = sld [smem:[#allocation53_spill]] }
0x2d21   : > { %s10582_s27 = sld [smem:[#allocation67_spill]] }
0x2d26   : > { %p7182_p10 = scmp.ge.s32.totalorder %s10580_s3, 2  ;;  %s5760_s8 = sand.u32 1, %s10581_s0  }
0x2d27   : > { %p10583_p1 = scmp.ne.s32.totalorder %s10582_s27, 0  ;;  %s5761_s7 = scalar_lea.sflag [#allocation5], %s5760_s8 }
0x2d29   : > { %p7170_p12 = pnand %p7182_p10, %p10583_p1 }
0x2d2b   : > { %8218 = dma.done.wait (!%p7170_p12), %s5761_s7, 256  }
0x2d2c   : > { %8220 = vsyncadd (!%p7170_p12), %s5761_s7, 4294967040  ;;  %s5770_s2 = scalar_lea.sflag [#allocation37], %s5760_s8 }
0x2d2d   : > { %8222 = dma.done.wait (!%p7170_p12), %s5770_s2, 256  }
0x2d2e   : > { %8224 = vsyncadd (!%p7170_p12), %s5770_s2, 4294967040  ;;  %s67_s5 = sadd.s32 1, %s10580_s3   ;;  %s10584_s2 = sld [smem:[#allocation51_spill]] }
0x2d2f   : > { %p64_p3 = scmp.ge.s32.totalorder %s67_s5, 6   ;;  %s10585_s25 = sld [smem:[#allocation52_spill]] }
0x2d30   : > { %s10586_s26 = sld [smem:[#allocation63_spill]]  ;;  %s10587_s27 = sld [smem:[#allocation54_spill]] }
0x2d31   : > { %s10588_s3 = sld [smem:[#allocation55_spill]]  ;;  %s10589_s28 = sld [smem:[#allocation64_spill]] }
0x2d32   : > { %s10590_s10 = sld [smem:[#allocation60_spill]]  ;;  %s10591_s14 = sld [smem:[#allocation61_spill]] }
0x2d33   : > { %s10592_s29 = smov %s8259_s4  ;;  %s10593_s0 = smov %s8263_s30 }
0x2d34   :  { %66 = sbr.rel (!%p64_p3) target bundleno = 50 (0x32), region = 385 }
0x2d38   : > { %s10594_s4 = smov %s10590_s10  ;;  %s10595_s30 = smov %s10591_s14 }
0x2d3b   :  { %5775 = vsyncpa [#allocation4], 1 }
0x2d3c   :  { %5777 = vsyncpa [#allocation4 + $0x1], 1 }
0x2d3d   :  { %5778 = vsyncpa [#allocation7], 1 }
0x2d3e   :  { %5780 = vsyncpa [#allocation7 + $0x1], 1 }
0x2d3f   :  { %5781 = vsyncpa [#allocation10], 1 }
0x2d40   :  { %5783 = vsyncpa [#allocation10 + $0x1], 1 }
0x2d41   :  { %5784 = vsyncpa [#allocation13], 1 }
0x2d42   :  { %5786 = vsyncpa [#allocation13 + $0x1], 1 }
0x2d43   :  { %5787 = vsyncpa [#allocation16], 1 }
0x2d44   :  { %5789 = vsyncpa [#allocation16 + $0x1], 1 }
0x2d45   :  { %5790 = vsyncpa [#allocation19], 1 }
0x2d46   :  { %5792 = vsyncpa [#allocation19 + $0x1], 1 }
0x2d47   :  { %5793 = vsyncpa [#allocation22], 1 }
0x2d48   :  { %5795 = vsyncpa [#allocation22 + $0x1], 1 }
0x2d49   :  { %5796 = vsyncpa [#allocation25], 1 }
0x2d4a   :  { %5798 = vsyncpa [#allocation25 + $0x1], 1 }
0x2d4b   :  { %5799 = vsyncpa [#allocation28], 1 }
0x2d4c   :  { %5801 = vsyncpa [#allocation28 + $0x1], 1 }
0x2d4d   :  { %5802 = vsyncpa [#allocation31], 1 }
0x2d4e   :  { %5803 = vsyncpa [#allocation34], 1 }
0x2d4f   :  { %5804 = vsyncpa [#allocation5], 1 }
0x2d50   :  { %5806 = vsyncpa [#allocation5 + $0x1], 1 }
0x2d51   :  { %5807 = vsyncpa [#allocation37], 1 }
0x2d52   :  { %5809 = vsyncpa [#allocation37 + $0x1], 1 }

</bundles_post_ra>
